<compile_context>
chip_gen: v6e
topology: v6e:2x2x1
jax: 0.10.0
libtpu: 0.0.40
codegen_flags: <defaults>
</compile_context>

<pallas_src>
import math

import jax
import jax.numpy as jnp
from jax.experimental import pallas as pl
from jax.experimental.pallas import tpu as pltpu

_INV_SQRT2 = 0.7071067811865476
_GN_EPS = 1e-5


def _round_up(x, m):
    return (x + m - 1) // m * m


def _erf(x):
    # Exact-GELU erf via Abramowitz & Stegun 7.1.26 (|err| < 1.5e-7); avoids relying
    # on a Mosaic erf lowering.
    p = 0.3275911
    a1, a2, a3, a4, a5 = 0.254829592, -0.284496736, 1.421413741, -1.453152027, 1.061405429
    s = jnp.where(x < 0.0, -1.0, 1.0)
    ax = jnp.abs(x)
    t = 1.0 / (1.0 + p * ax)
    poly = t * (a1 + t * (a2 + t * (a3 + t * (a4 + t * a5))))
    return s * (1.0 - poly * jnp.exp(-ax * ax))


def _gelu(x):
    # PyTorch default (exact, erf-based) GELU, in f32.
    return 0.5 * x * (1.0 + _erf(x * _INV_SQRT2))


def _tap_masks(d2, h2, w2):
    """(27, P) 0/1 float mask: is tap (kd,kh,kw) inside the volume at voxel p.

    The mask checks each spatial dim independently, so it also zeroes positions whose
    flat index would *wrap* -- which is what makes a circular lane roll a correct way
    to build the shifted taps (no halo padding needed).
    """
    d = jnp.arange(d2).reshape(d2, 1, 1)
    h = jnp.arange(h2).reshape(1, h2, 1)
    w = jnp.arange(w2).reshape(1, 1, w2)
    rows = []
    for kd in range(3):
        for kh in range(3):
            for kw in range(3):
                ok = ((d + kd - 1 >= 0) & (d + kd - 1 < d2) &
                      (h + kh - 1 >= 0) & (h + kh - 1 < h2) &
                      (w + kw - 1 >= 0) & (w + kw - 1 < w2))
                rows.append(ok.reshape(-1))
    return jnp.stack(rows, axis=0).astype(jnp.float32)


def _make_down_kernel(h2, w2, p_true, p_pad, mm_dtype):
    hw = h2 * w2
    inv_p = 1.0 / float(p_true)   # GN divisor = true voxel count (padded cols are zero)

    def kernel(x_ref, mask_ref, emb_ref,
               w1a, g1a, b1a, w1b, g1b, b1b,
               w2a, g2a, b2a, w2b, g2b, b2b,
               out_ref, slab_ref):

        def conv_gn(a, w_ref, g_ref, b_ref):
            """a: (C, P_pad) f32 channel-major activation -> GroupNorm(conv3d(a)) f32."""
            C = a.shape[0]
            # Build the (27*C, P_pad) tap slab directly in the mm-dtype scratch:
            # one rolled+masked tap at a time (bounded live ranges, no concat, no
            # extra f32 materialization).  Rows 0..27*C-1 are all rewritten here, so
            # no stale data is ever read by the matmul below.
            for k in range(27):
                kd, kh, kw = k // 9, (k // 3) % 3, k % 3
                delta = (kd - 1) * hw + (kh - 1) * w2 + (kw - 1)
                shift = (-delta) % p_pad
                rolled = pltpu.roll(a, shift=shift, axis=1) if shift else a
                slab_ref[k * C:(k + 1) * C, :] = (
                    rolled.astype(mm_dtype) * mask_ref[k:k + 1, :])
            # One MXU matmul per conv: (Cout, 27*C) x (27*C, P_pad) -> f32.
            acc = jnp.dot(w_ref[...], slab_ref[0:27 * C, :],
                          preferred_element_type=jnp.float32)
            # GroupNorm(num_groups == num_channels): per-channel stats over spatial,
            # single pass (sum & sum-of-squares).
            s1 = jnp.sum(acc, axis=1, keepdims=True)
            s2 = jnp.sum(acc * acc, axis=1, keepdims=True)
            mean = s1 * inv_p
            var = jnp.maximum(s2 * inv_p - mean * mean, 0.0)
            y = (acc - mean) * jax.lax.rsqrt(var + _GN_EPS)
            return y * g_ref[...] + b_ref[...]

        a0 = x_ref[0].astype(jnp.float32)                  # (Cin_p, P_pad) pooled input
        # DoubleConv(in_ch, in_ch, residual=True): gelu(x + GN(conv(gelu(GN(conv(x))))))
        y = _gelu(conv_gn(a0, w1a, g1a, b1a))
        h = _gelu(a0 + conv_gn(y, w1b, g1b, b1b))
        # DoubleConv(in_ch, out_ch)
        y = _gelu(conv_gn(h, w2a, g2a, b2a))
        y = conv_gn(y, w2b, g2b, b2b)
        # + broadcast time embedding
        y = y + emb_ref[0]                                  # (Cout_p, 1) over lanes
        out_ref[...] = y[None].astype(out_ref.dtype)

    return kernel


def down_forward(x, t, params, matmul_dtype=jnp.bfloat16):
    """x: (N, Cin, D, H, W) NCDHW; t: (N, E). Returns (N, Cout, D/2, H/2, W/2)."""
    N, Cin, D, H, W = x.shape
    assert D % 2 == 0 and H % 2 == 0 and W % 2 == 0, "MaxPool3d(2) needs even D/H/W"
    D2, H2, W2 = D // 2, H // 2, W // 2
    P = D2 * H2 * W2
    Cout = params["w2b"].shape[0]

    # Lane / sublane alignment (perf review): P -> multiple of 128, C -> multiple of 8.
    P_pad = _round_up(P, 128)
    Cin_p = _round_up(Cin, 8)
    Cout_p = _round_up(Cout, 8)
    c_max_p = max(Cin_p, Cout_p)
    mmdt = matmul_dtype

    # MaxPool3d(2): one XLA reshape+max fusion producing the channel-major (N, C, P)
    # layout, then zero-pad channels/voxels and ship in the matmul dtype (halves DMA
    # for bf16; padded entries are exact zeros so kernel math is padding-invariant).
    xp = x.reshape(N, Cin, D2, 2, H2, 2, W2, 2)
    pooled = jnp.max(xp, axis=(3, 5, 7)).reshape(N, Cin, P)
    pooled = jnp.pad(pooled, ((0, 0), (0, Cin_p - Cin), (0, P_pad - P))).astype(mmdt)

    # SiLU -> Linear embedding head in plain XLA; broadcast add is fused in-kernel.
    tv = t.astype(jnp.float32)
    emb = (tv * jax.nn.sigmoid(tv)) @ params["wl"].T.astype(jnp.float32) + params["bl"]
    emb = jnp.pad(emb, ((0, 0), (0, Cout_p - Cout)))
    emb = emb.reshape(N, Cout_p, 1).astype(jnp.float32)

    # Per-tap validity masks (zeros in padded voxel columns), stored in matmul dtype
    # so the mask multiply runs in bf16 on v6e/v7x.
    masks = _tap_masks(D2, H2, W2)                               # (27, P) f32
    masks = jnp.pad(masks, ((0, 0), (0, P_pad - P))).astype(mmdt)

    def pad_w(w_cm, cin, cout, cin_p, cout_p):
        # (Cout, 27*Cin) channel-major -> zero-padded (Cout_p, 27*Cin_p); column index
        # = k*Cin_p + c, matching slab rows k*C + c.
        w3 = w_cm.reshape(cout, 27, cin)
        w3 = jnp.pad(w3, ((0, cout_p - cout), (0, 0), (0, cin_p - cin)))
        return w3.reshape(cout_p, 27 * cin_p).astype(mmdt)

    def pad_c(v, cp):
        # Zero-pad gamma/beta so padded output channels stay exactly zero.
        return jnp.pad(v, ((0, cp - v.shape[0]), (0, 0))).astype(jnp.float32)

    w1a = pad_w(params["w1a"], Cin, Cin, Cin_p, Cin_p)
    w1b = pad_w(params["w1b"], Cin, Cin, Cin_p, Cin_p)
    w2a = pad_w(params["w2a"], Cin, Cout, Cin_p, Cout_p)
    w2b = pad_w(params["w2b"], Cout, Cout, Cout_p, Cout_p)
    g1a, b1a = pad_c(params["g1a"], Cin_p), pad_c(params["b1a"], Cin_p)
    g1b, b1b = pad_c(params["g1b"], Cin_p), pad_c(params["b1b"], Cin_p)
    g2a, b2a = pad_c(params["g2a"], Cout_p), pad_c(params["b2a"], Cout_p)
    g2b, b2b = pad_c(params["g2b"], Cout_p), pad_c(params["b2b"], Cout_p)

    kernel = _make_down_kernel(H2, W2, P, P_pad, mmdt)
    const2 = lambda n: (0, 0)

    # vmem_limit_bytes sized from actual blocks (double-buffered inputs/outputs +
    # single slab scratch) with 2x margin for Mosaic-internal temporaries.
    def _nbytes(shape, dt):
        return math.prod(shape) * jnp.dtype(dt).itemsize

    est = (
        2 * _nbytes((1, Cin_p, P_pad), mmdt)                         # pooled block
        + 2 * _nbytes((27, P_pad), mmdt)                             # masks
        + 2 * _nbytes((1, Cout_p, 1), jnp.float32)                   # emb
        + 2 * (_nbytes((Cin_p, 27 * Cin_p), mmdt) * 2
               + _nbytes((Cout_p, 27 * Cin_p), mmdt)
               + _nbytes((Cout_p, 27 * Cout_p), mmdt))               # conv weights
        + 2 * 8 * _nbytes((c_max_p, 1), jnp.float32)                 # GN gamma/beta
        + 2 * _nbytes((1, Cout_p, P_pad), x.dtype)                   # output block
        + _nbytes((27 * c_max_p, P_pad), mmdt)                       # slab scratch
    )
    vmem_limit = int(min(max(2 * est, 32 * 2 ** 20), 110 * 2 ** 20))

    out = pl.pallas_call(
        kernel,
        out_shape=jax.ShapeDtypeStruct((N, Cout_p, P_pad), x.dtype),
        grid=(N,),
        in_specs=[
            pl.BlockSpec((1, Cin_p, P_pad), lambda n: (n, 0, 0)),    # pooled activation
            pl.BlockSpec((27, P_pad), const2),                       # tap masks
            pl.BlockSpec((1, Cout_p, 1), lambda n: (n, 0, 0)),       # time embedding
            pl.BlockSpec((Cin_p, 27 * Cin_p), const2),               # w1a
            pl.BlockSpec((Cin_p, 1), const2),                        # g1a
            pl.BlockSpec((Cin_p, 1), const2),                        # b1a
            pl.BlockSpec((Cin_p, 27 * Cin_p), const2),               # w1b
            pl.BlockSpec((Cin_p, 1), const2),                        # g1b
            pl.BlockSpec((Cin_p, 1), const2),                        # b1b
            pl.BlockSpec((Cout_p, 27 * Cin_p), const2),              # w2a
            pl.BlockSpec((Cout_p, 1), const2),                       # g2a
            pl.BlockSpec((Cout_p, 1), const2),                       # b2a
            pl.BlockSpec((Cout_p, 27 * Cout_p), const2),             # w2b
            pl.BlockSpec((Cout_p, 1), const2),                       # g2b
            pl.BlockSpec((Cout_p, 1), const2),                       # b2b
        ],
        out_specs=pl.BlockSpec((1, Cout_p, P_pad), lambda n: (n, 0, 0)),
        scratch_shapes=[pltpu.VMEM((27 * c_max_p, P_pad), mmdt)],    # tap slab
        compiler_params=pltpu.CompilerParams(
            dimension_semantics=("parallel",),     # N>=2 keeps both v7x TCs busy
            vmem_limit_bytes=vmem_limit),
    )(pooled, masks, emb,
      w1a, g1a, b1a, w1b, g1b, b1b,
      w2a, g2a, b2a, w2b, g2b, b2b)

    return out[:, :Cout, :P].reshape(N, Cout, D2, H2, W2)


# ---------------------------------------------------------------------------
# Deterministic parameter construction (PyTorch shapes -> kernel layout)
# ---------------------------------------------------------------------------
def make_params(key, in_ch, out_ch, emb_dim):
    ks = jax.random.split(key, 10)

    def conv_w(k, cin, cout):
        # PyTorch Conv3d weight (Cout, Cin, 3,3,3) -> channel-major (Cout, 27*Cin);
        # column index = (kd*9 + kh*3 + kw)*Cin + c, matching the in-kernel slab rows.
        w = jax.random.normal(k, (cout, cin, 3, 3, 3), jnp.float32) * 0.1
        return jnp.transpose(w, (0, 2, 3, 4, 1)).reshape(cout, 27 * cin)

    def gn(k, c):
        kg, kb = jax.random.split(k)
        gamma = 1.0 + 0.1 * jax.random.normal(kg, (c, 1), jnp.float32)
        beta = 0.1 * jax.random.normal(kb, (c, 1), jnp.float32)
        return gamma, beta

    p = {}
    p["w1a"] = conv_w(ks[0], in_ch, in_ch)
    p["g1a"], p["b1a"] = gn(ks[1], in_ch)
    p["w1b"] = conv_w(ks[2], in_ch, in_ch)
    p["g1b"], p["b1b"] = gn(ks[3], in_ch)
    p["w2a"] = conv_w(ks[4], in_ch, out_ch)
    p["g2a"], p["b2a"] = gn(ks[5], out_ch)
    p["w2b"] = conv_w(ks[6], out_ch, out_ch)
    p["g2b"], p["b2b"] = gn(ks[7], out_ch)
    # Linear(emb_dim, out_ch): PyTorch layout (out_ch, emb_dim), bias (out_ch,).
    p["wl"] = jax.random.normal(ks[8], (out_ch, emb_dim), jnp.float32) * 0.1
    p["bl"] = 0.1 * jax.random.normal(ks[9], (out_ch,), jnp.float32)
    return p


# ---------------------------------------------------------------------------
# Pure-JAX (XLA) reference of Down.forward for a numerical sanity check
# ---------------------------------------------------------------------------
def _reference(x, t, params):
    N, Cin, D, H, W = x.shape
    D2, H2, W2 = D // 2, H // 2, W // 2

    pooled = jnp.max(x.reshape(N, Cin, D2, 2, H2, 2, W2, 2), axis=(3, 5, 7))

    def conv3(a, w_cm):
        cout = w_cm.shape[0]
        cin = a.shape[1]
        w = w_cm.reshape(cout, 3, 3, 3, cin).transpose(0, 4, 1, 2, 3)
        return jax.lax.conv_general_dilated(
            a, w, window_strides=(1, 1, 1),
            padding=((1, 1), (1, 1), (1, 1)),
            dimension_numbers=("NCDHW", "OIDHW", "NCDHW"))

    def gn(a, g, b):
        m = jnp.mean(a, axis=(2, 3, 4), keepdims=True)
        v = jnp.mean((a - m) ** 2, axis=(2, 3, 4), keepdims=True)
        return ((a - m) * jax.lax.rsqrt(v + _GN_EPS)
                * g.reshape(1, -1, 1, 1, 1) + b.reshape(1, -1, 1, 1, 1))

    gelu = lambda z: jax.nn.gelu(z, approximate=False)

    h = gelu(gn(conv3(pooled, params["w1a"]), params["g1a"], params["b1a"]))
    h = gelu(pooled + gn(conv3(h, params["w1b"]), params["g1b"], params["b1b"]))
    g2 = gelu(gn(conv3(h, params["w2a"]), params["g2a"], params["b2a"]))
    g2 = gn(conv3(g2, params["w2b"]), params["g2b"], params["b2b"])
    tv = t.astype(jnp.float32)
    emb = (tv * jax.nn.sigmoid(tv)) @ params["wl"].T + params["bl"]
    return g2 + emb[:, :, None, None, None]


if __name__ == "__main__":
    N, in_ch, out_ch, emb_dim = 2, 4, 8, 32
    D = H = W = 8

    key = jax.random.PRNGKey(0)
    kx, kt, kp = jax.random.split(key, 3)
    x = jax.random.normal(kx, (N, in_ch, D, H, W), jnp.float32)
    t = jax.random.normal(kt, (N, emb_dim), jnp.float32)
    params = make_params(kp, in_ch, out_ch, emb_dim)

    # Default (bf16 matmul-operand) path.
    fwd = jax.jit(lambda x_, t_: down_forward(x_, t_, params))
    y = fwd(x, t)
    jax.block_until_ready(y)
    assert y.shape == (N, out_ch, D // 2, H // 2, W // 2), y.shape
    assert bool(jnp.all(jnp.isfinite(y)))

    y_ref = _reference(x, t, params)

    # Exact-layout validation: f32 matmul-operand path must match the XLA reference
    # tightly (catches any tap/weight/padding indexing bug hidden by bf16 tolerance).
    fwd32 = jax.jit(lambda x_, t_: down_forward(x_, t_, params,
                                                matmul_dtype=jnp.float32))
    y32 = fwd32(x, t)
    jax.block_until_ready(y32)
    rel32 = float(jnp.max(jnp.abs(y32 - y_ref)) / (jnp.max(jnp.abs(y_ref)) + 1e-6))
    assert rel32 < 1e-3, f"f32-path mismatch vs reference: rel={rel32}"

    # bf16 matmul operands: looser tolerance sized for the intentional precision trade.
    rel = float(jnp.max(jnp.abs(y - y_ref)) / (jnp.max(jnp.abs(y_ref)) + 1e-6))
    assert rel < 8e-2, f"bf16-path mismatch vs reference: rel={rel}"

    print("KERNEL_OK")
</pallas_src>

<mosaic_0001>
module attributes {stable_mosaic.version = 11 : i64} {
  func.func @kernel(%arg0: i32, %arg1: memref<1x8x128xbf16, #tpu.memory_space<vmem>>, %arg2: memref<27x128xbf16, #tpu.memory_space<vmem>>, %arg3: memref<1x8x1xf32, #tpu.memory_space<vmem>>, %arg4: memref<8x216xbf16, #tpu.memory_space<vmem>>, %arg5: memref<8x1xf32, #tpu.memory_space<vmem>>, %arg6: memref<8x1xf32, #tpu.memory_space<vmem>>, %arg7: memref<8x216xbf16, #tpu.memory_space<vmem>>, %arg8: memref<8x1xf32, #tpu.memory_space<vmem>>, %arg9: memref<8x1xf32, #tpu.memory_space<vmem>>, %arg10: memref<8x216xbf16, #tpu.memory_space<vmem>>, %arg11: memref<8x1xf32, #tpu.memory_space<vmem>>, %arg12: memref<8x1xf32, #tpu.memory_space<vmem>>, %arg13: memref<8x216xbf16, #tpu.memory_space<vmem>>, %arg14: memref<8x1xf32, #tpu.memory_space<vmem>>, %arg15: memref<8x1xf32, #tpu.memory_space<vmem>>, %arg16: memref<1x8x128xf32, #tpu.memory_space<vmem>>, %arg17: memref<216x128xbf16, #tpu.memory_space<vmem>>) attributes {dimension_semantics = [#tpu.dimension_semantics<parallel>], iteration_bounds = array<i64: 2>, scalar_prefetch = 0 : i64, scratch_operands = 1 : i64, tpu.core_type = #tpu.core_type<tc>, window_params = [{transform_indices = @transform_0, window_bounds = array<i64: 1, 8, 128>}, {pipeline_mode = #tpu.pipeline_mode<synchronous>, transform_indices = @transform_1, window_bounds = array<i64: 27, 128>}, {transform_indices = @transform_2, window_bounds = array<i64: 1, 8, 1>}, {pipeline_mode = #tpu.pipeline_mode<synchronous>, transform_indices = @transform_3, window_bounds = array<i64: 8, 216>}, {pipeline_mode = #tpu.pipeline_mode<synchronous>, transform_indices = @transform_4, window_bounds = array<i64: 8, 1>}, {pipeline_mode = #tpu.pipeline_mode<synchronous>, transform_indices = @transform_5, window_bounds = array<i64: 8, 1>}, {pipeline_mode = #tpu.pipeline_mode<synchronous>, transform_indices = @transform_6, window_bounds = array<i64: 8, 216>}, {pipeline_mode = #tpu.pipeline_mode<synchronous>, transform_indices = @transform_7, window_bounds = array<i64: 8, 1>}, {pipeline_mode = #tpu.pipeline_mode<synchronous>, transform_indices = @transform_8, window_bounds = array<i64: 8, 1>}, {pipeline_mode = #tpu.pipeline_mode<synchronous>, transform_indices = @transform_9, window_bounds = array<i64: 8, 216>}, {pipeline_mode = #tpu.pipeline_mode<synchronous>, transform_indices = @transform_10, window_bounds = array<i64: 8, 1>}, {pipeline_mode = #tpu.pipeline_mode<synchronous>, transform_indices = @transform_11, window_bounds = array<i64: 8, 1>}, {pipeline_mode = #tpu.pipeline_mode<synchronous>, transform_indices = @transform_12, window_bounds = array<i64: 8, 216>}, {pipeline_mode = #tpu.pipeline_mode<synchronous>, transform_indices = @transform_13, window_bounds = array<i64: 8, 1>}, {pipeline_mode = #tpu.pipeline_mode<synchronous>, transform_indices = @transform_14, window_bounds = array<i64: 8, 1>}, {transform_indices = @transform_15, window_bounds = array<i64: 1, 8, 128>}]} {
    %c0 = arith.constant 0 : index
    %c0_0 = arith.constant 0 : index
    %c0_1 = arith.constant 0 : index
    %0 = vector.load %arg1[%c0, %c0_0, %c0_1] : memref<1x8x128xbf16, #tpu.memory_space<vmem>>, vector<1x8x128xbf16>
    %1 = vector.shape_cast %0 : vector<1x8x128xbf16> to vector<8x128xbf16>
    %2 = arith.extf %1 : vector<8x128xbf16> to vector<8x128xf32>
    %c21_i32 = arith.constant 21 : i32
    %3 = tpu.dynamic_rotate %2 by %c21_i32 dim 1 : vector<8x128xf32>, i32 -> vector<8x128xf32>
    %4 = arith.truncf %3 : vector<8x128xf32> to vector<8x128xbf16>
    %c0_2 = arith.constant 0 : index
    %c0_3 = arith.constant 0 : index
    %5 = vector.load %arg2[%c0_2, %c0_3] : memref<27x128xbf16, #tpu.memory_space<vmem>>, vector<1x128xbf16>
    %6 = vector.broadcast %5 : vector<1x128xbf16> to vector<8x128xbf16>
    %7 = arith.mulf %4, %6 : vector<8x128xbf16>
    %c0_4 = arith.constant 0 : index
    %c0_5 = arith.constant 0 : index
    %8 = vector.load %arg17[%c0_4, %c0_5] : memref<216x128xbf16, #tpu.memory_space<vmem>>, vector<8x128xbf16>
    tpu.vector_store %arg17[%c0_4, %c0_5], %7 {strides = array<i32>} : memref<216x128xbf16, #tpu.memory_space<vmem>>, vector<8x128xbf16>,
    %c20_i32 = arith.constant 20 : i32
    %9 = tpu.dynamic_rotate %2 by %c20_i32 dim 1 : vector<8x128xf32>, i32 -> vector<8x128xf32>
    %10 = arith.truncf %9 : vector<8x128xf32> to vector<8x128xbf16>
    %c1 = arith.constant 1 : index
    %c0_6 = arith.constant 0 : index
    %11 = vector.load %arg2[%c1, %c0_6] : memref<27x128xbf16, #tpu.memory_space<vmem>>, vector<1x128xbf16>
    %12 = vector.broadcast %11 : vector<1x128xbf16> to vector<8x128xbf16>
    %13 = arith.mulf %10, %12 : vector<8x128xbf16>
    %c8 = arith.constant 8 : index
    %c0_7 = arith.constant 0 : index
    %14 = vector.load %arg17[%c8, %c0_7] : memref<216x128xbf16, #tpu.memory_space<vmem>>, vector<8x128xbf16>
    tpu.vector_store %arg17[%c8, %c0_7], %13 {strides = array<i32>} : memref<216x128xbf16, #tpu.memory_space<vmem>>, vector<8x128xbf16>,
    %c19_i32 = arith.constant 19 : i32
    %15 = tpu.dynamic_rotate %2 by %c19_i32 dim 1 : vector<8x128xf32>, i32 -> vector<8x128xf32>
    %16 = arith.truncf %15 : vector<8x128xf32> to vector<8x128xbf16>
    %c2 = arith.constant 2 : index
    %c0_8 = arith.constant 0 : index
    %17 = vector.load %arg2[%c2, %c0_8] : memref<27x128xbf16, #tpu.memory_space<vmem>>, vector<1x128xbf16>
    %18 = vector.broadcast %17 : vector<1x128xbf16> to vector<8x128xbf16>
    %19 = arith.mulf %16, %18 : vector<8x128xbf16>
    %c16 = arith.constant 16 : index
    %c0_9 = arith.constant 0 : index
    %20 = vector.load %arg17[%c16, %c0_9] : memref<216x128xbf16, #tpu.memory_space<vmem>>, vector<8x128xbf16>
    tpu.vector_store %arg17[%c16, %c0_9], %19 {strides = array<i32>} : memref<216x128xbf16, #tpu.memory_space<vmem>>, vector<8x128xbf16>,
    %c17_i32 = arith.constant 17 : i32
    %21 = tpu.dynamic_rotate %2 by %c17_i32 dim 1 : vector<8x128xf32>, i32 -> vector<8x128xf32>
    %22 = arith.truncf %21 : vector<8x128xf32> to vector<8x128xbf16>
    %c3 = arith.constant 3 : index
    %c0_10 = arith.constant 0 : index
    %23 = vector.load %arg2[%c3, %c0_10] : memref<27x128xbf16, #tpu.memory_space<vmem>>, vector<1x128xbf16>
    %24 = vector.broadcast %23 : vector<1x128xbf16> to vector<8x128xbf16>
    %25 = arith.mulf %22, %24 : vector<8x128xbf16>
    %c24 = arith.constant 24 : index
    %c0_11 = arith.constant 0 : index
    %26 = vector.load %arg17[%c24, %c0_11] : memref<216x128xbf16, #tpu.memory_space<vmem>>, vector<8x128xbf16>
    tpu.vector_store %arg17[%c24, %c0_11], %25 {strides = array<i32>} : memref<216x128xbf16, #tpu.memory_space<vmem>>, vector<8x128xbf16>,
    %c16_i32 = arith.constant 16 : i32
    %27 = tpu.dynamic_rotate %2 by %c16_i32 dim 1 : vector<8x128xf32>, i32 -> vector<8x128xf32>
    %28 = arith.truncf %27 : vector<8x128xf32> to vector<8x128xbf16>
    %c4 = arith.constant 4 : index
    %c0_12 = arith.constant 0 : index
    %29 = vector.load %arg2[%c4, %c0_12] : memref<27x128xbf16, #tpu.memory_space<vmem>>, vector<1x128xbf16>
    %30 = vector.broadcast %29 : vector<1x128xbf16> to vector<8x128xbf16>
    %31 = arith.mulf %28, %30 : vector<8x128xbf16>
    %c32 = arith.constant 32 : index
    %c0_13 = arith.constant 0 : index
    %32 = vector.load %arg17[%c32, %c0_13] : memref<216x128xbf16, #tpu.memory_space<vmem>>, vector<8x128xbf16>
    tpu.vector_store %arg17[%c32, %c0_13], %31 {strides = array<i32>} : memref<216x128xbf16, #tpu.memory_space<vmem>>, vector<8x128xbf16>,
    %c15_i32 = arith.constant 15 : i32
    %33 = tpu.dynamic_rotate %2 by %c15_i32 dim 1 : vector<8x128xf32>, i32 -> vector<8x128xf32>
    %34 = arith.truncf %33 : vector<8x128xf32> to vector<8x128xbf16>
    %c5 = arith.constant 5 : index
    %c0_14 = arith.constant 0 : index
    %35 = vector.load %arg2[%c5, %c0_14] : memref<27x128xbf16, #tpu.memory_space<vmem>>, vector<1x128xbf16>
    %36 = vector.broadcast %35 : vector<1x128xbf16> to vector<8x128xbf16>
    %37 = arith.mulf %34, %36 : vector<8x128xbf16>
    %c40 = arith.constant 40 : index
    %c0_15 = arith.constant 0 : index
    %38 = vector.load %arg17[%c40, %c0_15] : memref<216x128xbf16, #tpu.memory_space<vmem>>, vector<8x128xbf16>
    tpu.vector_store %arg17[%c40, %c0_15], %37 {strides = array<i32>} : memref<216x128xbf16, #tpu.memory_space<vmem>>, vector<8x128xbf16>,
    %c13_i32 = arith.constant 13 : i32
    %39 = tpu.dynamic_rotate %2 by %c13_i32 dim 1 : vector<8x128xf32>, i32 -> vector<8x128xf32>
    %40 = arith.truncf %39 : vector<8x128xf32> to vector<8x128xbf16>
    %c6 = arith.constant 6 : index
    %c0_16 = arith.constant 0 : index
    %41 = vector.load %arg2[%c6, %c0_16] : memref<27x128xbf16, #tpu.memory_space<vmem>>, vector<1x128xbf16>
    %42 = vector.broadcast %41 : vector<1x128xbf16> to vector<8x128xbf16>
    %43 = arith.mulf %40, %42 : vector<8x128xbf16>
    %c48 = arith.constant 48 : index
    %c0_17 = arith.constant 0 : index
    %44 = vector.load %arg17[%c48, %c0_17] : memref<216x128xbf16, #tpu.memory_space<vmem>>, vector<8x128xbf16>
    tpu.vector_store %arg17[%c48, %c0_17], %43 {strides = array<i32>} : memref<216x128xbf16, #tpu.memory_space<vmem>>, vector<8x128xbf16>,
    %c12_i32 = arith.constant 12 : i32
    %45 = tpu.dynamic_rotate %2 by %c12_i32 dim 1 : vector<8x128xf32>, i32 -> vector<8x128xf32>
    %46 = arith.truncf %45 : vector<8x128xf32> to vector<8x128xbf16>
    %c7 = arith.constant 7 : index
    %c0_18 = arith.constant 0 : index
    %47 = vector.load %arg2[%c7, %c0_18] : memref<27x128xbf16, #tpu.memory_space<vmem>>, vector<1x128xbf16>
    %48 = vector.broadcast %47 : vector<1x128xbf16> to vector<8x128xbf16>
    %49 = arith.mulf %46, %48 : vector<8x128xbf16>
    %c56 = arith.constant 56 : index
    %c0_19 = arith.constant 0 : index
    %50 = vector.load %arg17[%c56, %c0_19] : memref<216x128xbf16, #tpu.memory_space<vmem>>, vector<8x128xbf16>
    tpu.vector_store %arg17[%c56, %c0_19], %49 {strides = array<i32>} : memref<216x128xbf16, #tpu.memory_space<vmem>>, vector<8x128xbf16>,
    %c11_i32 = arith.constant 11 : i32
    %51 = tpu.dynamic_rotate %2 by %c11_i32 dim 1 : vector<8x128xf32>, i32 -> vector<8x128xf32>
    %52 = arith.truncf %51 : vector<8x128xf32> to vector<8x128xbf16>
    %c8_20 = arith.constant 8 : index
    %c0_21 = arith.constant 0 : index
    %53 = vector.load %arg2[%c8_20, %c0_21] : memref<27x128xbf16, #tpu.memory_space<vmem>>, vector<1x128xbf16>
    %54 = vector.broadcast %53 : vector<1x128xbf16> to vector<8x128xbf16>
    %55 = arith.mulf %52, %54 : vector<8x128xbf16>
    %c64 = arith.constant 64 : index
    %c0_22 = arith.constant 0 : index
    %56 = vector.load %arg17[%c64, %c0_22] : memref<216x128xbf16, #tpu.memory_space<vmem>>, vector<8x128xbf16>
    tpu.vector_store %arg17[%c64, %c0_22], %55 {strides = array<i32>} : memref<216x128xbf16, #tpu.memory_space<vmem>>, vector<8x128xbf16>,
    %c5_i32 = arith.constant 5 : i32
    %57 = tpu.dynamic_rotate %2 by %c5_i32 dim 1 : vector<8x128xf32>, i32 -> vector<8x128xf32>
    %58 = arith.truncf %57 : vector<8x128xf32> to vector<8x128xbf16>
    %c9 = arith.constant 9 : index
    %c0_23 = arith.constant 0 : index
    %59 = vector.load %arg2[%c9, %c0_23] : memref<27x128xbf16, #tpu.memory_space<vmem>>, vector<1x128xbf16>
    %60 = vector.broadcast %59 : vector<1x128xbf16> to vector<8x128xbf16>
    %61 = arith.mulf %58, %60 : vector<8x128xbf16>
    %c72 = arith.constant 72 : index
    %c0_24 = arith.constant 0 : index
    %62 = vector.load %arg17[%c72, %c0_24] : memref<216x128xbf16, #tpu.memory_space<vmem>>, vector<8x128xbf16>
    tpu.vector_store %arg17[%c72, %c0_24], %61 {strides = array<i32>} : memref<216x128xbf16, #tpu.memory_space<vmem>>, vector<8x128xbf16>,
    %c4_i32 = arith.constant 4 : i32
    %63 = tpu.dynamic_rotate %2 by %c4_i32 dim 1 : vector<8x128xf32>, i32 -> vector<8x128xf32>
    %64 = arith.truncf %63 : vector<8x128xf32> to vector<8x128xbf16>
    %c10 = arith.constant 10 : index
    %c0_25 = arith.constant 0 : index
    %65 = vector.load %arg2[%c10, %c0_25] : memref<27x128xbf16, #tpu.memory_space<vmem>>, vector<1x128xbf16>
    %66 = vector.broadcast %65 : vector<1x128xbf16> to vector<8x128xbf16>
    %67 = arith.mulf %64, %66 : vector<8x128xbf16>
    %c80 = arith.constant 80 : index
    %c0_26 = arith.constant 0 : index
    %68 = vector.load %arg17[%c80, %c0_26] : memref<216x128xbf16, #tpu.memory_space<vmem>>, vector<8x128xbf16>
    tpu.vector_store %arg17[%c80, %c0_26], %67 {strides = array<i32>} : memref<216x128xbf16, #tpu.memory_space<vmem>>, vector<8x128xbf16>,
    %c3_i32 = arith.constant 3 : i32
    %69 = tpu.dynamic_rotate %2 by %c3_i32 dim 1 : vector<8x128xf32>, i32 -> vector<8x128xf32>
    %70 = arith.truncf %69 : vector<8x128xf32> to vector<8x128xbf16>
    %c11 = arith.constant 11 : index
    %c0_27 = arith.constant 0 : index
    %71 = vector.load %arg2[%c11, %c0_27] : memref<27x128xbf16, #tpu.memory_space<vmem>>, vector<1x128xbf16>
    %72 = vector.broadcast %71 : vector<1x128xbf16> to vector<8x128xbf16>
    %73 = arith.mulf %70, %72 : vector<8x128xbf16>
    %c88 = arith.constant 88 : index
    %c0_28 = arith.constant 0 : index
    %74 = vector.load %arg17[%c88, %c0_28] : memref<216x128xbf16, #tpu.memory_space<vmem>>, vector<8x128xbf16>
    tpu.vector_store %arg17[%c88, %c0_28], %73 {strides = array<i32>} : memref<216x128xbf16, #tpu.memory_space<vmem>>, vector<8x128xbf16>,
    %c1_i32 = arith.constant 1 : i32
    %75 = tpu.dynamic_rotate %2 by %c1_i32 dim 1 : vector<8x128xf32>, i32 -> vector<8x128xf32>
    %76 = arith.truncf %75 : vector<8x128xf32> to vector<8x128xbf16>
    %c12 = arith.constant 12 : index
    %c0_29 = arith.constant 0 : index
    %77 = vector.load %arg2[%c12, %c0_29] : memref<27x128xbf16, #tpu.memory_space<vmem>>, vector<1x128xbf16>
    %78 = vector.broadcast %77 : vector<1x128xbf16> to vector<8x128xbf16>
    %79 = arith.mulf %76, %78 : vector<8x128xbf16>
    %c96 = arith.constant 96 : index
    %c0_30 = arith.constant 0 : index
    %80 = vector.load %arg17[%c96, %c0_30] : memref<216x128xbf16, #tpu.memory_space<vmem>>, vector<8x128xbf16>
    tpu.vector_store %arg17[%c96, %c0_30], %79 {strides = array<i32>} : memref<216x128xbf16, #tpu.memory_space<vmem>>, vector<8x128xbf16>,
    %81 = arith.truncf %2 : vector<8x128xf32> to vector<8x128xbf16>
    %c13 = arith.constant 13 : index
    %c0_31 = arith.constant 0 : index
    %82 = vector.load %arg2[%c13, %c0_31] : memref<27x128xbf16, #tpu.memory_space<vmem>>, vector<1x128xbf16>
    %83 = vector.broadcast %82 : vector<1x128xbf16> to vector<8x128xbf16>
    %84 = arith.mulf %81, %83 : vector<8x128xbf16>
    %c104 = arith.constant 104 : index
    %c0_32 = arith.constant 0 : index
    %85 = vector.load %arg17[%c104, %c0_32] : memref<216x128xbf16, #tpu.memory_space<vmem>>, vector<8x128xbf16>
    tpu.vector_store %arg17[%c104, %c0_32], %84 {strides = array<i32>} : memref<216x128xbf16, #tpu.memory_space<vmem>>, vector<8x128xbf16>,
    %c127_i32 = arith.constant 127 : i32
    %86 = tpu.dynamic_rotate %2 by %c127_i32 dim 1 : vector<8x128xf32>, i32 -> vector<8x128xf32>
    %87 = arith.truncf %86 : vector<8x128xf32> to vector<8x128xbf16>
    %c14 = arith.constant 14 : index
    %c0_33 = arith.constant 0 : index
    %88 = vector.load %arg2[%c14, %c0_33] : memref<27x128xbf16, #tpu.memory_space<vmem>>, vector<1x128xbf16>
    %89 = vector.broadcast %88 : vector<1x128xbf16> to vector<8x128xbf16>
    %90 = arith.mulf %87, %89 : vector<8x128xbf16>
    %c112 = arith.constant 112 : index
    %c0_34 = arith.constant 0 : index
    %91 = vector.load %arg17[%c112, %c0_34] : memref<216x128xbf16, #tpu.memory_space<vmem>>, vector<8x128xbf16>
    tpu.vector_store %arg17[%c112, %c0_34], %90 {strides = array<i32>} : memref<216x128xbf16, #tpu.memory_space<vmem>>, vector<8x128xbf16>,
    %c125_i32 = arith.constant 125 : i32
    %92 = tpu.dynamic_rotate %2 by %c125_i32 dim 1 : vector<8x128xf32>, i32 -> vector<8x128xf32>
    %93 = arith.truncf %92 : vector<8x128xf32> to vector<8x128xbf16>
    %c15 = arith.constant 15 : index
    %c0_35 = arith.constant 0 : index
    %94 = vector.load %arg2[%c15, %c0_35] : memref<27x128xbf16, #tpu.memory_space<vmem>>, vector<1x128xbf16>
    %95 = vector.broadcast %94 : vector<1x128xbf16> to vector<8x128xbf16>
    %96 = arith.mulf %93, %95 : vector<8x128xbf16>
    %c120 = arith.constant 120 : index
    %c0_36 = arith.constant 0 : index
    %97 = vector.load %arg17[%c120, %c0_36] : memref<216x128xbf16, #tpu.memory_space<vmem>>, vector<8x128xbf16>
    tpu.vector_store %arg17[%c120, %c0_36], %96 {strides = array<i32>} : memref<216x128xbf16, #tpu.memory_space<vmem>>, vector<8x128xbf16>,
    %c124_i32 = arith.constant 124 : i32
    %98 = tpu.dynamic_rotate %2 by %c124_i32 dim 1 : vector<8x128xf32>, i32 -> vector<8x128xf32>
    %99 = arith.truncf %98 : vector<8x128xf32> to vector<8x128xbf16>
    %c16_37 = arith.constant 16 : index
    %c0_38 = arith.constant 0 : index
    %100 = vector.load %arg2[%c16_37, %c0_38] : memref<27x128xbf16, #tpu.memory_space<vmem>>, vector<1x128xbf16>
    %101 = vector.broadcast %100 : vector<1x128xbf16> to vector<8x128xbf16>
    %102 = arith.mulf %99, %101 : vector<8x128xbf16>
    %c128 = arith.constant 128 : index
    %c0_39 = arith.constant 0 : index
    %103 = vector.load %arg17[%c128, %c0_39] : memref<216x128xbf16, #tpu.memory_space<vmem>>, vector<8x128xbf16>
    tpu.vector_store %arg17[%c128, %c0_39], %102 {strides = array<i32>} : memref<216x128xbf16, #tpu.memory_space<vmem>>, vector<8x128xbf16>,
    %c123_i32 = arith.constant 123 : i32
    %104 = tpu.dynamic_rotate %2 by %c123_i32 dim 1 : vector<8x128xf32>, i32 -> vector<8x128xf32>
    %105 = arith.truncf %104 : vector<8x128xf32> to vector<8x128xbf16>
    %c17 = arith.constant 17 : index
    %c0_40 = arith.constant 0 : index
    %106 = vector.load %arg2[%c17, %c0_40] : memref<27x128xbf16, #tpu.memory_space<vmem>>, vector<1x128xbf16>
    %107 = vector.broadcast %106 : vector<1x128xbf16> to vector<8x128xbf16>
    %108 = arith.mulf %105, %107 : vector<8x128xbf16>
    %c136 = arith.constant 136 : index
    %c0_41 = arith.constant 0 : index
    %109 = vector.load %arg17[%c136, %c0_41] : memref<216x128xbf16, #tpu.memory_space<vmem>>, vector<8x128xbf16>
    tpu.vector_store %arg17[%c136, %c0_41], %108 {strides = array<i32>} : memref<216x128xbf16, #tpu.memory_space<vmem>>, vector<8x128xbf16>,
    %c117_i32 = arith.constant 117 : i32
    %110 = tpu.dynamic_rotate %2 by %c117_i32 dim 1 : vector<8x128xf32>, i32 -> vector<8x128xf32>
    %111 = arith.truncf %110 : vector<8x128xf32> to vector<8x128xbf16>
    %c18 = arith.constant 18 : index
    %c0_42 = arith.constant 0 : index
    %112 = vector.load %arg2[%c18, %c0_42] : memref<27x128xbf16, #tpu.memory_space<vmem>>, vector<1x128xbf16>
    %113 = vector.broadcast %112 : vector<1x128xbf16> to vector<8x128xbf16>
    %114 = arith.mulf %111, %113 : vector<8x128xbf16>
    %c144 = arith.constant 144 : index
    %c0_43 = arith.constant 0 : index
    %115 = vector.load %arg17[%c144, %c0_43] : memref<216x128xbf16, #tpu.memory_space<vmem>>, vector<8x128xbf16>
    tpu.vector_store %arg17[%c144, %c0_43], %114 {strides = array<i32>} : memref<216x128xbf16, #tpu.memory_space<vmem>>, vector<8x128xbf16>,
    %c116_i32 = arith.constant 116 : i32
    %116 = tpu.dynamic_rotate %2 by %c116_i32 dim 1 : vector<8x128xf32>, i32 -> vector<8x128xf32>
    %117 = arith.truncf %116 : vector<8x128xf32> to vector<8x128xbf16>
    %c19 = arith.constant 19 : index
    %c0_44 = arith.constant 0 : index
    %118 = vector.load %arg2[%c19, %c0_44] : memref<27x128xbf16, #tpu.memory_space<vmem>>, vector<1x128xbf16>
    %119 = vector.broadcast %118 : vector<1x128xbf16> to vector<8x128xbf16>
    %120 = arith.mulf %117, %119 : vector<8x128xbf16>
    %c152 = arith.constant 152 : index
    %c0_45 = arith.constant 0 : index
    %121 = vector.load %arg17[%c152, %c0_45] : memref<216x128xbf16, #tpu.memory_space<vmem>>, vector<8x128xbf16>
    tpu.vector_store %arg17[%c152, %c0_45], %120 {strides = array<i32>} : memref<216x128xbf16, #tpu.memory_space<vmem>>, vector<8x128xbf16>,
    %c115_i32 = arith.constant 115 : i32
    %122 = tpu.dynamic_rotate %2 by %c115_i32 dim 1 : vector<8x128xf32>, i32 -> vector<8x128xf32>
    %123 = arith.truncf %122 : vector<8x128xf32> to vector<8x128xbf16>
    %c20 = arith.constant 20 : index
    %c0_46 = arith.constant 0 : index
    %124 = vector.load %arg2[%c20, %c0_46] : memref<27x128xbf16, #tpu.memory_space<vmem>>, vector<1x128xbf16>
    %125 = vector.broadcast %124 : vector<1x128xbf16> to vector<8x128xbf16>
    %126 = arith.mulf %123, %125 : vector<8x128xbf16>
    %c160 = arith.constant 160 : index
    %c0_47 = arith.constant 0 : index
    %127 = vector.load %arg17[%c160, %c0_47] : memref<216x128xbf16, #tpu.memory_space<vmem>>, vector<8x128xbf16>
    tpu.vector_store %arg17[%c160, %c0_47], %126 {strides = array<i32>} : memref<216x128xbf16, #tpu.memory_space<vmem>>, vector<8x128xbf16>,
    %c113_i32 = arith.constant 113 : i32
    %128 = tpu.dynamic_rotate %2 by %c113_i32 dim 1 : vector<8x128xf32>, i32 -> vector<8x128xf32>
    %129 = arith.truncf %128 : vector<8x128xf32> to vector<8x128xbf16>
    %c21 = arith.constant 21 : index
    %c0_48 = arith.constant 0 : index
    %130 = vector.load %arg2[%c21, %c0_48] : memref<27x128xbf16, #tpu.memory_space<vmem>>, vector<1x128xbf16>
    %131 = vector.broadcast %130 : vector<1x128xbf16> to vector<8x128xbf16>
    %132 = arith.mulf %129, %131 : vector<8x128xbf16>
    %c168 = arith.constant 168 : index
    %c0_49 = arith.constant 0 : index
    %133 = vector.load %arg17[%c168, %c0_49] : memref<216x128xbf16, #tpu.memory_space<vmem>>, vector<8x128xbf16>
    tpu.vector_store %arg17[%c168, %c0_49], %132 {strides = array<i32>} : memref<216x128xbf16, #tpu.memory_space<vmem>>, vector<8x128xbf16>,
    %c112_i32 = arith.constant 112 : i32
    %134 = tpu.dynamic_rotate %2 by %c112_i32 dim 1 : vector<8x128xf32>, i32 -> vector<8x128xf32>
    %135 = arith.truncf %134 : vector<8x128xf32> to vector<8x128xbf16>
    %c22 = arith.constant 22 : index
    %c0_50 = arith.constant 0 : index
    %136 = vector.load %arg2[%c22, %c0_50] : memref<27x128xbf16, #tpu.memory_space<vmem>>, vector<1x128xbf16>
    %137 = vector.broadcast %136 : vector<1x128xbf16> to vector<8x128xbf16>
    %138 = arith.mulf %135, %137 : vector<8x128xbf16>
    %c176 = arith.constant 176 : index
    %c0_51 = arith.constant 0 : index
    %139 = vector.load %arg17[%c176, %c0_51] : memref<216x128xbf16, #tpu.memory_space<vmem>>, vector<8x128xbf16>
    tpu.vector_store %arg17[%c176, %c0_51], %138 {strides = array<i32>} : memref<216x128xbf16, #tpu.memory_space<vmem>>, vector<8x128xbf16>,
    %c111_i32 = arith.constant 111 : i32
    %140 = tpu.dynamic_rotate %2 by %c111_i32 dim 1 : vector<8x128xf32>, i32 -> vector<8x128xf32>
    %141 = arith.truncf %140 : vector<8x128xf32> to vector<8x128xbf16>
    %c23 = arith.constant 23 : index
    %c0_52 = arith.constant 0 : index
    %142 = vector.load %arg2[%c23, %c0_52] : memref<27x128xbf16, #tpu.memory_space<vmem>>, vector<1x128xbf16>
    %143 = vector.broadcast %142 : vector<1x128xbf16> to vector<8x128xbf16>
    %144 = arith.mulf %141, %143 : vector<8x128xbf16>
    %c184 = arith.constant 184 : index
    %c0_53 = arith.constant 0 : index
    %145 = vector.load %arg17[%c184, %c0_53] : memref<216x128xbf16, #tpu.memory_space<vmem>>, vector<8x128xbf16>
    tpu.vector_store %arg17[%c184, %c0_53], %144 {strides = array<i32>} : memref<216x128xbf16, #tpu.memory_space<vmem>>, vector<8x128xbf16>,
    %c109_i32 = arith.constant 109 : i32
    %146 = tpu.dynamic_rotate %2 by %c109_i32 dim 1 : vector<8x128xf32>, i32 -> vector<8x128xf32>
    %147 = arith.truncf %146 : vector<8x128xf32> to vector<8x128xbf16>
    %c24_54 = arith.constant 24 : index
    %c0_55 = arith.constant 0 : index
    %148 = vector.load %arg2[%c24_54, %c0_55] : memref<27x128xbf16, #tpu.memory_space<vmem>>, vector<1x128xbf16>
    %149 = vector.broadcast %148 : vector<1x128xbf16> to vector<8x128xbf16>
    %150 = arith.mulf %147, %149 : vector<8x128xbf16>
    %c192 = arith.constant 192 : index
    %c0_56 = arith.constant 0 : index
    %151 = vector.load %arg17[%c192, %c0_56] : memref<216x128xbf16, #tpu.memory_space<vmem>>, vector<8x128xbf16>
    tpu.vector_store %arg17[%c192, %c0_56], %150 {strides = array<i32>} : memref<216x128xbf16, #tpu.memory_space<vmem>>, vector<8x128xbf16>,
    %c108_i32 = arith.constant 108 : i32
    %152 = tpu.dynamic_rotate %2 by %c108_i32 dim 1 : vector<8x128xf32>, i32 -> vector<8x128xf32>
    %153 = arith.truncf %152 : vector<8x128xf32> to vector<8x128xbf16>
    %c25 = arith.constant 25 : index
    %c0_57 = arith.constant 0 : index
    %154 = vector.load %arg2[%c25, %c0_57] : memref<27x128xbf16, #tpu.memory_space<vmem>>, vector<1x128xbf16>
    %155 = vector.broadcast %154 : vector<1x128xbf16> to vector<8x128xbf16>
    %156 = arith.mulf %153, %155 : vector<8x128xbf16>
    %c200 = arith.constant 200 : index
    %c0_58 = arith.constant 0 : index
    %157 = vector.load %arg17[%c200, %c0_58] : memref<216x128xbf16, #tpu.memory_space<vmem>>, vector<8x128xbf16>
    tpu.vector_store %arg17[%c200, %c0_58], %156 {strides = array<i32>} : memref<216x128xbf16, #tpu.memory_space<vmem>>, vector<8x128xbf16>,
    %c107_i32 = arith.constant 107 : i32
    %158 = tpu.dynamic_rotate %2 by %c107_i32 dim 1 : vector<8x128xf32>, i32 -> vector<8x128xf32>
    %159 = arith.truncf %158 : vector<8x128xf32> to vector<8x128xbf16>
    %c26 = arith.constant 26 : index
    %c0_59 = arith.constant 0 : index
    %160 = vector.load %arg2[%c26, %c0_59] : memref<27x128xbf16, #tpu.memory_space<vmem>>, vector<1x128xbf16>
    %161 = vector.broadcast %160 : vector<1x128xbf16> to vector<8x128xbf16>
    %162 = arith.mulf %159, %161 : vector<8x128xbf16>
    %c208 = arith.constant 208 : index
    %c0_60 = arith.constant 0 : index
    %163 = vector.load %arg17[%c208, %c0_60] : memref<216x128xbf16, #tpu.memory_space<vmem>>, vector<8x128xbf16>
    tpu.vector_store %arg17[%c208, %c0_60], %162 {strides = array<i32>} : memref<216x128xbf16, #tpu.memory_space<vmem>>, vector<8x128xbf16>,
    %c0_61 = arith.constant 0 : index
    %c0_62 = arith.constant 0 : index
    %164 = vector.load %arg4[%c0_61, %c0_62] : memref<8x216xbf16, #tpu.memory_space<vmem>>, vector<8x216xbf16>
    %c0_63 = arith.constant 0 : index
    %c0_64 = arith.constant 0 : index
    %165 = vector.load %arg17[%c0_63, %c0_64] : memref<216x128xbf16, #tpu.memory_space<vmem>>, vector<216x128xbf16>
    %cst = arith.constant dense<0.000000e+00> : vector<8x128xf32>
    %166 = tpu.matmul %164, %165, %cst {dimension_numbers = #tpu.dot_dimension_numbers<[1], [0], [0], [1], [0, 0, 1, 1], [], []>} : vector<8x216xbf16>, vector<216x128xbf16>, vector<8x128xf32> -> vector<8x128xf32>
    %cst_65 = arith.constant dense<0.000000e+00> : vector<8xf32>
    %167 = vector.multi_reduction <add>, %166, %cst_65 [1] : vector<8x128xf32> to vector<8xf32>
    %168 = vector.shape_cast %167 : vector<8xf32> to vector<8x1xf32>
    %169 = arith.mulf %166, %166 : vector<8x128xf32>
    %cst_66 = arith.constant dense<0.000000e+00> : vector<8xf32>
    %170 = vector.multi_reduction <add>, %169, %cst_66 [1] : vector<8x128xf32> to vector<8xf32>
    %171 = vector.shape_cast %170 : vector<8xf32> to vector<8x1xf32>
    %cst_67 = arith.constant 1.562500e-02 : f32
    %172 = vector.broadcast %cst_67 : f32 to vector<8x1xf32>
    %173 = arith.mulf %168, %172 : vector<8x1xf32>
    %cst_68 = arith.constant 1.562500e-02 : f32
    %174 = vector.broadcast %cst_68 : f32 to vector<8x1xf32>
    %175 = arith.mulf %171, %174 : vector<8x1xf32>
    %176 = arith.mulf %173, %173 : vector<8x1xf32>
    %177 = arith.subf %175, %176 : vector<8x1xf32>
    %cst_69 = arith.constant 0.000000e+00 : f32
    %178 = vector.broadcast %cst_69 : f32 to vector<8x1xf32>
    %179 = arith.maximumf %177, %178 : vector<8x1xf32>
    %180 = vector.broadcast %173 : vector<8x1xf32> to vector<8x128xf32>
    %181 = arith.subf %166, %180 : vector<8x128xf32>
    %cst_70 = arith.constant 9.99999974E-6 : f32
    %182 = vector.broadcast %cst_70 : f32 to vector<8x1xf32>
    %183 = arith.addf %179, %182 : vector<8x1xf32>
    %184 = math.rsqrt %183 : vector<8x1xf32>
    %185 = vector.broadcast %184 : vector<8x1xf32> to vector<8x128xf32>
    %186 = arith.mulf %181, %185 : vector<8x128xf32>
    %c0_71 = arith.constant 0 : index
    %c0_72 = arith.constant 0 : index
    %187 = vector.load %arg5[%c0_71, %c0_72] : memref<8x1xf32, #tpu.memory_space<vmem>>, vector<8x1xf32>
    %188 = vector.broadcast %187 : vector<8x1xf32> to vector<8x128xf32>
    %189 = arith.mulf %186, %188 : vector<8x128xf32>
    %c0_73 = arith.constant 0 : index
    %c0_74 = arith.constant 0 : index
    %190 = vector.load %arg6[%c0_73, %c0_74] : memref<8x1xf32, #tpu.memory_space<vmem>>, vector<8x1xf32>
    %191 = vector.broadcast %190 : vector<8x1xf32> to vector<8x128xf32>
    %192 = arith.addf %189, %191 : vector<8x128xf32>
    %cst_75 = arith.constant 5.000000e-01 : f32
    %193 = vector.broadcast %cst_75 : f32 to vector<8x128xf32>
    %194 = arith.mulf %193, %192 : vector<8x128xf32>
    %cst_76 = arith.constant 0.707106769 : f32
    %195 = vector.broadcast %cst_76 : f32 to vector<8x128xf32>
    %196 = arith.mulf %192, %195 : vector<8x128xf32>
    %cst_77 = arith.constant 0.000000e+00 : f32
    %197 = vector.broadcast %cst_77 : f32 to vector<8x128xf32>
    %198 = arith.cmpf olt, %196, %197 : vector<8x128xf32>
    %cst_78 = arith.constant -1.000000e+00 : f32
    %cst_79 = arith.constant 1.000000e+00 : f32
    %199 = vector.broadcast %cst_78 : f32 to vector<8x128xf32>
    %200 = vector.broadcast %cst_79 : f32 to vector<8x128xf32>
    %201 = arith.select %198, %199, %200 : vector<8x128xi1>, vector<8x128xf32>
    %202 = math.absf %196 : vector<8x128xf32>
    %cst_80 = arith.constant 0.327591091 : f32
    %203 = vector.broadcast %cst_80 : f32 to vector<8x128xf32>
    %204 = arith.mulf %203, %202 : vector<8x128xf32>
    %cst_81 = arith.constant 1.000000e+00 : f32
    %205 = vector.broadcast %cst_81 : f32 to vector<8x128xf32>
    %206 = arith.addf %205, %204 : vector<8x128xf32>
    %cst_82 = arith.constant 1.000000e+00 : f32
    %207 = vector.broadcast %cst_82 : f32 to vector<8x128xf32>
    %208 = arith.divf %207, %206 : vector<8x128xf32>
    %cst_83 = arith.constant 1.06140542 : f32
    %209 = vector.broadcast %cst_83 : f32 to vector<8x128xf32>
    %210 = arith.mulf %208, %209 : vector<8x128xf32>
    %cst_84 = arith.constant -1.45315206 : f32
    %211 = vector.broadcast %cst_84 : f32 to vector<8x128xf32>
    %212 = arith.addf %211, %210 : vector<8x128xf32>
    %213 = arith.mulf %208, %212 : vector<8x128xf32>
    %cst_85 = arith.constant 1.42141378 : f32
    %214 = vector.broadcast %cst_85 : f32 to vector<8x128xf32>
    %215 = arith.addf %214, %213 : vector<8x128xf32>
    %216 = arith.mulf %208, %215 : vector<8x128xf32>
    %cst_86 = arith.constant -0.284496725 : f32
    %217 = vector.broadcast %cst_86 : f32 to vector<8x128xf32>
    %218 = arith.addf %217, %216 : vector<8x128xf32>
    %219 = arith.mulf %208, %218 : vector<8x128xf32>
    %cst_87 = arith.constant 0.254829586 : f32
    %220 = vector.broadcast %cst_87 : f32 to vector<8x128xf32>
    %221 = arith.addf %220, %219 : vector<8x128xf32>
    %222 = arith.mulf %208, %221 : vector<8x128xf32>
    %cst_88 = arith.constant 0.000000e+00 : f32
    %223 = vector.broadcast %cst_88 : f32 to vector<8x128xf32>
    %224 = arith.subf %223, %202 : vector<8x128xf32>
    %225 = arith.mulf %224, %202 : vector<8x128xf32>
    %226 = math.exp %225 : vector<8x128xf32>
    %227 = arith.mulf %222, %226 : vector<8x128xf32>
    %cst_89 = arith.constant 1.000000e+00 : f32
    %228 = vector.broadcast %cst_89 : f32 to vector<8x128xf32>
    %229 = arith.subf %228, %227 : vector<8x128xf32>
    %230 = arith.mulf %201, %229 : vector<8x128xf32>
    %cst_90 = arith.constant 1.000000e+00 : f32
    %231 = vector.broadcast %cst_90 : f32 to vector<8x128xf32>
    %232 = arith.addf %231, %230 : vector<8x128xf32>
    %233 = arith.mulf %194, %232 : vector<8x128xf32>
    %c21_i32_91 = arith.constant 21 : i32
    %234 = tpu.dynamic_rotate %233 by %c21_i32_91 dim 1 : vector<8x128xf32>, i32 -> vector<8x128xf32>
    %235 = arith.truncf %234 : vector<8x128xf32> to vector<8x128xbf16>
    %c0_92 = arith.constant 0 : index
    %c0_93 = arith.constant 0 : index
    %236 = vector.load %arg2[%c0_92, %c0_93] : memref<27x128xbf16, #tpu.memory_space<vmem>>, vector<1x128xbf16>
    %237 = vector.broadcast %236 : vector<1x128xbf16> to vector<8x128xbf16>
    %238 = arith.mulf %235, %237 : vector<8x128xbf16>
    %c0_94 = arith.constant 0 : index
    %c0_95 = arith.constant 0 : index
    %239 = vector.load %arg17[%c0_94, %c0_95] : memref<216x128xbf16, #tpu.memory_space<vmem>>, vector<8x128xbf16>
    tpu.vector_store %arg17[%c0_94, %c0_95], %238 {strides = array<i32>} : memref<216x128xbf16, #tpu.memory_space<vmem>>, vector<8x128xbf16>,
    %c20_i32_96 = arith.constant 20 : i32
    %240 = tpu.dynamic_rotate %233 by %c20_i32_96 dim 1 : vector<8x128xf32>, i32 -> vector<8x128xf32>
    %241 = arith.truncf %240 : vector<8x128xf32> to vector<8x128xbf16>
    %c1_97 = arith.constant 1 : index
    %c0_98 = arith.constant 0 : index
    %242 = vector.load %arg2[%c1_97, %c0_98] : memref<27x128xbf16, #tpu.memory_space<vmem>>, vector<1x128xbf16>
    %243 = vector.broadcast %242 : vector<1x128xbf16> to vector<8x128xbf16>
    %244 = arith.mulf %241, %243 : vector<8x128xbf16>
    %c8_99 = arith.constant 8 : index
    %c0_100 = arith.constant 0 : index
    %245 = vector.load %arg17[%c8_99, %c0_100] : memref<216x128xbf16, #tpu.memory_space<vmem>>, vector<8x128xbf16>
    tpu.vector_store %arg17[%c8_99, %c0_100], %244 {strides = array<i32>} : memref<216x128xbf16, #tpu.memory_space<vmem>>, vector<8x128xbf16>,
    %c19_i32_101 = arith.constant 19 : i32
    %246 = tpu.dynamic_rotate %233 by %c19_i32_101 dim 1 : vector<8x128xf32>, i32 -> vector<8x128xf32>
    %247 = arith.truncf %246 : vector<8x128xf32> to vector<8x128xbf16>
    %c2_102 = arith.constant 2 : index
    %c0_103 = arith.constant 0 : index
    %248 = vector.load %arg2[%c2_102, %c0_103] : memref<27x128xbf16, #tpu.memory_space<vmem>>, vector<1x128xbf16>
    %249 = vector.broadcast %248 : vector<1x128xbf16> to vector<8x128xbf16>
    %250 = arith.mulf %247, %249 : vector<8x128xbf16>
    %c16_104 = arith.constant 16 : index
    %c0_105 = arith.constant 0 : index
    %251 = vector.load %arg17[%c16_104, %c0_105] : memref<216x128xbf16, #tpu.memory_space<vmem>>, vector<8x128xbf16>
    tpu.vector_store %arg17[%c16_104, %c0_105], %250 {strides = array<i32>} : memref<216x128xbf16, #tpu.memory_space<vmem>>, vector<8x128xbf16>,
    %c17_i32_106 = arith.constant 17 : i32
    %252 = tpu.dynamic_rotate %233 by %c17_i32_106 dim 1 : vector<8x128xf32>, i32 -> vector<8x128xf32>
    %253 = arith.truncf %252 : vector<8x128xf32> to vector<8x128xbf16>
    %c3_107 = arith.constant 3 : index
    %c0_108 = arith.constant 0 : index
    %254 = vector.load %arg2[%c3_107, %c0_108] : memref<27x128xbf16, #tpu.memory_space<vmem>>, vector<1x128xbf16>
    %255 = vector.broadcast %254 : vector<1x128xbf16> to vector<8x128xbf16>
    %256 = arith.mulf %253, %255 : vector<8x128xbf16>
    %c24_109 = arith.constant 24 : index
    %c0_110 = arith.constant 0 : index
    %257 = vector.load %arg17[%c24_109, %c0_110] : memref<216x128xbf16, #tpu.memory_space<vmem>>, vector<8x128xbf16>
    tpu.vector_store %arg17[%c24_109, %c0_110], %256 {strides = array<i32>} : memref<216x128xbf16, #tpu.memory_space<vmem>>, vector<8x128xbf16>,
    %c16_i32_111 = arith.constant 16 : i32
    %258 = tpu.dynamic_rotate %233 by %c16_i32_111 dim 1 : vector<8x128xf32>, i32 -> vector<8x128xf32>
    %259 = arith.truncf %258 : vector<8x128xf32> to vector<8x128xbf16>
    %c4_112 = arith.constant 4 : index
    %c0_113 = arith.constant 0 : index
    %260 = vector.load %arg2[%c4_112, %c0_113] : memref<27x128xbf16, #tpu.memory_space<vmem>>, vector<1x128xbf16>
    %261 = vector.broadcast %260 : vector<1x128xbf16> to vector<8x128xbf16>
    %262 = arith.mulf %259, %261 : vector<8x128xbf16>
    %c32_114 = arith.constant 32 : index
    %c0_115 = arith.constant 0 : index
    %263 = vector.load %arg17[%c32_114, %c0_115] : memref<216x128xbf16, #tpu.memory_space<vmem>>, vector<8x128xbf16>
    tpu.vector_store %arg17[%c32_114, %c0_115], %262 {strides = array<i32>} : memref<216x128xbf16, #tpu.memory_space<vmem>>, vector<8x128xbf16>,
    %c15_i32_116 = arith.constant 15 : i32
    %264 = tpu.dynamic_rotate %233 by %c15_i32_116 dim 1 : vector<8x128xf32>, i32 -> vector<8x128xf32>
    %265 = arith.truncf %264 : vector<8x128xf32> to vector<8x128xbf16>
    %c5_117 = arith.constant 5 : index
    %c0_118 = arith.constant 0 : index
    %266 = vector.load %arg2[%c5_117, %c0_118] : memref<27x128xbf16, #tpu.memory_space<vmem>>, vector<1x128xbf16>
    %267 = vector.broadcast %266 : vector<1x128xbf16> to vector<8x128xbf16>
    %268 = arith.mulf %265, %267 : vector<8x128xbf16>
    %c40_119 = arith.constant 40 : index
    %c0_120 = arith.constant 0 : index
    %269 = vector.load %arg17[%c40_119, %c0_120] : memref<216x128xbf16, #tpu.memory_space<vmem>>, vector<8x128xbf16>
    tpu.vector_store %arg17[%c40_119, %c0_120], %268 {strides = array<i32>} : memref<216x128xbf16, #tpu.memory_space<vmem>>, vector<8x128xbf16>,
    %c13_i32_121 = arith.constant 13 : i32
    %270 = tpu.dynamic_rotate %233 by %c13_i32_121 dim 1 : vector<8x128xf32>, i32 -> vector<8x128xf32>
    %271 = arith.truncf %270 : vector<8x128xf32> to vector<8x128xbf16>
    %c6_122 = arith.constant 6 : index
    %c0_123 = arith.constant 0 : index
    %272 = vector.load %arg2[%c6_122, %c0_123] : memref<27x128xbf16, #tpu.memory_space<vmem>>, vector<1x128xbf16>
    %273 = vector.broadcast %272 : vector<1x128xbf16> to vector<8x128xbf16>
    %274 = arith.mulf %271, %273 : vector<8x128xbf16>
    %c48_124 = arith.constant 48 : index
    %c0_125 = arith.constant 0 : index
    %275 = vector.load %arg17[%c48_124, %c0_125] : memref<216x128xbf16, #tpu.memory_space<vmem>>, vector<8x128xbf16>
    tpu.vector_store %arg17[%c48_124, %c0_125], %274 {strides = array<i32>} : memref<216x128xbf16, #tpu.memory_space<vmem>>, vector<8x128xbf16>,
    %c12_i32_126 = arith.constant 12 : i32
    %276 = tpu.dynamic_rotate %233 by %c12_i32_126 dim 1 : vector<8x128xf32>, i32 -> vector<8x128xf32>
    %277 = arith.truncf %276 : vector<8x128xf32> to vector<8x128xbf16>
    %c7_127 = arith.constant 7 : index
    %c0_128 = arith.constant 0 : index
    %278 = vector.load %arg2[%c7_127, %c0_128] : memref<27x128xbf16, #tpu.memory_space<vmem>>, vector<1x128xbf16>
    %279 = vector.broadcast %278 : vector<1x128xbf16> to vector<8x128xbf16>
    %280 = arith.mulf %277, %279 : vector<8x128xbf16>
    %c56_129 = arith.constant 56 : index
    %c0_130 = arith.constant 0 : index
    %281 = vector.load %arg17[%c56_129, %c0_130] : memref<216x128xbf16, #tpu.memory_space<vmem>>, vector<8x128xbf16>
    tpu.vector_store %arg17[%c56_129, %c0_130], %280 {strides = array<i32>} : memref<216x128xbf16, #tpu.memory_space<vmem>>, vector<8x128xbf16>,
    %c11_i32_131 = arith.constant 11 : i32
    %282 = tpu.dynamic_rotate %233 by %c11_i32_131 dim 1 : vector<8x128xf32>, i32 -> vector<8x128xf32>
    %283 = arith.truncf %282 : vector<8x128xf32> to vector<8x128xbf16>
    %c8_132 = arith.constant 8 : index
    %c0_133 = arith.constant 0 : index
    %284 = vector.load %arg2[%c8_132, %c0_133] : memref<27x128xbf16, #tpu.memory_space<vmem>>, vector<1x128xbf16>
    %285 = vector.broadcast %284 : vector<1x128xbf16> to vector<8x128xbf16>
    %286 = arith.mulf %283, %285 : vector<8x128xbf16>
    %c64_134 = arith.constant 64 : index
    %c0_135 = arith.constant 0 : index
    %287 = vector.load %arg17[%c64_134, %c0_135] : memref<216x128xbf16, #tpu.memory_space<vmem>>, vector<8x128xbf16>
    tpu.vector_store %arg17[%c64_134, %c0_135], %286 {strides = array<i32>} : memref<216x128xbf16, #tpu.memory_space<vmem>>, vector<8x128xbf16>,
    %c5_i32_136 = arith.constant 5 : i32
    %288 = tpu.dynamic_rotate %233 by %c5_i32_136 dim 1 : vector<8x128xf32>, i32 -> vector<8x128xf32>
    %289 = arith.truncf %288 : vector<8x128xf32> to vector<8x128xbf16>
    %c9_137 = arith.constant 9 : index
    %c0_138 = arith.constant 0 : index
    %290 = vector.load %arg2[%c9_137, %c0_138] : memref<27x128xbf16, #tpu.memory_space<vmem>>, vector<1x128xbf16>
    %291 = vector.broadcast %290 : vector<1x128xbf16> to vector<8x128xbf16>
    %292 = arith.mulf %289, %291 : vector<8x128xbf16>
    %c72_139 = arith.constant 72 : index
    %c0_140 = arith.constant 0 : index
    %293 = vector.load %arg17[%c72_139, %c0_140] : memref<216x128xbf16, #tpu.memory_space<vmem>>, vector<8x128xbf16>
    tpu.vector_store %arg17[%c72_139, %c0_140], %292 {strides = array<i32>} : memref<216x128xbf16, #tpu.memory_space<vmem>>, vector<8x128xbf16>,
    %c4_i32_141 = arith.constant 4 : i32
    %294 = tpu.dynamic_rotate %233 by %c4_i32_141 dim 1 : vector<8x128xf32>, i32 -> vector<8x128xf32>
    %295 = arith.truncf %294 : vector<8x128xf32> to vector<8x128xbf16>
    %c10_142 = arith.constant 10 : index
    %c0_143 = arith.constant 0 : index
    %296 = vector.load %arg2[%c10_142, %c0_143] : memref<27x128xbf16, #tpu.memory_space<vmem>>, vector<1x128xbf16>
    %297 = vector.broadcast %296 : vector<1x128xbf16> to vector<8x128xbf16>
    %298 = arith.mulf %295, %297 : vector<8x128xbf16>
    %c80_144 = arith.constant 80 : index
    %c0_145 = arith.constant 0 : index
    %299 = vector.load %arg17[%c80_144, %c0_145] : memref<216x128xbf16, #tpu.memory_space<vmem>>, vector<8x128xbf16>
    tpu.vector_store %arg17[%c80_144, %c0_145], %298 {strides = array<i32>} : memref<216x128xbf16, #tpu.memory_space<vmem>>, vector<8x128xbf16>,
    %c3_i32_146 = arith.constant 3 : i32
    %300 = tpu.dynamic_rotate %233 by %c3_i32_146 dim 1 : vector<8x128xf32>, i32 -> vector<8x128xf32>
    %301 = arith.truncf %300 : vector<8x128xf32> to vector<8x128xbf16>
    %c11_147 = arith.constant 11 : index
    %c0_148 = arith.constant 0 : index
    %302 = vector.load %arg2[%c11_147, %c0_148] : memref<27x128xbf16, #tpu.memory_space<vmem>>, vector<1x128xbf16>
    %303 = vector.broadcast %302 : vector<1x128xbf16> to vector<8x128xbf16>
    %304 = arith.mulf %301, %303 : vector<8x128xbf16>
    %c88_149 = arith.constant 88 : index
    %c0_150 = arith.constant 0 : index
    %305 = vector.load %arg17[%c88_149, %c0_150] : memref<216x128xbf16, #tpu.memory_space<vmem>>, vector<8x128xbf16>
    tpu.vector_store %arg17[%c88_149, %c0_150], %304 {strides = array<i32>} : memref<216x128xbf16, #tpu.memory_space<vmem>>, vector<8x128xbf16>,
    %c1_i32_151 = arith.constant 1 : i32
    %306 = tpu.dynamic_rotate %233 by %c1_i32_151 dim 1 : vector<8x128xf32>, i32 -> vector<8x128xf32>
    %307 = arith.truncf %306 : vector<8x128xf32> to vector<8x128xbf16>
    %c12_152 = arith.constant 12 : index
    %c0_153 = arith.constant 0 : index
    %308 = vector.load %arg2[%c12_152, %c0_153] : memref<27x128xbf16, #tpu.memory_space<vmem>>, vector<1x128xbf16>
    %309 = vector.broadcast %308 : vector<1x128xbf16> to vector<8x128xbf16>
    %310 = arith.mulf %307, %309 : vector<8x128xbf16>
    %c96_154 = arith.constant 96 : index
    %c0_155 = arith.constant 0 : index
    %311 = vector.load %arg17[%c96_154, %c0_155] : memref<216x128xbf16, #tpu.memory_space<vmem>>, vector<8x128xbf16>
    tpu.vector_store %arg17[%c96_154, %c0_155], %310 {strides = array<i32>} : memref<216x128xbf16, #tpu.memory_space<vmem>>, vector<8x128xbf16>,
    %312 = arith.truncf %233 : vector<8x128xf32> to vector<8x128xbf16>
    %c13_156 = arith.constant 13 : index
    %c0_157 = arith.constant 0 : index
    %313 = vector.load %arg2[%c13_156, %c0_157] : memref<27x128xbf16, #tpu.memory_space<vmem>>, vector<1x128xbf16>
    %314 = vector.broadcast %313 : vector<1x128xbf16> to vector<8x128xbf16>
    %315 = arith.mulf %312, %314 : vector<8x128xbf16>
    %c104_158 = arith.constant 104 : index
    %c0_159 = arith.constant 0 : index
    %316 = vector.load %arg17[%c104_158, %c0_159] : memref<216x128xbf16, #tpu.memory_space<vmem>>, vector<8x128xbf16>
    tpu.vector_store %arg17[%c104_158, %c0_159], %315 {strides = array<i32>} : memref<216x128xbf16, #tpu.memory_space<vmem>>, vector<8x128xbf16>,
    %c127_i32_160 = arith.constant 127 : i32
    %317 = tpu.dynamic_rotate %233 by %c127_i32_160 dim 1 : vector<8x128xf32>, i32 -> vector<8x128xf32>
    %318 = arith.truncf %317 : vector<8x128xf32> to vector<8x128xbf16>
    %c14_161 = arith.constant 14 : index
    %c0_162 = arith.constant 0 : index
    %319 = vector.load %arg2[%c14_161, %c0_162] : memref<27x128xbf16, #tpu.memory_space<vmem>>, vector<1x128xbf16>
    %320 = vector.broadcast %319 : vector<1x128xbf16> to vector<8x128xbf16>
    %321 = arith.mulf %318, %320 : vector<8x128xbf16>
    %c112_163 = arith.constant 112 : index
    %c0_164 = arith.constant 0 : index
    %322 = vector.load %arg17[%c112_163, %c0_164] : memref<216x128xbf16, #tpu.memory_space<vmem>>, vector<8x128xbf16>
    tpu.vector_store %arg17[%c112_163, %c0_164], %321 {strides = array<i32>} : memref<216x128xbf16, #tpu.memory_space<vmem>>, vector<8x128xbf16>,
    %c125_i32_165 = arith.constant 125 : i32
    %323 = tpu.dynamic_rotate %233 by %c125_i32_165 dim 1 : vector<8x128xf32>, i32 -> vector<8x128xf32>
    %324 = arith.truncf %323 : vector<8x128xf32> to vector<8x128xbf16>
    %c15_166 = arith.constant 15 : index
    %c0_167 = arith.constant 0 : index
    %325 = vector.load %arg2[%c15_166, %c0_167] : memref<27x128xbf16, #tpu.memory_space<vmem>>, vector<1x128xbf16>
    %326 = vector.broadcast %325 : vector<1x128xbf16> to vector<8x128xbf16>
    %327 = arith.mulf %324, %326 : vector<8x128xbf16>
    %c120_168 = arith.constant 120 : index
    %c0_169 = arith.constant 0 : index
    %328 = vector.load %arg17[%c120_168, %c0_169] : memref<216x128xbf16, #tpu.memory_space<vmem>>, vector<8x128xbf16>
    tpu.vector_store %arg17[%c120_168, %c0_169], %327 {strides = array<i32>} : memref<216x128xbf16, #tpu.memory_space<vmem>>, vector<8x128xbf16>,
    %c124_i32_170 = arith.constant 124 : i32
    %329 = tpu.dynamic_rotate %233 by %c124_i32_170 dim 1 : vector<8x128xf32>, i32 -> vector<8x128xf32>
    %330 = arith.truncf %329 : vector<8x128xf32> to vector<8x128xbf16>
    %c16_171 = arith.constant 16 : index
    %c0_172 = arith.constant 0 : index
    %331 = vector.load %arg2[%c16_171, %c0_172] : memref<27x128xbf16, #tpu.memory_space<vmem>>, vector<1x128xbf16>
    %332 = vector.broadcast %331 : vector<1x128xbf16> to vector<8x128xbf16>
    %333 = arith.mulf %330, %332 : vector<8x128xbf16>
    %c128_173 = arith.constant 128 : index
    %c0_174 = arith.constant 0 : index
    %334 = vector.load %arg17[%c128_173, %c0_174] : memref<216x128xbf16, #tpu.memory_space<vmem>>, vector<8x128xbf16>
    tpu.vector_store %arg17[%c128_173, %c0_174], %333 {strides = array<i32>} : memref<216x128xbf16, #tpu.memory_space<vmem>>, vector<8x128xbf16>,
    %c123_i32_175 = arith.constant 123 : i32
    %335 = tpu.dynamic_rotate %233 by %c123_i32_175 dim 1 : vector<8x128xf32>, i32 -> vector<8x128xf32>
    %336 = arith.truncf %335 : vector<8x128xf32> to vector<8x128xbf16>
    %c17_176 = arith.constant 17 : index
    %c0_177 = arith.constant 0 : index
    %337 = vector.load %arg2[%c17_176, %c0_177] : memref<27x128xbf16, #tpu.memory_space<vmem>>, vector<1x128xbf16>
    %338 = vector.broadcast %337 : vector<1x128xbf16> to vector<8x128xbf16>
    %339 = arith.mulf %336, %338 : vector<8x128xbf16>
    %c136_178 = arith.constant 136 : index
    %c0_179 = arith.constant 0 : index
    %340 = vector.load %arg17[%c136_178, %c0_179] : memref<216x128xbf16, #tpu.memory_space<vmem>>, vector<8x128xbf16>
    tpu.vector_store %arg17[%c136_178, %c0_179], %339 {strides = array<i32>} : memref<216x128xbf16, #tpu.memory_space<vmem>>, vector<8x128xbf16>,
    %c117_i32_180 = arith.constant 117 : i32
    %341 = tpu.dynamic_rotate %233 by %c117_i32_180 dim 1 : vector<8x128xf32>, i32 -> vector<8x128xf32>
    %342 = arith.truncf %341 : vector<8x128xf32> to vector<8x128xbf16>
    %c18_181 = arith.constant 18 : index
    %c0_182 = arith.constant 0 : index
    %343 = vector.load %arg2[%c18_181, %c0_182] : memref<27x128xbf16, #tpu.memory_space<vmem>>, vector<1x128xbf16>
    %344 = vector.broadcast %343 : vector<1x128xbf16> to vector<8x128xbf16>
    %345 = arith.mulf %342, %344 : vector<8x128xbf16>
    %c144_183 = arith.constant 144 : index
    %c0_184 = arith.constant 0 : index
    %346 = vector.load %arg17[%c144_183, %c0_184] : memref<216x128xbf16, #tpu.memory_space<vmem>>, vector<8x128xbf16>
    tpu.vector_store %arg17[%c144_183, %c0_184], %345 {strides = array<i32>} : memref<216x128xbf16, #tpu.memory_space<vmem>>, vector<8x128xbf16>,
    %c116_i32_185 = arith.constant 116 : i32
    %347 = tpu.dynamic_rotate %233 by %c116_i32_185 dim 1 : vector<8x128xf32>, i32 -> vector<8x128xf32>
    %348 = arith.truncf %347 : vector<8x128xf32> to vector<8x128xbf16>
    %c19_186 = arith.constant 19 : index
    %c0_187 = arith.constant 0 : index
    %349 = vector.load %arg2[%c19_186, %c0_187] : memref<27x128xbf16, #tpu.memory_space<vmem>>, vector<1x128xbf16>
    %350 = vector.broadcast %349 : vector<1x128xbf16> to vector<8x128xbf16>
    %351 = arith.mulf %348, %350 : vector<8x128xbf16>
    %c152_188 = arith.constant 152 : index
    %c0_189 = arith.constant 0 : index
    %352 = vector.load %arg17[%c152_188, %c0_189] : memref<216x128xbf16, #tpu.memory_space<vmem>>, vector<8x128xbf16>
    tpu.vector_store %arg17[%c152_188, %c0_189], %351 {strides = array<i32>} : memref<216x128xbf16, #tpu.memory_space<vmem>>, vector<8x128xbf16>,
    %c115_i32_190 = arith.constant 115 : i32
    %353 = tpu.dynamic_rotate %233 by %c115_i32_190 dim 1 : vector<8x128xf32>, i32 -> vector<8x128xf32>
    %354 = arith.truncf %353 : vector<8x128xf32> to vector<8x128xbf16>
    %c20_191 = arith.constant 20 : index
    %c0_192 = arith.constant 0 : index
    %355 = vector.load %arg2[%c20_191, %c0_192] : memref<27x128xbf16, #tpu.memory_space<vmem>>, vector<1x128xbf16>
    %356 = vector.broadcast %355 : vector<1x128xbf16> to vector<8x128xbf16>
    %357 = arith.mulf %354, %356 : vector<8x128xbf16>
    %c160_193 = arith.constant 160 : index
    %c0_194 = arith.constant 0 : index
    %358 = vector.load %arg17[%c160_193, %c0_194] : memref<216x128xbf16, #tpu.memory_space<vmem>>, vector<8x128xbf16>
    tpu.vector_store %arg17[%c160_193, %c0_194], %357 {strides = array<i32>} : memref<216x128xbf16, #tpu.memory_space<vmem>>, vector<8x128xbf16>,
    %c113_i32_195 = arith.constant 113 : i32
    %359 = tpu.dynamic_rotate %233 by %c113_i32_195 dim 1 : vector<8x128xf32>, i32 -> vector<8x128xf32>
    %360 = arith.truncf %359 : vector<8x128xf32> to vector<8x128xbf16>
    %c21_196 = arith.constant 21 : index
    %c0_197 = arith.constant 0 : index
    %361 = vector.load %arg2[%c21_196, %c0_197] : memref<27x128xbf16, #tpu.memory_space<vmem>>, vector<1x128xbf16>
    %362 = vector.broadcast %361 : vector<1x128xbf16> to vector<8x128xbf16>
    %363 = arith.mulf %360, %362 : vector<8x128xbf16>
    %c168_198 = arith.constant 168 : index
    %c0_199 = arith.constant 0 : index
    %364 = vector.load %arg17[%c168_198, %c0_199] : memref<216x128xbf16, #tpu.memory_space<vmem>>, vector<8x128xbf16>
    tpu.vector_store %arg17[%c168_198, %c0_199], %363 {strides = array<i32>} : memref<216x128xbf16, #tpu.memory_space<vmem>>, vector<8x128xbf16>,
    %c112_i32_200 = arith.constant 112 : i32
    %365 = tpu.dynamic_rotate %233 by %c112_i32_200 dim 1 : vector<8x128xf32>, i32 -> vector<8x128xf32>
    %366 = arith.truncf %365 : vector<8x128xf32> to vector<8x128xbf16>
    %c22_201 = arith.constant 22 : index
    %c0_202 = arith.constant 0 : index
    %367 = vector.load %arg2[%c22_201, %c0_202] : memref<27x128xbf16, #tpu.memory_space<vmem>>, vector<1x128xbf16>
    %368 = vector.broadcast %367 : vector<1x128xbf16> to vector<8x128xbf16>
    %369 = arith.mulf %366, %368 : vector<8x128xbf16>
    %c176_203 = arith.constant 176 : index
    %c0_204 = arith.constant 0 : index
    %370 = vector.load %arg17[%c176_203, %c0_204] : memref<216x128xbf16, #tpu.memory_space<vmem>>, vector<8x128xbf16>
    tpu.vector_store %arg17[%c176_203, %c0_204], %369 {strides = array<i32>} : memref<216x128xbf16, #tpu.memory_space<vmem>>, vector<8x128xbf16>,
    %c111_i32_205 = arith.constant 111 : i32
    %371 = tpu.dynamic_rotate %233 by %c111_i32_205 dim 1 : vector<8x128xf32>, i32 -> vector<8x128xf32>
    %372 = arith.truncf %371 : vector<8x128xf32> to vector<8x128xbf16>
    %c23_206 = arith.constant 23 : index
    %c0_207 = arith.constant 0 : index
    %373 = vector.load %arg2[%c23_206, %c0_207] : memref<27x128xbf16, #tpu.memory_space<vmem>>, vector<1x128xbf16>
    %374 = vector.broadcast %373 : vector<1x128xbf16> to vector<8x128xbf16>
    %375 = arith.mulf %372, %374 : vector<8x128xbf16>
    %c184_208 = arith.constant 184 : index
    %c0_209 = arith.constant 0 : index
    %376 = vector.load %arg17[%c184_208, %c0_209] : memref<216x128xbf16, #tpu.memory_space<vmem>>, vector<8x128xbf16>
    tpu.vector_store %arg17[%c184_208, %c0_209], %375 {strides = array<i32>} : memref<216x128xbf16, #tpu.memory_space<vmem>>, vector<8x128xbf16>,
    %c109_i32_210 = arith.constant 109 : i32
    %377 = tpu.dynamic_rotate %233 by %c109_i32_210 dim 1 : vector<8x128xf32>, i32 -> vector<8x128xf32>
    %378 = arith.truncf %377 : vector<8x128xf32> to vector<8x128xbf16>
    %c24_211 = arith.constant 24 : index
    %c0_212 = arith.constant 0 : index
    %379 = vector.load %arg2[%c24_211, %c0_212] : memref<27x128xbf16, #tpu.memory_space<vmem>>, vector<1x128xbf16>
    %380 = vector.broadcast %379 : vector<1x128xbf16> to vector<8x128xbf16>
    %381 = arith.mulf %378, %380 : vector<8x128xbf16>
    %c192_213 = arith.constant 192 : index
    %c0_214 = arith.constant 0 : index
    %382 = vector.load %arg17[%c192_213, %c0_214] : memref<216x128xbf16, #tpu.memory_space<vmem>>, vector<8x128xbf16>
    tpu.vector_store %arg17[%c192_213, %c0_214], %381 {strides = array<i32>} : memref<216x128xbf16, #tpu.memory_space<vmem>>, vector<8x128xbf16>,
    %c108_i32_215 = arith.constant 108 : i32
    %383 = tpu.dynamic_rotate %233 by %c108_i32_215 dim 1 : vector<8x128xf32>, i32 -> vector<8x128xf32>
    %384 = arith.truncf %383 : vector<8x128xf32> to vector<8x128xbf16>
    %c25_216 = arith.constant 25 : index
    %c0_217 = arith.constant 0 : index
    %385 = vector.load %arg2[%c25_216, %c0_217] : memref<27x128xbf16, #tpu.memory_space<vmem>>, vector<1x128xbf16>
    %386 = vector.broadcast %385 : vector<1x128xbf16> to vector<8x128xbf16>
    %387 = arith.mulf %384, %386 : vector<8x128xbf16>
    %c200_218 = arith.constant 200 : index
    %c0_219 = arith.constant 0 : index
    %388 = vector.load %arg17[%c200_218, %c0_219] : memref<216x128xbf16, #tpu.memory_space<vmem>>, vector<8x128xbf16>
    tpu.vector_store %arg17[%c200_218, %c0_219], %387 {strides = array<i32>} : memref<216x128xbf16, #tpu.memory_space<vmem>>, vector<8x128xbf16>,
    %c107_i32_220 = arith.constant 107 : i32
    %389 = tpu.dynamic_rotate %233 by %c107_i32_220 dim 1 : vector<8x128xf32>, i32 -> vector<8x128xf32>
    %390 = arith.truncf %389 : vector<8x128xf32> to vector<8x128xbf16>
    %c26_221 = arith.constant 26 : index
    %c0_222 = arith.constant 0 : index
    %391 = vector.load %arg2[%c26_221, %c0_222] : memref<27x128xbf16, #tpu.memory_space<vmem>>, vector<1x128xbf16>
    %392 = vector.broadcast %391 : vector<1x128xbf16> to vector<8x128xbf16>
    %393 = arith.mulf %390, %392 : vector<8x128xbf16>
    %c208_223 = arith.constant 208 : index
    %c0_224 = arith.constant 0 : index
    %394 = vector.load %arg17[%c208_223, %c0_224] : memref<216x128xbf16, #tpu.memory_space<vmem>>, vector<8x128xbf16>
    tpu.vector_store %arg17[%c208_223, %c0_224], %393 {strides = array<i32>} : memref<216x128xbf16, #tpu.memory_space<vmem>>, vector<8x128xbf16>,
    %c0_225 = arith.constant 0 : index
    %c0_226 = arith.constant 0 : index
    %395 = vector.load %arg7[%c0_225, %c0_226] : memref<8x216xbf16, #tpu.memory_space<vmem>>, vector<8x216xbf16>
    %c0_227 = arith.constant 0 : index
    %c0_228 = arith.constant 0 : index
    %396 = vector.load %arg17[%c0_227, %c0_228] : memref<216x128xbf16, #tpu.memory_space<vmem>>, vector<216x128xbf16>
    %cst_229 = arith.constant dense<0.000000e+00> : vector<8x128xf32>
    %397 = tpu.matmul %395, %396, %cst_229 {dimension_numbers = #tpu.dot_dimension_numbers<[1], [0], [0], [1], [0, 0, 1, 1], [], []>} : vector<8x216xbf16>, vector<216x128xbf16>, vector<8x128xf32> -> vector<8x128xf32>
    %cst_230 = arith.constant dense<0.000000e+00> : vector<8xf32>
    %398 = vector.multi_reduction <add>, %397, %cst_230 [1] : vector<8x128xf32> to vector<8xf32>
    %399 = vector.shape_cast %398 : vector<8xf32> to vector<8x1xf32>
    %400 = arith.mulf %397, %397 : vector<8x128xf32>
    %cst_231 = arith.constant dense<0.000000e+00> : vector<8xf32>
    %401 = vector.multi_reduction <add>, %400, %cst_231 [1] : vector<8x128xf32> to vector<8xf32>
    %402 = vector.shape_cast %401 : vector<8xf32> to vector<8x1xf32>
    %cst_232 = arith.constant 1.562500e-02 : f32
    %403 = vector.broadcast %cst_232 : f32 to vector<8x1xf32>
    %404 = arith.mulf %399, %403 : vector<8x1xf32>
    %cst_233 = arith.constant 1.562500e-02 : f32
    %405 = vector.broadcast %cst_233 : f32 to vector<8x1xf32>
    %406 = arith.mulf %402, %405 : vector<8x1xf32>
    %407 = arith.mulf %404, %404 : vector<8x1xf32>
    %408 = arith.subf %406, %407 : vector<8x1xf32>
    %cst_234 = arith.constant 0.000000e+00 : f32
    %409 = vector.broadcast %cst_234 : f32 to vector<8x1xf32>
    %410 = arith.maximumf %408, %409 : vector<8x1xf32>
    %411 = vector.broadcast %404 : vector<8x1xf32> to vector<8x128xf32>
    %412 = arith.subf %397, %411 : vector<8x128xf32>
    %cst_235 = arith.constant 9.99999974E-6 : f32
    %413 = vector.broadcast %cst_235 : f32 to vector<8x1xf32>
    %414 = arith.addf %410, %413 : vector<8x1xf32>
    %415 = math.rsqrt %414 : vector<8x1xf32>
    %416 = vector.broadcast %415 : vector<8x1xf32> to vector<8x128xf32>
    %417 = arith.mulf %412, %416 : vector<8x128xf32>
    %c0_236 = arith.constant 0 : index
    %c0_237 = arith.constant 0 : index
    %418 = vector.load %arg8[%c0_236, %c0_237] : memref<8x1xf32, #tpu.memory_space<vmem>>, vector<8x1xf32>
    %419 = vector.broadcast %418 : vector<8x1xf32> to vector<8x128xf32>
    %420 = arith.mulf %417, %419 : vector<8x128xf32>
    %c0_238 = arith.constant 0 : index
    %c0_239 = arith.constant 0 : index
    %421 = vector.load %arg9[%c0_238, %c0_239] : memref<8x1xf32, #tpu.memory_space<vmem>>, vector<8x1xf32>
    %422 = vector.broadcast %421 : vector<8x1xf32> to vector<8x128xf32>
    %423 = arith.addf %420, %422 : vector<8x128xf32>
    %424 = arith.addf %2, %423 : vector<8x128xf32>
    %cst_240 = arith.constant 5.000000e-01 : f32
    %425 = vector.broadcast %cst_240 : f32 to vector<8x128xf32>
    %426 = arith.mulf %425, %424 : vector<8x128xf32>
    %cst_241 = arith.constant 0.707106769 : f32
    %427 = vector.broadcast %cst_241 : f32 to vector<8x128xf32>
    %428 = arith.mulf %424, %427 : vector<8x128xf32>
    %cst_242 = arith.constant 0.000000e+00 : f32
    %429 = vector.broadcast %cst_242 : f32 to vector<8x128xf32>
    %430 = arith.cmpf olt, %428, %429 : vector<8x128xf32>
    %cst_243 = arith.constant -1.000000e+00 : f32
    %cst_244 = arith.constant 1.000000e+00 : f32
    %431 = vector.broadcast %cst_243 : f32 to vector<8x128xf32>
    %432 = vector.broadcast %cst_244 : f32 to vector<8x128xf32>
    %433 = arith.select %430, %431, %432 : vector<8x128xi1>, vector<8x128xf32>
    %434 = math.absf %428 : vector<8x128xf32>
    %cst_245 = arith.constant 0.327591091 : f32
    %435 = vector.broadcast %cst_245 : f32 to vector<8x128xf32>
    %436 = arith.mulf %435, %434 : vector<8x128xf32>
    %cst_246 = arith.constant 1.000000e+00 : f32
    %437 = vector.broadcast %cst_246 : f32 to vector<8x128xf32>
    %438 = arith.addf %437, %436 : vector<8x128xf32>
    %cst_247 = arith.constant 1.000000e+00 : f32
    %439 = vector.broadcast %cst_247 : f32 to vector<8x128xf32>
    %440 = arith.divf %439, %438 : vector<8x128xf32>
    %cst_248 = arith.constant 1.06140542 : f32
    %441 = vector.broadcast %cst_248 : f32 to vector<8x128xf32>
    %442 = arith.mulf %440, %441 : vector<8x128xf32>
    %cst_249 = arith.constant -1.45315206 : f32
    %443 = vector.broadcast %cst_249 : f32 to vector<8x128xf32>
    %444 = arith.addf %443, %442 : vector<8x128xf32>
    %445 = arith.mulf %440, %444 : vector<8x128xf32>
    %cst_250 = arith.constant 1.42141378 : f32
    %446 = vector.broadcast %cst_250 : f32 to vector<8x128xf32>
    %447 = arith.addf %446, %445 : vector<8x128xf32>
    %448 = arith.mulf %440, %447 : vector<8x128xf32>
    %cst_251 = arith.constant -0.284496725 : f32
    %449 = vector.broadcast %cst_251 : f32 to vector<8x128xf32>
    %450 = arith.addf %449, %448 : vector<8x128xf32>
    %451 = arith.mulf %440, %450 : vector<8x128xf32>
    %cst_252 = arith.constant 0.254829586 : f32
    %452 = vector.broadcast %cst_252 : f32 to vector<8x128xf32>
    %453 = arith.addf %452, %451 : vector<8x128xf32>
    %454 = arith.mulf %440, %453 : vector<8x128xf32>
    %cst_253 = arith.constant 0.000000e+00 : f32
    %455 = vector.broadcast %cst_253 : f32 to vector<8x128xf32>
    %456 = arith.subf %455, %434 : vector<8x128xf32>
    %457 = arith.mulf %456, %434 : vector<8x128xf32>
    %458 = math.exp %457 : vector<8x128xf32>
    %459 = arith.mulf %454, %458 : vector<8x128xf32>
    %cst_254 = arith.constant 1.000000e+00 : f32
    %460 = vector.broadcast %cst_254 : f32 to vector<8x128xf32>
    %461 = arith.subf %460, %459 : vector<8x128xf32>
    %462 = arith.mulf %433, %461 : vector<8x128xf32>
    %cst_255 = arith.constant 1.000000e+00 : f32
    %463 = vector.broadcast %cst_255 : f32 to vector<8x128xf32>
    %464 = arith.addf %463, %462 : vector<8x128xf32>
    %465 = arith.mulf %426, %464 : vector<8x128xf32>
    %c21_i32_256 = arith.constant 21 : i32
    %466 = tpu.dynamic_rotate %465 by %c21_i32_256 dim 1 : vector<8x128xf32>, i32 -> vector<8x128xf32>
    %467 = arith.truncf %466 : vector<8x128xf32> to vector<8x128xbf16>
    %c0_257 = arith.constant 0 : index
    %c0_258 = arith.constant 0 : index
    %468 = vector.load %arg2[%c0_257, %c0_258] : memref<27x128xbf16, #tpu.memory_space<vmem>>, vector<1x128xbf16>
    %469 = vector.broadcast %468 : vector<1x128xbf16> to vector<8x128xbf16>
    %470 = arith.mulf %467, %469 : vector<8x128xbf16>
    %c0_259 = arith.constant 0 : index
    %c0_260 = arith.constant 0 : index
    %471 = vector.load %arg17[%c0_259, %c0_260] : memref<216x128xbf16, #tpu.memory_space<vmem>>, vector<8x128xbf16>
    tpu.vector_store %arg17[%c0_259, %c0_260], %470 {strides = array<i32>} : memref<216x128xbf16, #tpu.memory_space<vmem>>, vector<8x128xbf16>,
    %c20_i32_261 = arith.constant 20 : i32
    %472 = tpu.dynamic_rotate %465 by %c20_i32_261 dim 1 : vector<8x128xf32>, i32 -> vector<8x128xf32>
    %473 = arith.truncf %472 : vector<8x128xf32> to vector<8x128xbf16>
    %c1_262 = arith.constant 1 : index
    %c0_263 = arith.constant 0 : index
    %474 = vector.load %arg2[%c1_262, %c0_263] : memref<27x128xbf16, #tpu.memory_space<vmem>>, vector<1x128xbf16>
    %475 = vector.broadcast %474 : vector<1x128xbf16> to vector<8x128xbf16>
    %476 = arith.mulf %473, %475 : vector<8x128xbf16>
    %c8_264 = arith.constant 8 : index
    %c0_265 = arith.constant 0 : index
    %477 = vector.load %arg17[%c8_264, %c0_265] : memref<216x128xbf16, #tpu.memory_space<vmem>>, vector<8x128xbf16>
    tpu.vector_store %arg17[%c8_264, %c0_265], %476 {strides = array<i32>} : memref<216x128xbf16, #tpu.memory_space<vmem>>, vector<8x128xbf16>,
    %c19_i32_266 = arith.constant 19 : i32
    %478 = tpu.dynamic_rotate %465 by %c19_i32_266 dim 1 : vector<8x128xf32>, i32 -> vector<8x128xf32>
    %479 = arith.truncf %478 : vector<8x128xf32> to vector<8x128xbf16>
    %c2_267 = arith.constant 2 : index
    %c0_268 = arith.constant 0 : index
    %480 = vector.load %arg2[%c2_267, %c0_268] : memref<27x128xbf16, #tpu.memory_space<vmem>>, vector<1x128xbf16>
    %481 = vector.broadcast %480 : vector<1x128xbf16> to vector<8x128xbf16>
    %482 = arith.mulf %479, %481 : vector<8x128xbf16>
    %c16_269 = arith.constant 16 : index
    %c0_270 = arith.constant 0 : index
    %483 = vector.load %arg17[%c16_269, %c0_270] : memref<216x128xbf16, #tpu.memory_space<vmem>>, vector<8x128xbf16>
    tpu.vector_store %arg17[%c16_269, %c0_270], %482 {strides = array<i32>} : memref<216x128xbf16, #tpu.memory_space<vmem>>, vector<8x128xbf16>,
    %c17_i32_271 = arith.constant 17 : i32
    %484 = tpu.dynamic_rotate %465 by %c17_i32_271 dim 1 : vector<8x128xf32>, i32 -> vector<8x128xf32>
    %485 = arith.truncf %484 : vector<8x128xf32> to vector<8x128xbf16>
    %c3_272 = arith.constant 3 : index
    %c0_273 = arith.constant 0 : index
    %486 = vector.load %arg2[%c3_272, %c0_273] : memref<27x128xbf16, #tpu.memory_space<vmem>>, vector<1x128xbf16>
    %487 = vector.broadcast %486 : vector<1x128xbf16> to vector<8x128xbf16>
    %488 = arith.mulf %485, %487 : vector<8x128xbf16>
    %c24_274 = arith.constant 24 : index
    %c0_275 = arith.constant 0 : index
    %489 = vector.load %arg17[%c24_274, %c0_275] : memref<216x128xbf16, #tpu.memory_space<vmem>>, vector<8x128xbf16>
    tpu.vector_store %arg17[%c24_274, %c0_275], %488 {strides = array<i32>} : memref<216x128xbf16, #tpu.memory_space<vmem>>, vector<8x128xbf16>,
    %c16_i32_276 = arith.constant 16 : i32
    %490 = tpu.dynamic_rotate %465 by %c16_i32_276 dim 1 : vector<8x128xf32>, i32 -> vector<8x128xf32>
    %491 = arith.truncf %490 : vector<8x128xf32> to vector<8x128xbf16>
    %c4_277 = arith.constant 4 : index
    %c0_278 = arith.constant 0 : index
    %492 = vector.load %arg2[%c4_277, %c0_278] : memref<27x128xbf16, #tpu.memory_space<vmem>>, vector<1x128xbf16>
    %493 = vector.broadcast %492 : vector<1x128xbf16> to vector<8x128xbf16>
    %494 = arith.mulf %491, %493 : vector<8x128xbf16>
    %c32_279 = arith.constant 32 : index
    %c0_280 = arith.constant 0 : index
    %495 = vector.load %arg17[%c32_279, %c0_280] : memref<216x128xbf16, #tpu.memory_space<vmem>>, vector<8x128xbf16>
    tpu.vector_store %arg17[%c32_279, %c0_280], %494 {strides = array<i32>} : memref<216x128xbf16, #tpu.memory_space<vmem>>, vector<8x128xbf16>,
    %c15_i32_281 = arith.constant 15 : i32
    %496 = tpu.dynamic_rotate %465 by %c15_i32_281 dim 1 : vector<8x128xf32>, i32 -> vector<8x128xf32>
    %497 = arith.truncf %496 : vector<8x128xf32> to vector<8x128xbf16>
    %c5_282 = arith.constant 5 : index
    %c0_283 = arith.constant 0 : index
    %498 = vector.load %arg2[%c5_282, %c0_283] : memref<27x128xbf16, #tpu.memory_space<vmem>>, vector<1x128xbf16>
    %499 = vector.broadcast %498 : vector<1x128xbf16> to vector<8x128xbf16>
    %500 = arith.mulf %497, %499 : vector<8x128xbf16>
    %c40_284 = arith.constant 40 : index
    %c0_285 = arith.constant 0 : index
    %501 = vector.load %arg17[%c40_284, %c0_285] : memref<216x128xbf16, #tpu.memory_space<vmem>>, vector<8x128xbf16>
    tpu.vector_store %arg17[%c40_284, %c0_285], %500 {strides = array<i32>} : memref<216x128xbf16, #tpu.memory_space<vmem>>, vector<8x128xbf16>,
    %c13_i32_286 = arith.constant 13 : i32
    %502 = tpu.dynamic_rotate %465 by %c13_i32_286 dim 1 : vector<8x128xf32>, i32 -> vector<8x128xf32>
    %503 = arith.truncf %502 : vector<8x128xf32> to vector<8x128xbf16>
    %c6_287 = arith.constant 6 : index
    %c0_288 = arith.constant 0 : index
    %504 = vector.load %arg2[%c6_287, %c0_288] : memref<27x128xbf16, #tpu.memory_space<vmem>>, vector<1x128xbf16>
    %505 = vector.broadcast %504 : vector<1x128xbf16> to vector<8x128xbf16>
    %506 = arith.mulf %503, %505 : vector<8x128xbf16>
    %c48_289 = arith.constant 48 : index
    %c0_290 = arith.constant 0 : index
    %507 = vector.load %arg17[%c48_289, %c0_290] : memref<216x128xbf16, #tpu.memory_space<vmem>>, vector<8x128xbf16>
    tpu.vector_store %arg17[%c48_289, %c0_290], %506 {strides = array<i32>} : memref<216x128xbf16, #tpu.memory_space<vmem>>, vector<8x128xbf16>,
    %c12_i32_291 = arith.constant 12 : i32
    %508 = tpu.dynamic_rotate %465 by %c12_i32_291 dim 1 : vector<8x128xf32>, i32 -> vector<8x128xf32>
    %509 = arith.truncf %508 : vector<8x128xf32> to vector<8x128xbf16>
    %c7_292 = arith.constant 7 : index
    %c0_293 = arith.constant 0 : index
    %510 = vector.load %arg2[%c7_292, %c0_293] : memref<27x128xbf16, #tpu.memory_space<vmem>>, vector<1x128xbf16>
    %511 = vector.broadcast %510 : vector<1x128xbf16> to vector<8x128xbf16>
    %512 = arith.mulf %509, %511 : vector<8x128xbf16>
    %c56_294 = arith.constant 56 : index
    %c0_295 = arith.constant 0 : index
    %513 = vector.load %arg17[%c56_294, %c0_295] : memref<216x128xbf16, #tpu.memory_space<vmem>>, vector<8x128xbf16>
    tpu.vector_store %arg17[%c56_294, %c0_295], %512 {strides = array<i32>} : memref<216x128xbf16, #tpu.memory_space<vmem>>, vector<8x128xbf16>,
    %c11_i32_296 = arith.constant 11 : i32
    %514 = tpu.dynamic_rotate %465 by %c11_i32_296 dim 1 : vector<8x128xf32>, i32 -> vector<8x128xf32>
    %515 = arith.truncf %514 : vector<8x128xf32> to vector<8x128xbf16>
    %c8_297 = arith.constant 8 : index
    %c0_298 = arith.constant 0 : index
    %516 = vector.load %arg2[%c8_297, %c0_298] : memref<27x128xbf16, #tpu.memory_space<vmem>>, vector<1x128xbf16>
    %517 = vector.broadcast %516 : vector<1x128xbf16> to vector<8x128xbf16>
    %518 = arith.mulf %515, %517 : vector<8x128xbf16>
    %c64_299 = arith.constant 64 : index
    %c0_300 = arith.constant 0 : index
    %519 = vector.load %arg17[%c64_299, %c0_300] : memref<216x128xbf16, #tpu.memory_space<vmem>>, vector<8x128xbf16>
    tpu.vector_store %arg17[%c64_299, %c0_300], %518 {strides = array<i32>} : memref<216x128xbf16, #tpu.memory_space<vmem>>, vector<8x128xbf16>,
    %c5_i32_301 = arith.constant 5 : i32
    %520 = tpu.dynamic_rotate %465 by %c5_i32_301 dim 1 : vector<8x128xf32>, i32 -> vector<8x128xf32>
    %521 = arith.truncf %520 : vector<8x128xf32> to vector<8x128xbf16>
    %c9_302 = arith.constant 9 : index
    %c0_303 = arith.constant 0 : index
    %522 = vector.load %arg2[%c9_302, %c0_303] : memref<27x128xbf16, #tpu.memory_space<vmem>>, vector<1x128xbf16>
    %523 = vector.broadcast %522 : vector<1x128xbf16> to vector<8x128xbf16>
    %524 = arith.mulf %521, %523 : vector<8x128xbf16>
    %c72_304 = arith.constant 72 : index
    %c0_305 = arith.constant 0 : index
    %525 = vector.load %arg17[%c72_304, %c0_305] : memref<216x128xbf16, #tpu.memory_space<vmem>>, vector<8x128xbf16>
    tpu.vector_store %arg17[%c72_304, %c0_305], %524 {strides = array<i32>} : memref<216x128xbf16, #tpu.memory_space<vmem>>, vector<8x128xbf16>,
    %c4_i32_306 = arith.constant 4 : i32
    %526 = tpu.dynamic_rotate %465 by %c4_i32_306 dim 1 : vector<8x128xf32>, i32 -> vector<8x128xf32>
    %527 = arith.truncf %526 : vector<8x128xf32> to vector<8x128xbf16>
    %c10_307 = arith.constant 10 : index
    %c0_308 = arith.constant 0 : index
    %528 = vector.load %arg2[%c10_307, %c0_308] : memref<27x128xbf16, #tpu.memory_space<vmem>>, vector<1x128xbf16>
    %529 = vector.broadcast %528 : vector<1x128xbf16> to vector<8x128xbf16>
    %530 = arith.mulf %527, %529 : vector<8x128xbf16>
    %c80_309 = arith.constant 80 : index
    %c0_310 = arith.constant 0 : index
    %531 = vector.load %arg17[%c80_309, %c0_310] : memref<216x128xbf16, #tpu.memory_space<vmem>>, vector<8x128xbf16>
    tpu.vector_store %arg17[%c80_309, %c0_310], %530 {strides = array<i32>} : memref<216x128xbf16, #tpu.memory_space<vmem>>, vector<8x128xbf16>,
    %c3_i32_311 = arith.constant 3 : i32
    %532 = tpu.dynamic_rotate %465 by %c3_i32_311 dim 1 : vector<8x128xf32>, i32 -> vector<8x128xf32>
    %533 = arith.truncf %532 : vector<8x128xf32> to vector<8x128xbf16>
    %c11_312 = arith.constant 11 : index
    %c0_313 = arith.constant 0 : index
    %534 = vector.load %arg2[%c11_312, %c0_313] : memref<27x128xbf16, #tpu.memory_space<vmem>>, vector<1x128xbf16>
    %535 = vector.broadcast %534 : vector<1x128xbf16> to vector<8x128xbf16>
    %536 = arith.mulf %533, %535 : vector<8x128xbf16>
    %c88_314 = arith.constant 88 : index
    %c0_315 = arith.constant 0 : index
    %537 = vector.load %arg17[%c88_314, %c0_315] : memref<216x128xbf16, #tpu.memory_space<vmem>>, vector<8x128xbf16>
    tpu.vector_store %arg17[%c88_314, %c0_315], %536 {strides = array<i32>} : memref<216x128xbf16, #tpu.memory_space<vmem>>, vector<8x128xbf16>,
    %c1_i32_316 = arith.constant 1 : i32
    %538 = tpu.dynamic_rotate %465 by %c1_i32_316 dim 1 : vector<8x128xf32>, i32 -> vector<8x128xf32>
    %539 = arith.truncf %538 : vector<8x128xf32> to vector<8x128xbf16>
    %c12_317 = arith.constant 12 : index
    %c0_318 = arith.constant 0 : index
    %540 = vector.load %arg2[%c12_317, %c0_318] : memref<27x128xbf16, #tpu.memory_space<vmem>>, vector<1x128xbf16>
    %541 = vector.broadcast %540 : vector<1x128xbf16> to vector<8x128xbf16>
    %542 = arith.mulf %539, %541 : vector<8x128xbf16>
    %c96_319 = arith.constant 96 : index
    %c0_320 = arith.constant 0 : index
    %543 = vector.load %arg17[%c96_319, %c0_320] : memref<216x128xbf16, #tpu.memory_space<vmem>>, vector<8x128xbf16>
    tpu.vector_store %arg17[%c96_319, %c0_320], %542 {strides = array<i32>} : memref<216x128xbf16, #tpu.memory_space<vmem>>, vector<8x128xbf16>,
    %544 = arith.truncf %465 : vector<8x128xf32> to vector<8x128xbf16>
    %c13_321 = arith.constant 13 : index
    %c0_322 = arith.constant 0 : index
    %545 = vector.load %arg2[%c13_321, %c0_322] : memref<27x128xbf16, #tpu.memory_space<vmem>>, vector<1x128xbf16>
    %546 = vector.broadcast %545 : vector<1x128xbf16> to vector<8x128xbf16>
    %547 = arith.mulf %544, %546 : vector<8x128xbf16>
    %c104_323 = arith.constant 104 : index
    %c0_324 = arith.constant 0 : index
    %548 = vector.load %arg17[%c104_323, %c0_324] : memref<216x128xbf16, #tpu.memory_space<vmem>>, vector<8x128xbf16>
    tpu.vector_store %arg17[%c104_323, %c0_324], %547 {strides = array<i32>} : memref<216x128xbf16, #tpu.memory_space<vmem>>, vector<8x128xbf16>,
    %c127_i32_325 = arith.constant 127 : i32
    %549 = tpu.dynamic_rotate %465 by %c127_i32_325 dim 1 : vector<8x128xf32>, i32 -> vector<8x128xf32>
    %550 = arith.truncf %549 : vector<8x128xf32> to vector<8x128xbf16>
    %c14_326 = arith.constant 14 : index
    %c0_327 = arith.constant 0 : index
    %551 = vector.load %arg2[%c14_326, %c0_327] : memref<27x128xbf16, #tpu.memory_space<vmem>>, vector<1x128xbf16>
    %552 = vector.broadcast %551 : vector<1x128xbf16> to vector<8x128xbf16>
    %553 = arith.mulf %550, %552 : vector<8x128xbf16>
    %c112_328 = arith.constant 112 : index
    %c0_329 = arith.constant 0 : index
    %554 = vector.load %arg17[%c112_328, %c0_329] : memref<216x128xbf16, #tpu.memory_space<vmem>>, vector<8x128xbf16>
    tpu.vector_store %arg17[%c112_328, %c0_329], %553 {strides = array<i32>} : memref<216x128xbf16, #tpu.memory_space<vmem>>, vector<8x128xbf16>,
    %c125_i32_330 = arith.constant 125 : i32
    %555 = tpu.dynamic_rotate %465 by %c125_i32_330 dim 1 : vector<8x128xf32>, i32 -> vector<8x128xf32>
    %556 = arith.truncf %555 : vector<8x128xf32> to vector<8x128xbf16>
    %c15_331 = arith.constant 15 : index
    %c0_332 = arith.constant 0 : index
    %557 = vector.load %arg2[%c15_331, %c0_332] : memref<27x128xbf16, #tpu.memory_space<vmem>>, vector<1x128xbf16>
    %558 = vector.broadcast %557 : vector<1x128xbf16> to vector<8x128xbf16>
    %559 = arith.mulf %556, %558 : vector<8x128xbf16>
    %c120_333 = arith.constant 120 : index
    %c0_334 = arith.constant 0 : index
    %560 = vector.load %arg17[%c120_333, %c0_334] : memref<216x128xbf16, #tpu.memory_space<vmem>>, vector<8x128xbf16>
    tpu.vector_store %arg17[%c120_333, %c0_334], %559 {strides = array<i32>} : memref<216x128xbf16, #tpu.memory_space<vmem>>, vector<8x128xbf16>,
    %c124_i32_335 = arith.constant 124 : i32
    %561 = tpu.dynamic_rotate %465 by %c124_i32_335 dim 1 : vector<8x128xf32>, i32 -> vector<8x128xf32>
    %562 = arith.truncf %561 : vector<8x128xf32> to vector<8x128xbf16>
    %c16_336 = arith.constant 16 : index
    %c0_337 = arith.constant 0 : index
    %563 = vector.load %arg2[%c16_336, %c0_337] : memref<27x128xbf16, #tpu.memory_space<vmem>>, vector<1x128xbf16>
    %564 = vector.broadcast %563 : vector<1x128xbf16> to vector<8x128xbf16>
    %565 = arith.mulf %562, %564 : vector<8x128xbf16>
    %c128_338 = arith.constant 128 : index
    %c0_339 = arith.constant 0 : index
    %566 = vector.load %arg17[%c128_338, %c0_339] : memref<216x128xbf16, #tpu.memory_space<vmem>>, vector<8x128xbf16>
    tpu.vector_store %arg17[%c128_338, %c0_339], %565 {strides = array<i32>} : memref<216x128xbf16, #tpu.memory_space<vmem>>, vector<8x128xbf16>,
    %c123_i32_340 = arith.constant 123 : i32
    %567 = tpu.dynamic_rotate %465 by %c123_i32_340 dim 1 : vector<8x128xf32>, i32 -> vector<8x128xf32>
    %568 = arith.truncf %567 : vector<8x128xf32> to vector<8x128xbf16>
    %c17_341 = arith.constant 17 : index
    %c0_342 = arith.constant 0 : index
    %569 = vector.load %arg2[%c17_341, %c0_342] : memref<27x128xbf16, #tpu.memory_space<vmem>>, vector<1x128xbf16>
    %570 = vector.broadcast %569 : vector<1x128xbf16> to vector<8x128xbf16>
    %571 = arith.mulf %568, %570 : vector<8x128xbf16>
    %c136_343 = arith.constant 136 : index
    %c0_344 = arith.constant 0 : index
    %572 = vector.load %arg17[%c136_343, %c0_344] : memref<216x128xbf16, #tpu.memory_space<vmem>>, vector<8x128xbf16>
    tpu.vector_store %arg17[%c136_343, %c0_344], %571 {strides = array<i32>} : memref<216x128xbf16, #tpu.memory_space<vmem>>, vector<8x128xbf16>,
    %c117_i32_345 = arith.constant 117 : i32
    %573 = tpu.dynamic_rotate %465 by %c117_i32_345 dim 1 : vector<8x128xf32>, i32 -> vector<8x128xf32>
    %574 = arith.truncf %573 : vector<8x128xf32> to vector<8x128xbf16>
    %c18_346 = arith.constant 18 : index
    %c0_347 = arith.constant 0 : index
    %575 = vector.load %arg2[%c18_346, %c0_347] : memref<27x128xbf16, #tpu.memory_space<vmem>>, vector<1x128xbf16>
    %576 = vector.broadcast %575 : vector<1x128xbf16> to vector<8x128xbf16>
    %577 = arith.mulf %574, %576 : vector<8x128xbf16>
    %c144_348 = arith.constant 144 : index
    %c0_349 = arith.constant 0 : index
    %578 = vector.load %arg17[%c144_348, %c0_349] : memref<216x128xbf16, #tpu.memory_space<vmem>>, vector<8x128xbf16>
    tpu.vector_store %arg17[%c144_348, %c0_349], %577 {strides = array<i32>} : memref<216x128xbf16, #tpu.memory_space<vmem>>, vector<8x128xbf16>,
    %c116_i32_350 = arith.constant 116 : i32
    %579 = tpu.dynamic_rotate %465 by %c116_i32_350 dim 1 : vector<8x128xf32>, i32 -> vector<8x128xf32>
    %580 = arith.truncf %579 : vector<8x128xf32> to vector<8x128xbf16>
    %c19_351 = arith.constant 19 : index
    %c0_352 = arith.constant 0 : index
    %581 = vector.load %arg2[%c19_351, %c0_352] : memref<27x128xbf16, #tpu.memory_space<vmem>>, vector<1x128xbf16>
    %582 = vector.broadcast %581 : vector<1x128xbf16> to vector<8x128xbf16>
    %583 = arith.mulf %580, %582 : vector<8x128xbf16>
    %c152_353 = arith.constant 152 : index
    %c0_354 = arith.constant 0 : index
    %584 = vector.load %arg17[%c152_353, %c0_354] : memref<216x128xbf16, #tpu.memory_space<vmem>>, vector<8x128xbf16>
    tpu.vector_store %arg17[%c152_353, %c0_354], %583 {strides = array<i32>} : memref<216x128xbf16, #tpu.memory_space<vmem>>, vector<8x128xbf16>,
    %c115_i32_355 = arith.constant 115 : i32
    %585 = tpu.dynamic_rotate %465 by %c115_i32_355 dim 1 : vector<8x128xf32>, i32 -> vector<8x128xf32>
    %586 = arith.truncf %585 : vector<8x128xf32> to vector<8x128xbf16>
    %c20_356 = arith.constant 20 : index
    %c0_357 = arith.constant 0 : index
    %587 = vector.load %arg2[%c20_356, %c0_357] : memref<27x128xbf16, #tpu.memory_space<vmem>>, vector<1x128xbf16>
    %588 = vector.broadcast %587 : vector<1x128xbf16> to vector<8x128xbf16>
    %589 = arith.mulf %586, %588 : vector<8x128xbf16>
    %c160_358 = arith.constant 160 : index
    %c0_359 = arith.constant 0 : index
    %590 = vector.load %arg17[%c160_358, %c0_359] : memref<216x128xbf16, #tpu.memory_space<vmem>>, vector<8x128xbf16>
    tpu.vector_store %arg17[%c160_358, %c0_359], %589 {strides = array<i32>} : memref<216x128xbf16, #tpu.memory_space<vmem>>, vector<8x128xbf16>,
    %c113_i32_360 = arith.constant 113 : i32
    %591 = tpu.dynamic_rotate %465 by %c113_i32_360 dim 1 : vector<8x128xf32>, i32 -> vector<8x128xf32>
    %592 = arith.truncf %591 : vector<8x128xf32> to vector<8x128xbf16>
    %c21_361 = arith.constant 21 : index
    %c0_362 = arith.constant 0 : index
    %593 = vector.load %arg2[%c21_361, %c0_362] : memref<27x128xbf16, #tpu.memory_space<vmem>>, vector<1x128xbf16>
    %594 = vector.broadcast %593 : vector<1x128xbf16> to vector<8x128xbf16>
    %595 = arith.mulf %592, %594 : vector<8x128xbf16>
    %c168_363 = arith.constant 168 : index
    %c0_364 = arith.constant 0 : index
    %596 = vector.load %arg17[%c168_363, %c0_364] : memref<216x128xbf16, #tpu.memory_space<vmem>>, vector<8x128xbf16>
    tpu.vector_store %arg17[%c168_363, %c0_364], %595 {strides = array<i32>} : memref<216x128xbf16, #tpu.memory_space<vmem>>, vector<8x128xbf16>,
    %c112_i32_365 = arith.constant 112 : i32
    %597 = tpu.dynamic_rotate %465 by %c112_i32_365 dim 1 : vector<8x128xf32>, i32 -> vector<8x128xf32>
    %598 = arith.truncf %597 : vector<8x128xf32> to vector<8x128xbf16>
    %c22_366 = arith.constant 22 : index
    %c0_367 = arith.constant 0 : index
    %599 = vector.load %arg2[%c22_366, %c0_367] : memref<27x128xbf16, #tpu.memory_space<vmem>>, vector<1x128xbf16>
    %600 = vector.broadcast %599 : vector<1x128xbf16> to vector<8x128xbf16>
    %601 = arith.mulf %598, %600 : vector<8x128xbf16>
    %c176_368 = arith.constant 176 : index
    %c0_369 = arith.constant 0 : index
    %602 = vector.load %arg17[%c176_368, %c0_369] : memref<216x128xbf16, #tpu.memory_space<vmem>>, vector<8x128xbf16>
    tpu.vector_store %arg17[%c176_368, %c0_369], %601 {strides = array<i32>} : memref<216x128xbf16, #tpu.memory_space<vmem>>, vector<8x128xbf16>,
    %c111_i32_370 = arith.constant 111 : i32
    %603 = tpu.dynamic_rotate %465 by %c111_i32_370 dim 1 : vector<8x128xf32>, i32 -> vector<8x128xf32>
    %604 = arith.truncf %603 : vector<8x128xf32> to vector<8x128xbf16>
    %c23_371 = arith.constant 23 : index
    %c0_372 = arith.constant 0 : index
    %605 = vector.load %arg2[%c23_371, %c0_372] : memref<27x128xbf16, #tpu.memory_space<vmem>>, vector<1x128xbf16>
    %606 = vector.broadcast %605 : vector<1x128xbf16> to vector<8x128xbf16>
    %607 = arith.mulf %604, %606 : vector<8x128xbf16>
    %c184_373 = arith.constant 184 : index
    %c0_374 = arith.constant 0 : index
    %608 = vector.load %arg17[%c184_373, %c0_374] : memref<216x128xbf16, #tpu.memory_space<vmem>>, vector<8x128xbf16>
    tpu.vector_store %arg17[%c184_373, %c0_374], %607 {strides = array<i32>} : memref<216x128xbf16, #tpu.memory_space<vmem>>, vector<8x128xbf16>,
    %c109_i32_375 = arith.constant 109 : i32
    %609 = tpu.dynamic_rotate %465 by %c109_i32_375 dim 1 : vector<8x128xf32>, i32 -> vector<8x128xf32>
    %610 = arith.truncf %609 : vector<8x128xf32> to vector<8x128xbf16>
    %c24_376 = arith.constant 24 : index
    %c0_377 = arith.constant 0 : index
    %611 = vector.load %arg2[%c24_376, %c0_377] : memref<27x128xbf16, #tpu.memory_space<vmem>>, vector<1x128xbf16>
    %612 = vector.broadcast %611 : vector<1x128xbf16> to vector<8x128xbf16>
    %613 = arith.mulf %610, %612 : vector<8x128xbf16>
    %c192_378 = arith.constant 192 : index
    %c0_379 = arith.constant 0 : index
    %614 = vector.load %arg17[%c192_378, %c0_379] : memref<216x128xbf16, #tpu.memory_space<vmem>>, vector<8x128xbf16>
    tpu.vector_store %arg17[%c192_378, %c0_379], %613 {strides = array<i32>} : memref<216x128xbf16, #tpu.memory_space<vmem>>, vector<8x128xbf16>,
    %c108_i32_380 = arith.constant 108 : i32
    %615 = tpu.dynamic_rotate %465 by %c108_i32_380 dim 1 : vector<8x128xf32>, i32 -> vector<8x128xf32>
    %616 = arith.truncf %615 : vector<8x128xf32> to vector<8x128xbf16>
    %c25_381 = arith.constant 25 : index
    %c0_382 = arith.constant 0 : index
    %617 = vector.load %arg2[%c25_381, %c0_382] : memref<27x128xbf16, #tpu.memory_space<vmem>>, vector<1x128xbf16>
    %618 = vector.broadcast %617 : vector<1x128xbf16> to vector<8x128xbf16>
    %619 = arith.mulf %616, %618 : vector<8x128xbf16>
    %c200_383 = arith.constant 200 : index
    %c0_384 = arith.constant 0 : index
    %620 = vector.load %arg17[%c200_383, %c0_384] : memref<216x128xbf16, #tpu.memory_space<vmem>>, vector<8x128xbf16>
    tpu.vector_store %arg17[%c200_383, %c0_384], %619 {strides = array<i32>} : memref<216x128xbf16, #tpu.memory_space<vmem>>, vector<8x128xbf16>,
    %c107_i32_385 = arith.constant 107 : i32
    %621 = tpu.dynamic_rotate %465 by %c107_i32_385 dim 1 : vector<8x128xf32>, i32 -> vector<8x128xf32>
    %622 = arith.truncf %621 : vector<8x128xf32> to vector<8x128xbf16>
    %c26_386 = arith.constant 26 : index
    %c0_387 = arith.constant 0 : index
    %623 = vector.load %arg2[%c26_386, %c0_387] : memref<27x128xbf16, #tpu.memory_space<vmem>>, vector<1x128xbf16>
    %624 = vector.broadcast %623 : vector<1x128xbf16> to vector<8x128xbf16>
    %625 = arith.mulf %622, %624 : vector<8x128xbf16>
    %c208_388 = arith.constant 208 : index
    %c0_389 = arith.constant 0 : index
    %626 = vector.load %arg17[%c208_388, %c0_389] : memref<216x128xbf16, #tpu.memory_space<vmem>>, vector<8x128xbf16>
    tpu.vector_store %arg17[%c208_388, %c0_389], %625 {strides = array<i32>} : memref<216x128xbf16, #tpu.memory_space<vmem>>, vector<8x128xbf16>,
    %c0_390 = arith.constant 0 : index
    %c0_391 = arith.constant 0 : index
    %627 = vector.load %arg10[%c0_390, %c0_391] : memref<8x216xbf16, #tpu.memory_space<vmem>>, vector<8x216xbf16>
    %c0_392 = arith.constant 0 : index
    %c0_393 = arith.constant 0 : index
    %628 = vector.load %arg17[%c0_392, %c0_393] : memref<216x128xbf16, #tpu.memory_space<vmem>>, vector<216x128xbf16>
    %cst_394 = arith.constant dense<0.000000e+00> : vector<8x128xf32>
    %629 = tpu.matmul %627, %628, %cst_394 {dimension_numbers = #tpu.dot_dimension_numbers<[1], [0], [0], [1], [0, 0, 1, 1], [], []>} : vector<8x216xbf16>, vector<216x128xbf16>, vector<8x128xf32> -> vector<8x128xf32>
    %cst_395 = arith.constant dense<0.000000e+00> : vector<8xf32>
    %630 = vector.multi_reduction <add>, %629, %cst_395 [1] : vector<8x128xf32> to vector<8xf32>
    %631 = vector.shape_cast %630 : vector<8xf32> to vector<8x1xf32>
    %632 = arith.mulf %629, %629 : vector<8x128xf32>
    %cst_396 = arith.constant dense<0.000000e+00> : vector<8xf32>
    %633 = vector.multi_reduction <add>, %632, %cst_396 [1] : vector<8x128xf32> to vector<8xf32>
    %634 = vector.shape_cast %633 : vector<8xf32> to vector<8x1xf32>
    %cst_397 = arith.constant 1.562500e-02 : f32
    %635 = vector.broadcast %cst_397 : f32 to vector<8x1xf32>
    %636 = arith.mulf %631, %635 : vector<8x1xf32>
    %cst_398 = arith.constant 1.562500e-02 : f32
    %637 = vector.broadcast %cst_398 : f32 to vector<8x1xf32>
    %638 = arith.mulf %634, %637 : vector<8x1xf32>
    %639 = arith.mulf %636, %636 : vector<8x1xf32>
    %640 = arith.subf %638, %639 : vector<8x1xf32>
    %cst_399 = arith.constant 0.000000e+00 : f32
    %641 = vector.broadcast %cst_399 : f32 to vector<8x1xf32>
    %642 = arith.maximumf %640, %641 : vector<8x1xf32>
    %643 = vector.broadcast %636 : vector<8x1xf32> to vector<8x128xf32>
    %644 = arith.subf %629, %643 : vector<8x128xf32>
    %cst_400 = arith.constant 9.99999974E-6 : f32
    %645 = vector.broadcast %cst_400 : f32 to vector<8x1xf32>
    %646 = arith.addf %642, %645 : vector<8x1xf32>
    %647 = math.rsqrt %646 : vector<8x1xf32>
    %648 = vector.broadcast %647 : vector<8x1xf32> to vector<8x128xf32>
    %649 = arith.mulf %644, %648 : vector<8x128xf32>
    %c0_401 = arith.constant 0 : index
    %c0_402 = arith.constant 0 : index
    %650 = vector.load %arg11[%c0_401, %c0_402] : memref<8x1xf32, #tpu.memory_space<vmem>>, vector<8x1xf32>
    %651 = vector.broadcast %650 : vector<8x1xf32> to vector<8x128xf32>
    %652 = arith.mulf %649, %651 : vector<8x128xf32>
    %c0_403 = arith.constant 0 : index
    %c0_404 = arith.constant 0 : index
    %653 = vector.load %arg12[%c0_403, %c0_404] : memref<8x1xf32, #tpu.memory_space<vmem>>, vector<8x1xf32>
    %654 = vector.broadcast %653 : vector<8x1xf32> to vector<8x128xf32>
    %655 = arith.addf %652, %654 : vector<8x128xf32>
    %cst_405 = arith.constant 5.000000e-01 : f32
    %656 = vector.broadcast %cst_405 : f32 to vector<8x128xf32>
    %657 = arith.mulf %656, %655 : vector<8x128xf32>
    %cst_406 = arith.constant 0.707106769 : f32
    %658 = vector.broadcast %cst_406 : f32 to vector<8x128xf32>
    %659 = arith.mulf %655, %658 : vector<8x128xf32>
    %cst_407 = arith.constant 0.000000e+00 : f32
    %660 = vector.broadcast %cst_407 : f32 to vector<8x128xf32>
    %661 = arith.cmpf olt, %659, %660 : vector<8x128xf32>
    %cst_408 = arith.constant -1.000000e+00 : f32
    %cst_409 = arith.constant 1.000000e+00 : f32
    %662 = vector.broadcast %cst_408 : f32 to vector<8x128xf32>
    %663 = vector.broadcast %cst_409 : f32 to vector<8x128xf32>
    %664 = arith.select %661, %662, %663 : vector<8x128xi1>, vector<8x128xf32>
    %665 = math.absf %659 : vector<8x128xf32>
    %cst_410 = arith.constant 0.327591091 : f32
    %666 = vector.broadcast %cst_410 : f32 to vector<8x128xf32>
    %667 = arith.mulf %666, %665 : vector<8x128xf32>
    %cst_411 = arith.constant 1.000000e+00 : f32
    %668 = vector.broadcast %cst_411 : f32 to vector<8x128xf32>
    %669 = arith.addf %668, %667 : vector<8x128xf32>
    %cst_412 = arith.constant 1.000000e+00 : f32
    %670 = vector.broadcast %cst_412 : f32 to vector<8x128xf32>
    %671 = arith.divf %670, %669 : vector<8x128xf32>
    %cst_413 = arith.constant 1.06140542 : f32
    %672 = vector.broadcast %cst_413 : f32 to vector<8x128xf32>
    %673 = arith.mulf %671, %672 : vector<8x128xf32>
    %cst_414 = arith.constant -1.45315206 : f32
    %674 = vector.broadcast %cst_414 : f32 to vector<8x128xf32>
    %675 = arith.addf %674, %673 : vector<8x128xf32>
    %676 = arith.mulf %671, %675 : vector<8x128xf32>
    %cst_415 = arith.constant 1.42141378 : f32
    %677 = vector.broadcast %cst_415 : f32 to vector<8x128xf32>
    %678 = arith.addf %677, %676 : vector<8x128xf32>
    %679 = arith.mulf %671, %678 : vector<8x128xf32>
    %cst_416 = arith.constant -0.284496725 : f32
    %680 = vector.broadcast %cst_416 : f32 to vector<8x128xf32>
    %681 = arith.addf %680, %679 : vector<8x128xf32>
    %682 = arith.mulf %671, %681 : vector<8x128xf32>
    %cst_417 = arith.constant 0.254829586 : f32
    %683 = vector.broadcast %cst_417 : f32 to vector<8x128xf32>
    %684 = arith.addf %683, %682 : vector<8x128xf32>
    %685 = arith.mulf %671, %684 : vector<8x128xf32>
    %cst_418 = arith.constant 0.000000e+00 : f32
    %686 = vector.broadcast %cst_418 : f32 to vector<8x128xf32>
    %687 = arith.subf %686, %665 : vector<8x128xf32>
    %688 = arith.mulf %687, %665 : vector<8x128xf32>
    %689 = math.exp %688 : vector<8x128xf32>
    %690 = arith.mulf %685, %689 : vector<8x128xf32>
    %cst_419 = arith.constant 1.000000e+00 : f32
    %691 = vector.broadcast %cst_419 : f32 to vector<8x128xf32>
    %692 = arith.subf %691, %690 : vector<8x128xf32>
    %693 = arith.mulf %664, %692 : vector<8x128xf32>
    %cst_420 = arith.constant 1.000000e+00 : f32
    %694 = vector.broadcast %cst_420 : f32 to vector<8x128xf32>
    %695 = arith.addf %694, %693 : vector<8x128xf32>
    %696 = arith.mulf %657, %695 : vector<8x128xf32>
    %c21_i32_421 = arith.constant 21 : i32
    %697 = tpu.dynamic_rotate %696 by %c21_i32_421 dim 1 : vector<8x128xf32>, i32 -> vector<8x128xf32>
    %698 = arith.truncf %697 : vector<8x128xf32> to vector<8x128xbf16>
    %c0_422 = arith.constant 0 : index
    %c0_423 = arith.constant 0 : index
    %699 = vector.load %arg2[%c0_422, %c0_423] : memref<27x128xbf16, #tpu.memory_space<vmem>>, vector<1x128xbf16>
    %700 = vector.broadcast %699 : vector<1x128xbf16> to vector<8x128xbf16>
    %701 = arith.mulf %698, %700 : vector<8x128xbf16>
    %c0_424 = arith.constant 0 : index
    %c0_425 = arith.constant 0 : index
    %702 = vector.load %arg17[%c0_424, %c0_425] : memref<216x128xbf16, #tpu.memory_space<vmem>>, vector<8x128xbf16>
    tpu.vector_store %arg17[%c0_424, %c0_425], %701 {strides = array<i32>} : memref<216x128xbf16, #tpu.memory_space<vmem>>, vector<8x128xbf16>,
    %c20_i32_426 = arith.constant 20 : i32
    %703 = tpu.dynamic_rotate %696 by %c20_i32_426 dim 1 : vector<8x128xf32>, i32 -> vector<8x128xf32>
    %704 = arith.truncf %703 : vector<8x128xf32> to vector<8x128xbf16>
    %c1_427 = arith.constant 1 : index
    %c0_428 = arith.constant 0 : index
    %705 = vector.load %arg2[%c1_427, %c0_428] : memref<27x128xbf16, #tpu.memory_space<vmem>>, vector<1x128xbf16>
    %706 = vector.broadcast %705 : vector<1x128xbf16> to vector<8x128xbf16>
    %707 = arith.mulf %704, %706 : vector<8x128xbf16>
    %c8_429 = arith.constant 8 : index
    %c0_430 = arith.constant 0 : index
    %708 = vector.load %arg17[%c8_429, %c0_430] : memref<216x128xbf16, #tpu.memory_space<vmem>>, vector<8x128xbf16>
    tpu.vector_store %arg17[%c8_429, %c0_430], %707 {strides = array<i32>} : memref<216x128xbf16, #tpu.memory_space<vmem>>, vector<8x128xbf16>,
    %c19_i32_431 = arith.constant 19 : i32
    %709 = tpu.dynamic_rotate %696 by %c19_i32_431 dim 1 : vector<8x128xf32>, i32 -> vector<8x128xf32>
    %710 = arith.truncf %709 : vector<8x128xf32> to vector<8x128xbf16>
    %c2_432 = arith.constant 2 : index
    %c0_433 = arith.constant 0 : index
    %711 = vector.load %arg2[%c2_432, %c0_433] : memref<27x128xbf16, #tpu.memory_space<vmem>>, vector<1x128xbf16>
    %712 = vector.broadcast %711 : vector<1x128xbf16> to vector<8x128xbf16>
    %713 = arith.mulf %710, %712 : vector<8x128xbf16>
    %c16_434 = arith.constant 16 : index
    %c0_435 = arith.constant 0 : index
    %714 = vector.load %arg17[%c16_434, %c0_435] : memref<216x128xbf16, #tpu.memory_space<vmem>>, vector<8x128xbf16>
    tpu.vector_store %arg17[%c16_434, %c0_435], %713 {strides = array<i32>} : memref<216x128xbf16, #tpu.memory_space<vmem>>, vector<8x128xbf16>,
    %c17_i32_436 = arith.constant 17 : i32
    %715 = tpu.dynamic_rotate %696 by %c17_i32_436 dim 1 : vector<8x128xf32>, i32 -> vector<8x128xf32>
    %716 = arith.truncf %715 : vector<8x128xf32> to vector<8x128xbf16>
    %c3_437 = arith.constant 3 : index
    %c0_438 = arith.constant 0 : index
    %717 = vector.load %arg2[%c3_437, %c0_438] : memref<27x128xbf16, #tpu.memory_space<vmem>>, vector<1x128xbf16>
    %718 = vector.broadcast %717 : vector<1x128xbf16> to vector<8x128xbf16>
    %719 = arith.mulf %716, %718 : vector<8x128xbf16>
    %c24_439 = arith.constant 24 : index
    %c0_440 = arith.constant 0 : index
    %720 = vector.load %arg17[%c24_439, %c0_440] : memref<216x128xbf16, #tpu.memory_space<vmem>>, vector<8x128xbf16>
    tpu.vector_store %arg17[%c24_439, %c0_440], %719 {strides = array<i32>} : memref<216x128xbf16, #tpu.memory_space<vmem>>, vector<8x128xbf16>,
    %c16_i32_441 = arith.constant 16 : i32
    %721 = tpu.dynamic_rotate %696 by %c16_i32_441 dim 1 : vector<8x128xf32>, i32 -> vector<8x128xf32>
    %722 = arith.truncf %721 : vector<8x128xf32> to vector<8x128xbf16>
    %c4_442 = arith.constant 4 : index
    %c0_443 = arith.constant 0 : index
    %723 = vector.load %arg2[%c4_442, %c0_443] : memref<27x128xbf16, #tpu.memory_space<vmem>>, vector<1x128xbf16>
    %724 = vector.broadcast %723 : vector<1x128xbf16> to vector<8x128xbf16>
    %725 = arith.mulf %722, %724 : vector<8x128xbf16>
    %c32_444 = arith.constant 32 : index
    %c0_445 = arith.constant 0 : index
    %726 = vector.load %arg17[%c32_444, %c0_445] : memref<216x128xbf16, #tpu.memory_space<vmem>>, vector<8x128xbf16>
    tpu.vector_store %arg17[%c32_444, %c0_445], %725 {strides = array<i32>} : memref<216x128xbf16, #tpu.memory_space<vmem>>, vector<8x128xbf16>,
    %c15_i32_446 = arith.constant 15 : i32
    %727 = tpu.dynamic_rotate %696 by %c15_i32_446 dim 1 : vector<8x128xf32>, i32 -> vector<8x128xf32>
    %728 = arith.truncf %727 : vector<8x128xf32> to vector<8x128xbf16>
    %c5_447 = arith.constant 5 : index
    %c0_448 = arith.constant 0 : index
    %729 = vector.load %arg2[%c5_447, %c0_448] : memref<27x128xbf16, #tpu.memory_space<vmem>>, vector<1x128xbf16>
    %730 = vector.broadcast %729 : vector<1x128xbf16> to vector<8x128xbf16>
    %731 = arith.mulf %728, %730 : vector<8x128xbf16>
    %c40_449 = arith.constant 40 : index
    %c0_450 = arith.constant 0 : index
    %732 = vector.load %arg17[%c40_449, %c0_450] : memref<216x128xbf16, #tpu.memory_space<vmem>>, vector<8x128xbf16>
    tpu.vector_store %arg17[%c40_449, %c0_450], %731 {strides = array<i32>} : memref<216x128xbf16, #tpu.memory_space<vmem>>, vector<8x128xbf16>,
    %c13_i32_451 = arith.constant 13 : i32
    %733 = tpu.dynamic_rotate %696 by %c13_i32_451 dim 1 : vector<8x128xf32>, i32 -> vector<8x128xf32>
    %734 = arith.truncf %733 : vector<8x128xf32> to vector<8x128xbf16>
    %c6_452 = arith.constant 6 : index
    %c0_453 = arith.constant 0 : index
    %735 = vector.load %arg2[%c6_452, %c0_453] : memref<27x128xbf16, #tpu.memory_space<vmem>>, vector<1x128xbf16>
    %736 = vector.broadcast %735 : vector<1x128xbf16> to vector<8x128xbf16>
    %737 = arith.mulf %734, %736 : vector<8x128xbf16>
    %c48_454 = arith.constant 48 : index
    %c0_455 = arith.constant 0 : index
    %738 = vector.load %arg17[%c48_454, %c0_455] : memref<216x128xbf16, #tpu.memory_space<vmem>>, vector<8x128xbf16>
    tpu.vector_store %arg17[%c48_454, %c0_455], %737 {strides = array<i32>} : memref<216x128xbf16, #tpu.memory_space<vmem>>, vector<8x128xbf16>,
    %c12_i32_456 = arith.constant 12 : i32
    %739 = tpu.dynamic_rotate %696 by %c12_i32_456 dim 1 : vector<8x128xf32>, i32 -> vector<8x128xf32>
    %740 = arith.truncf %739 : vector<8x128xf32> to vector<8x128xbf16>
    %c7_457 = arith.constant 7 : index
    %c0_458 = arith.constant 0 : index
    %741 = vector.load %arg2[%c7_457, %c0_458] : memref<27x128xbf16, #tpu.memory_space<vmem>>, vector<1x128xbf16>
    %742 = vector.broadcast %741 : vector<1x128xbf16> to vector<8x128xbf16>
    %743 = arith.mulf %740, %742 : vector<8x128xbf16>
    %c56_459 = arith.constant 56 : index
    %c0_460 = arith.constant 0 : index
    %744 = vector.load %arg17[%c56_459, %c0_460] : memref<216x128xbf16, #tpu.memory_space<vmem>>, vector<8x128xbf16>
    tpu.vector_store %arg17[%c56_459, %c0_460], %743 {strides = array<i32>} : memref<216x128xbf16, #tpu.memory_space<vmem>>, vector<8x128xbf16>,
    %c11_i32_461 = arith.constant 11 : i32
    %745 = tpu.dynamic_rotate %696 by %c11_i32_461 dim 1 : vector<8x128xf32>, i32 -> vector<8x128xf32>
    %746 = arith.truncf %745 : vector<8x128xf32> to vector<8x128xbf16>
    %c8_462 = arith.constant 8 : index
    %c0_463 = arith.constant 0 : index
    %747 = vector.load %arg2[%c8_462, %c0_463] : memref<27x128xbf16, #tpu.memory_space<vmem>>, vector<1x128xbf16>
    %748 = vector.broadcast %747 : vector<1x128xbf16> to vector<8x128xbf16>
    %749 = arith.mulf %746, %748 : vector<8x128xbf16>
    %c64_464 = arith.constant 64 : index
    %c0_465 = arith.constant 0 : index
    %750 = vector.load %arg17[%c64_464, %c0_465] : memref<216x128xbf16, #tpu.memory_space<vmem>>, vector<8x128xbf16>
    tpu.vector_store %arg17[%c64_464, %c0_465], %749 {strides = array<i32>} : memref<216x128xbf16, #tpu.memory_space<vmem>>, vector<8x128xbf16>,
    %c5_i32_466 = arith.constant 5 : i32
    %751 = tpu.dynamic_rotate %696 by %c5_i32_466 dim 1 : vector<8x128xf32>, i32 -> vector<8x128xf32>
    %752 = arith.truncf %751 : vector<8x128xf32> to vector<8x128xbf16>
    %c9_467 = arith.constant 9 : index
    %c0_468 = arith.constant 0 : index
    %753 = vector.load %arg2[%c9_467, %c0_468] : memref<27x128xbf16, #tpu.memory_space<vmem>>, vector<1x128xbf16>
    %754 = vector.broadcast %753 : vector<1x128xbf16> to vector<8x128xbf16>
    %755 = arith.mulf %752, %754 : vector<8x128xbf16>
    %c72_469 = arith.constant 72 : index
    %c0_470 = arith.constant 0 : index
    %756 = vector.load %arg17[%c72_469, %c0_470] : memref<216x128xbf16, #tpu.memory_space<vmem>>, vector<8x128xbf16>
    tpu.vector_store %arg17[%c72_469, %c0_470], %755 {strides = array<i32>} : memref<216x128xbf16, #tpu.memory_space<vmem>>, vector<8x128xbf16>,
    %c4_i32_471 = arith.constant 4 : i32
    %757 = tpu.dynamic_rotate %696 by %c4_i32_471 dim 1 : vector<8x128xf32>, i32 -> vector<8x128xf32>
    %758 = arith.truncf %757 : vector<8x128xf32> to vector<8x128xbf16>
    %c10_472 = arith.constant 10 : index
    %c0_473 = arith.constant 0 : index
    %759 = vector.load %arg2[%c10_472, %c0_473] : memref<27x128xbf16, #tpu.memory_space<vmem>>, vector<1x128xbf16>
    %760 = vector.broadcast %759 : vector<1x128xbf16> to vector<8x128xbf16>
    %761 = arith.mulf %758, %760 : vector<8x128xbf16>
    %c80_474 = arith.constant 80 : index
    %c0_475 = arith.constant 0 : index
    %762 = vector.load %arg17[%c80_474, %c0_475] : memref<216x128xbf16, #tpu.memory_space<vmem>>, vector<8x128xbf16>
    tpu.vector_store %arg17[%c80_474, %c0_475], %761 {strides = array<i32>} : memref<216x128xbf16, #tpu.memory_space<vmem>>, vector<8x128xbf16>,
    %c3_i32_476 = arith.constant 3 : i32
    %763 = tpu.dynamic_rotate %696 by %c3_i32_476 dim 1 : vector<8x128xf32>, i32 -> vector<8x128xf32>
    %764 = arith.truncf %763 : vector<8x128xf32> to vector<8x128xbf16>
    %c11_477 = arith.constant 11 : index
    %c0_478 = arith.constant 0 : index
    %765 = vector.load %arg2[%c11_477, %c0_478] : memref<27x128xbf16, #tpu.memory_space<vmem>>, vector<1x128xbf16>
    %766 = vector.broadcast %765 : vector<1x128xbf16> to vector<8x128xbf16>
    %767 = arith.mulf %764, %766 : vector<8x128xbf16>
    %c88_479 = arith.constant 88 : index
    %c0_480 = arith.constant 0 : index
    %768 = vector.load %arg17[%c88_479, %c0_480] : memref<216x128xbf16, #tpu.memory_space<vmem>>, vector<8x128xbf16>
    tpu.vector_store %arg17[%c88_479, %c0_480], %767 {strides = array<i32>} : memref<216x128xbf16, #tpu.memory_space<vmem>>, vector<8x128xbf16>,
    %c1_i32_481 = arith.constant 1 : i32
    %769 = tpu.dynamic_rotate %696 by %c1_i32_481 dim 1 : vector<8x128xf32>, i32 -> vector<8x128xf32>
    %770 = arith.truncf %769 : vector<8x128xf32> to vector<8x128xbf16>
    %c12_482 = arith.constant 12 : index
    %c0_483 = arith.constant 0 : index
    %771 = vector.load %arg2[%c12_482, %c0_483] : memref<27x128xbf16, #tpu.memory_space<vmem>>, vector<1x128xbf16>
    %772 = vector.broadcast %771 : vector<1x128xbf16> to vector<8x128xbf16>
    %773 = arith.mulf %770, %772 : vector<8x128xbf16>
    %c96_484 = arith.constant 96 : index
    %c0_485 = arith.constant 0 : index
    %774 = vector.load %arg17[%c96_484, %c0_485] : memref<216x128xbf16, #tpu.memory_space<vmem>>, vector<8x128xbf16>
    tpu.vector_store %arg17[%c96_484, %c0_485], %773 {strides = array<i32>} : memref<216x128xbf16, #tpu.memory_space<vmem>>, vector<8x128xbf16>,
    %775 = arith.truncf %696 : vector<8x128xf32> to vector<8x128xbf16>
    %c13_486 = arith.constant 13 : index
    %c0_487 = arith.constant 0 : index
    %776 = vector.load %arg2[%c13_486, %c0_487] : memref<27x128xbf16, #tpu.memory_space<vmem>>, vector<1x128xbf16>
    %777 = vector.broadcast %776 : vector<1x128xbf16> to vector<8x128xbf16>
    %778 = arith.mulf %775, %777 : vector<8x128xbf16>
    %c104_488 = arith.constant 104 : index
    %c0_489 = arith.constant 0 : index
    %779 = vector.load %arg17[%c104_488, %c0_489] : memref<216x128xbf16, #tpu.memory_space<vmem>>, vector<8x128xbf16>
    tpu.vector_store %arg17[%c104_488, %c0_489], %778 {strides = array<i32>} : memref<216x128xbf16, #tpu.memory_space<vmem>>, vector<8x128xbf16>,
    %c127_i32_490 = arith.constant 127 : i32
    %780 = tpu.dynamic_rotate %696 by %c127_i32_490 dim 1 : vector<8x128xf32>, i32 -> vector<8x128xf32>
    %781 = arith.truncf %780 : vector<8x128xf32> to vector<8x128xbf16>
    %c14_491 = arith.constant 14 : index
    %c0_492 = arith.constant 0 : index
    %782 = vector.load %arg2[%c14_491, %c0_492] : memref<27x128xbf16, #tpu.memory_space<vmem>>, vector<1x128xbf16>
    %783 = vector.broadcast %782 : vector<1x128xbf16> to vector<8x128xbf16>
    %784 = arith.mulf %781, %783 : vector<8x128xbf16>
    %c112_493 = arith.constant 112 : index
    %c0_494 = arith.constant 0 : index
    %785 = vector.load %arg17[%c112_493, %c0_494] : memref<216x128xbf16, #tpu.memory_space<vmem>>, vector<8x128xbf16>
    tpu.vector_store %arg17[%c112_493, %c0_494], %784 {strides = array<i32>} : memref<216x128xbf16, #tpu.memory_space<vmem>>, vector<8x128xbf16>,
    %c125_i32_495 = arith.constant 125 : i32
    %786 = tpu.dynamic_rotate %696 by %c125_i32_495 dim 1 : vector<8x128xf32>, i32 -> vector<8x128xf32>
    %787 = arith.truncf %786 : vector<8x128xf32> to vector<8x128xbf16>
    %c15_496 = arith.constant 15 : index
    %c0_497 = arith.constant 0 : index
    %788 = vector.load %arg2[%c15_496, %c0_497] : memref<27x128xbf16, #tpu.memory_space<vmem>>, vector<1x128xbf16>
    %789 = vector.broadcast %788 : vector<1x128xbf16> to vector<8x128xbf16>
    %790 = arith.mulf %787, %789 : vector<8x128xbf16>
    %c120_498 = arith.constant 120 : index
    %c0_499 = arith.constant 0 : index
    %791 = vector.load %arg17[%c120_498, %c0_499] : memref<216x128xbf16, #tpu.memory_space<vmem>>, vector<8x128xbf16>
    tpu.vector_store %arg17[%c120_498, %c0_499], %790 {strides = array<i32>} : memref<216x128xbf16, #tpu.memory_space<vmem>>, vector<8x128xbf16>,
    %c124_i32_500 = arith.constant 124 : i32
    %792 = tpu.dynamic_rotate %696 by %c124_i32_500 dim 1 : vector<8x128xf32>, i32 -> vector<8x128xf32>
    %793 = arith.truncf %792 : vector<8x128xf32> to vector<8x128xbf16>
    %c16_501 = arith.constant 16 : index
    %c0_502 = arith.constant 0 : index
    %794 = vector.load %arg2[%c16_501, %c0_502] : memref<27x128xbf16, #tpu.memory_space<vmem>>, vector<1x128xbf16>
    %795 = vector.broadcast %794 : vector<1x128xbf16> to vector<8x128xbf16>
    %796 = arith.mulf %793, %795 : vector<8x128xbf16>
    %c128_503 = arith.constant 128 : index
    %c0_504 = arith.constant 0 : index
    %797 = vector.load %arg17[%c128_503, %c0_504] : memref<216x128xbf16, #tpu.memory_space<vmem>>, vector<8x128xbf16>
    tpu.vector_store %arg17[%c128_503, %c0_504], %796 {strides = array<i32>} : memref<216x128xbf16, #tpu.memory_space<vmem>>, vector<8x128xbf16>,
    %c123_i32_505 = arith.constant 123 : i32
    %798 = tpu.dynamic_rotate %696 by %c123_i32_505 dim 1 : vector<8x128xf32>, i32 -> vector<8x128xf32>
    %799 = arith.truncf %798 : vector<8x128xf32> to vector<8x128xbf16>
    %c17_506 = arith.constant 17 : index
    %c0_507 = arith.constant 0 : index
    %800 = vector.load %arg2[%c17_506, %c0_507] : memref<27x128xbf16, #tpu.memory_space<vmem>>, vector<1x128xbf16>
    %801 = vector.broadcast %800 : vector<1x128xbf16> to vector<8x128xbf16>
    %802 = arith.mulf %799, %801 : vector<8x128xbf16>
    %c136_508 = arith.constant 136 : index
    %c0_509 = arith.constant 0 : index
    %803 = vector.load %arg17[%c136_508, %c0_509] : memref<216x128xbf16, #tpu.memory_space<vmem>>, vector<8x128xbf16>
    tpu.vector_store %arg17[%c136_508, %c0_509], %802 {strides = array<i32>} : memref<216x128xbf16, #tpu.memory_space<vmem>>, vector<8x128xbf16>,
    %c117_i32_510 = arith.constant 117 : i32
    %804 = tpu.dynamic_rotate %696 by %c117_i32_510 dim 1 : vector<8x128xf32>, i32 -> vector<8x128xf32>
    %805 = arith.truncf %804 : vector<8x128xf32> to vector<8x128xbf16>
    %c18_511 = arith.constant 18 : index
    %c0_512 = arith.constant 0 : index
    %806 = vector.load %arg2[%c18_511, %c0_512] : memref<27x128xbf16, #tpu.memory_space<vmem>>, vector<1x128xbf16>
    %807 = vector.broadcast %806 : vector<1x128xbf16> to vector<8x128xbf16>
    %808 = arith.mulf %805, %807 : vector<8x128xbf16>
    %c144_513 = arith.constant 144 : index
    %c0_514 = arith.constant 0 : index
    %809 = vector.load %arg17[%c144_513, %c0_514] : memref<216x128xbf16, #tpu.memory_space<vmem>>, vector<8x128xbf16>
    tpu.vector_store %arg17[%c144_513, %c0_514], %808 {strides = array<i32>} : memref<216x128xbf16, #tpu.memory_space<vmem>>, vector<8x128xbf16>,
    %c116_i32_515 = arith.constant 116 : i32
    %810 = tpu.dynamic_rotate %696 by %c116_i32_515 dim 1 : vector<8x128xf32>, i32 -> vector<8x128xf32>
    %811 = arith.truncf %810 : vector<8x128xf32> to vector<8x128xbf16>
    %c19_516 = arith.constant 19 : index
    %c0_517 = arith.constant 0 : index
    %812 = vector.load %arg2[%c19_516, %c0_517] : memref<27x128xbf16, #tpu.memory_space<vmem>>, vector<1x128xbf16>
    %813 = vector.broadcast %812 : vector<1x128xbf16> to vector<8x128xbf16>
    %814 = arith.mulf %811, %813 : vector<8x128xbf16>
    %c152_518 = arith.constant 152 : index
    %c0_519 = arith.constant 0 : index
    %815 = vector.load %arg17[%c152_518, %c0_519] : memref<216x128xbf16, #tpu.memory_space<vmem>>, vector<8x128xbf16>
    tpu.vector_store %arg17[%c152_518, %c0_519], %814 {strides = array<i32>} : memref<216x128xbf16, #tpu.memory_space<vmem>>, vector<8x128xbf16>,
    %c115_i32_520 = arith.constant 115 : i32
    %816 = tpu.dynamic_rotate %696 by %c115_i32_520 dim 1 : vector<8x128xf32>, i32 -> vector<8x128xf32>
    %817 = arith.truncf %816 : vector<8x128xf32> to vector<8x128xbf16>
    %c20_521 = arith.constant 20 : index
    %c0_522 = arith.constant 0 : index
    %818 = vector.load %arg2[%c20_521, %c0_522] : memref<27x128xbf16, #tpu.memory_space<vmem>>, vector<1x128xbf16>
    %819 = vector.broadcast %818 : vector<1x128xbf16> to vector<8x128xbf16>
    %820 = arith.mulf %817, %819 : vector<8x128xbf16>
    %c160_523 = arith.constant 160 : index
    %c0_524 = arith.constant 0 : index
    %821 = vector.load %arg17[%c160_523, %c0_524] : memref<216x128xbf16, #tpu.memory_space<vmem>>, vector<8x128xbf16>
    tpu.vector_store %arg17[%c160_523, %c0_524], %820 {strides = array<i32>} : memref<216x128xbf16, #tpu.memory_space<vmem>>, vector<8x128xbf16>,
    %c113_i32_525 = arith.constant 113 : i32
    %822 = tpu.dynamic_rotate %696 by %c113_i32_525 dim 1 : vector<8x128xf32>, i32 -> vector<8x128xf32>
    %823 = arith.truncf %822 : vector<8x128xf32> to vector<8x128xbf16>
    %c21_526 = arith.constant 21 : index
    %c0_527 = arith.constant 0 : index
    %824 = vector.load %arg2[%c21_526, %c0_527] : memref<27x128xbf16, #tpu.memory_space<vmem>>, vector<1x128xbf16>
    %825 = vector.broadcast %824 : vector<1x128xbf16> to vector<8x128xbf16>
    %826 = arith.mulf %823, %825 : vector<8x128xbf16>
    %c168_528 = arith.constant 168 : index
    %c0_529 = arith.constant 0 : index
    %827 = vector.load %arg17[%c168_528, %c0_529] : memref<216x128xbf16, #tpu.memory_space<vmem>>, vector<8x128xbf16>
    tpu.vector_store %arg17[%c168_528, %c0_529], %826 {strides = array<i32>} : memref<216x128xbf16, #tpu.memory_space<vmem>>, vector<8x128xbf16>,
    %c112_i32_530 = arith.constant 112 : i32
    %828 = tpu.dynamic_rotate %696 by %c112_i32_530 dim 1 : vector<8x128xf32>, i32 -> vector<8x128xf32>
    %829 = arith.truncf %828 : vector<8x128xf32> to vector<8x128xbf16>
    %c22_531 = arith.constant 22 : index
    %c0_532 = arith.constant 0 : index
    %830 = vector.load %arg2[%c22_531, %c0_532] : memref<27x128xbf16, #tpu.memory_space<vmem>>, vector<1x128xbf16>
    %831 = vector.broadcast %830 : vector<1x128xbf16> to vector<8x128xbf16>
    %832 = arith.mulf %829, %831 : vector<8x128xbf16>
    %c176_533 = arith.constant 176 : index
    %c0_534 = arith.constant 0 : index
    %833 = vector.load %arg17[%c176_533, %c0_534] : memref<216x128xbf16, #tpu.memory_space<vmem>>, vector<8x128xbf16>
    tpu.vector_store %arg17[%c176_533, %c0_534], %832 {strides = array<i32>} : memref<216x128xbf16, #tpu.memory_space<vmem>>, vector<8x128xbf16>,
    %c111_i32_535 = arith.constant 111 : i32
    %834 = tpu.dynamic_rotate %696 by %c111_i32_535 dim 1 : vector<8x128xf32>, i32 -> vector<8x128xf32>
    %835 = arith.truncf %834 : vector<8x128xf32> to vector<8x128xbf16>
    %c23_536 = arith.constant 23 : index
    %c0_537 = arith.constant 0 : index
    %836 = vector.load %arg2[%c23_536, %c0_537] : memref<27x128xbf16, #tpu.memory_space<vmem>>, vector<1x128xbf16>
    %837 = vector.broadcast %836 : vector<1x128xbf16> to vector<8x128xbf16>
    %838 = arith.mulf %835, %837 : vector<8x128xbf16>
    %c184_538 = arith.constant 184 : index
    %c0_539 = arith.constant 0 : index
    %839 = vector.load %arg17[%c184_538, %c0_539] : memref<216x128xbf16, #tpu.memory_space<vmem>>, vector<8x128xbf16>
    tpu.vector_store %arg17[%c184_538, %c0_539], %838 {strides = array<i32>} : memref<216x128xbf16, #tpu.memory_space<vmem>>, vector<8x128xbf16>,
    %c109_i32_540 = arith.constant 109 : i32
    %840 = tpu.dynamic_rotate %696 by %c109_i32_540 dim 1 : vector<8x128xf32>, i32 -> vector<8x128xf32>
    %841 = arith.truncf %840 : vector<8x128xf32> to vector<8x128xbf16>
    %c24_541 = arith.constant 24 : index
    %c0_542 = arith.constant 0 : index
    %842 = vector.load %arg2[%c24_541, %c0_542] : memref<27x128xbf16, #tpu.memory_space<vmem>>, vector<1x128xbf16>
    %843 = vector.broadcast %842 : vector<1x128xbf16> to vector<8x128xbf16>
    %844 = arith.mulf %841, %843 : vector<8x128xbf16>
    %c192_543 = arith.constant 192 : index
    %c0_544 = arith.constant 0 : index
    %845 = vector.load %arg17[%c192_543, %c0_544] : memref<216x128xbf16, #tpu.memory_space<vmem>>, vector<8x128xbf16>
    tpu.vector_store %arg17[%c192_543, %c0_544], %844 {strides = array<i32>} : memref<216x128xbf16, #tpu.memory_space<vmem>>, vector<8x128xbf16>,
    %c108_i32_545 = arith.constant 108 : i32
    %846 = tpu.dynamic_rotate %696 by %c108_i32_545 dim 1 : vector<8x128xf32>, i32 -> vector<8x128xf32>
    %847 = arith.truncf %846 : vector<8x128xf32> to vector<8x128xbf16>
    %c25_546 = arith.constant 25 : index
    %c0_547 = arith.constant 0 : index
    %848 = vector.load %arg2[%c25_546, %c0_547] : memref<27x128xbf16, #tpu.memory_space<vmem>>, vector<1x128xbf16>
    %849 = vector.broadcast %848 : vector<1x128xbf16> to vector<8x128xbf16>
    %850 = arith.mulf %847, %849 : vector<8x128xbf16>
    %c200_548 = arith.constant 200 : index
    %c0_549 = arith.constant 0 : index
    %851 = vector.load %arg17[%c200_548, %c0_549] : memref<216x128xbf16, #tpu.memory_space<vmem>>, vector<8x128xbf16>
    tpu.vector_store %arg17[%c200_548, %c0_549], %850 {strides = array<i32>} : memref<216x128xbf16, #tpu.memory_space<vmem>>, vector<8x128xbf16>,
    %c107_i32_550 = arith.constant 107 : i32
    %852 = tpu.dynamic_rotate %696 by %c107_i32_550 dim 1 : vector<8x128xf32>, i32 -> vector<8x128xf32>
    %853 = arith.truncf %852 : vector<8x128xf32> to vector<8x128xbf16>
    %c26_551 = arith.constant 26 : index
    %c0_552 = arith.constant 0 : index
    %854 = vector.load %arg2[%c26_551, %c0_552] : memref<27x128xbf16, #tpu.memory_space<vmem>>, vector<1x128xbf16>
    %855 = vector.broadcast %854 : vector<1x128xbf16> to vector<8x128xbf16>
    %856 = arith.mulf %853, %855 : vector<8x128xbf16>
    %c208_553 = arith.constant 208 : index
    %c0_554 = arith.constant 0 : index
    %857 = vector.load %arg17[%c208_553, %c0_554] : memref<216x128xbf16, #tpu.memory_space<vmem>>, vector<8x128xbf16>
    tpu.vector_store %arg17[%c208_553, %c0_554], %856 {strides = array<i32>} : memref<216x128xbf16, #tpu.memory_space<vmem>>, vector<8x128xbf16>,
    %c0_555 = arith.constant 0 : index
    %c0_556 = arith.constant 0 : index
    %858 = vector.load %arg13[%c0_555, %c0_556] : memref<8x216xbf16, #tpu.memory_space<vmem>>, vector<8x216xbf16>
    %c0_557 = arith.constant 0 : index
    %c0_558 = arith.constant 0 : index
    %859 = vector.load %arg17[%c0_557, %c0_558] : memref<216x128xbf16, #tpu.memory_space<vmem>>, vector<216x128xbf16>
    %cst_559 = arith.constant dense<0.000000e+00> : vector<8x128xf32>
    %860 = tpu.matmul %858, %859, %cst_559 {dimension_numbers = #tpu.dot_dimension_numbers<[1], [0], [0], [1], [0, 0, 1, 1], [], []>} : vector<8x216xbf16>, vector<216x128xbf16>, vector<8x128xf32> -> vector<8x128xf32>
    %cst_560 = arith.constant dense<0.000000e+00> : vector<8xf32>
    %861 = vector.multi_reduction <add>, %860, %cst_560 [1] : vector<8x128xf32> to vector<8xf32>
    %862 = vector.shape_cast %861 : vector<8xf32> to vector<8x1xf32>
    %863 = arith.mulf %860, %860 : vector<8x128xf32>
    %cst_561 = arith.constant dense<0.000000e+00> : vector<8xf32>
    %864 = vector.multi_reduction <add>, %863, %cst_561 [1] : vector<8x128xf32> to vector<8xf32>
    %865 = vector.shape_cast %864 : vector<8xf32> to vector<8x1xf32>
    %cst_562 = arith.constant 1.562500e-02 : f32
    %866 = vector.broadcast %cst_562 : f32 to vector<8x1xf32>
    %867 = arith.mulf %862, %866 : vector<8x1xf32>
    %cst_563 = arith.constant 1.562500e-02 : f32
    %868 = vector.broadcast %cst_563 : f32 to vector<8x1xf32>
    %869 = arith.mulf %865, %868 : vector<8x1xf32>
    %870 = arith.mulf %867, %867 : vector<8x1xf32>
    %871 = arith.subf %869, %870 : vector<8x1xf32>
    %cst_564 = arith.constant 0.000000e+00 : f32
    %872 = vector.broadcast %cst_564 : f32 to vector<8x1xf32>
    %873 = arith.maximumf %871, %872 : vector<8x1xf32>
    %874 = vector.broadcast %867 : vector<8x1xf32> to vector<8x128xf32>
    %875 = arith.subf %860, %874 : vector<8x128xf32>
    %cst_565 = arith.constant 9.99999974E-6 : f32
    %876 = vector.broadcast %cst_565 : f32 to vector<8x1xf32>
    %877 = arith.addf %873, %876 : vector<8x1xf32>
    %878 = math.rsqrt %877 : vector<8x1xf32>
    %879 = vector.broadcast %878 : vector<8x1xf32> to vector<8x128xf32>
    %880 = arith.mulf %875, %879 : vector<8x128xf32>
    %c0_566 = arith.constant 0 : index
    %c0_567 = arith.constant 0 : index
    %881 = vector.load %arg14[%c0_566, %c0_567] : memref<8x1xf32, #tpu.memory_space<vmem>>, vector<8x1xf32>
    %882 = vector.broadcast %881 : vector<8x1xf32> to vector<8x128xf32>
    %883 = arith.mulf %880, %882 : vector<8x128xf32>
    %c0_568 = arith.constant 0 : index
    %c0_569 = arith.constant 0 : index
    %884 = vector.load %arg15[%c0_568, %c0_569] : memref<8x1xf32, #tpu.memory_space<vmem>>, vector<8x1xf32>
    %885 = vector.broadcast %884 : vector<8x1xf32> to vector<8x128xf32>
    %886 = arith.addf %883, %885 : vector<8x128xf32>
    %c0_570 = arith.constant 0 : index
    %c0_571 = arith.constant 0 : index
    %c0_572 = arith.constant 0 : index
    %887 = vector.load %arg3[%c0_570, %c0_571, %c0_572] : memref<1x8x1xf32, #tpu.memory_space<vmem>>, vector<1x8x1xf32>
    %888 = vector.shape_cast %887 : vector<1x8x1xf32> to vector<8x1xf32>
    %889 = vector.broadcast %888 : vector<8x1xf32> to vector<8x128xf32>
    %890 = arith.addf %886, %889 : vector<8x128xf32>
    %891 = vector.shape_cast %890 : vector<8x128xf32> to vector<1x8x128xf32>
    %c0_573 = arith.constant 0 : index
    %c0_574 = arith.constant 0 : index
    %c0_575 = arith.constant 0 : index
    %892 = vector.load %arg16[%c0_573, %c0_574, %c0_575] : memref<1x8x128xf32, #tpu.memory_space<vmem>>, vector<1x8x128xf32>
    tpu.vector_store %arg16[%c0_573, %c0_574, %c0_575], %891 {strides = array<i32>} : memref<1x8x128xf32, #tpu.memory_space<vmem>>, vector<1x8x128xf32>,
    return
  }
  func.func @transform_0(%arg0: i32) -> (i32, i32, i32) {
    %c0_i32 = arith.constant 0 : i32
    %c0_i32_0 = arith.constant 0 : i32
    %c0_i32_1 = arith.constant 0 : i32
    return %arg0, %c0_i32, %c0_i32_0 : i32, i32, i32
  }
  func.func @transform_1(%arg0: i32) -> (i32, i32) {
    %c0_i32 = arith.constant 0 : i32
    %c0_i32_0 = arith.constant 0 : i32
    %c0_i32_1 = arith.constant 0 : i32
    return %c0_i32, %c0_i32_0 : i32, i32
  }
  func.func @transform_2(%arg0: i32) -> (i32, i32, i32) {
    %c0_i32 = arith.constant 0 : i32
    %c0_i32_0 = arith.constant 0 : i32
    %c0_i32_1 = arith.constant 0 : i32
    return %arg0, %c0_i32, %c0_i32_0 : i32, i32, i32
  }
  func.func @transform_3(%arg0: i32) -> (i32, i32) {
    %c0_i32 = arith.constant 0 : i32
    %c0_i32_0 = arith.constant 0 : i32
    %c0_i32_1 = arith.constant 0 : i32
    return %c0_i32, %c0_i32_0 : i32, i32
  }
  func.func @transform_4(%arg0: i32) -> (i32, i32) {
    %c0_i32 = arith.constant 0 : i32
    %c0_i32_0 = arith.constant 0 : i32
    %c0_i32_1 = arith.constant 0 : i32
    return %c0_i32, %c0_i32_0 : i32, i32
  }
  func.func @transform_5(%arg0: i32) -> (i32, i32) {
    %c0_i32 = arith.constant 0 : i32
    %c0_i32_0 = arith.constant 0 : i32
    %c0_i32_1 = arith.constant 0 : i32
    return %c0_i32, %c0_i32_0 : i32, i32
  }
  func.func @transform_6(%arg0: i32) -> (i32, i32) {
    %c0_i32 = arith.constant 0 : i32
    %c0_i32_0 = arith.constant 0 : i32
    %c0_i32_1 = arith.constant 0 : i32
    return %c0_i32, %c0_i32_0 : i32, i32
  }
  func.func @transform_7(%arg0: i32) -> (i32, i32) {
    %c0_i32 = arith.constant 0 : i32
    %c0_i32_0 = arith.constant 0 : i32
    %c0_i32_1 = arith.constant 0 : i32
    return %c0_i32, %c0_i32_0 : i32, i32
  }
  func.func @transform_8(%arg0: i32) -> (i32, i32) {
    %c0_i32 = arith.constant 0 : i32
    %c0_i32_0 = arith.constant 0 : i32
    %c0_i32_1 = arith.constant 0 : i32
    return %c0_i32, %c0_i32_0 : i32, i32
  }
  func.func @transform_9(%arg0: i32) -> (i32, i32) {
    %c0_i32 = arith.constant 0 : i32
    %c0_i32_0 = arith.constant 0 : i32
    %c0_i32_1 = arith.constant 0 : i32
    return %c0_i32, %c0_i32_0 : i32, i32
  }
  func.func @transform_10(%arg0: i32) -> (i32, i32) {
    %c0_i32 = arith.constant 0 : i32
    %c0_i32_0 = arith.constant 0 : i32
    %c0_i32_1 = arith.constant 0 : i32
    return %c0_i32, %c0_i32_0 : i32, i32
  }
  func.func @transform_11(%arg0: i32) -> (i32, i32) {
    %c0_i32 = arith.constant 0 : i32
    %c0_i32_0 = arith.constant 0 : i32
    %c0_i32_1 = arith.constant 0 : i32
    return %c0_i32, %c0_i32_0 : i32, i32
  }
  func.func @transform_12(%arg0: i32) -> (i32, i32) {
    %c0_i32 = arith.constant 0 : i32
    %c0_i32_0 = arith.constant 0 : i32
    %c0_i32_1 = arith.constant 0 : i32
    return %c0_i32, %c0_i32_0 : i32, i32
  }
  func.func @transform_13(%arg0: i32) -> (i32, i32) {
    %c0_i32 = arith.constant 0 : i32
    %c0_i32_0 = arith.constant 0 : i32
    %c0_i32_1 = arith.constant 0 : i32
    return %c0_i32, %c0_i32_0 : i32, i32
  }
  func.func @transform_14(%arg0: i32) -> (i32, i32) {
    %c0_i32 = arith.constant 0 : i32
    %c0_i32_0 = arith.constant 0 : i32
    %c0_i32_1 = arith.constant 0 : i32
    return %c0_i32, %c0_i32_0 : i32, i32
  }
  func.func @transform_15(%arg0: i32) -> (i32, i32, i32) {
    %c0_i32 = arith.constant 0 : i32
    %c0_i32_0 = arith.constant 0 : i32
    %c0_i32_1 = arith.constant 0 : i32
    return %arg0, %c0_i32, %c0_i32_0 : i32, i32, i32
  }
}

</mosaic_0001>

<bundles_post_ra>
// kernel: _lambda_.1
= control target key start
LH: loop header
LB: loop body
LE: loop exit
PB: predicated region body
PF: predicated region fallthrough
CT: control target
= control target key end

     0   :  { %s3186_s18 = smov 0   ;;  %s3918_s0 = inlined_call_operand.vmem [shape: bf16[2,8,128], index: 0, kind: input, shape index: {}]   ;;  %s3919_s1 = inlined_call_operand.vmem [shape: bf16[27,128], index: 1, kind: input, shape index: {}]   ;;  %s3920_s2 = inlined_call_operand.vmem [shape: f32[2,8,1], index: 2, kind: input, shape index: {}]   ;;  %s3921_s3 = inlined_call_operand.vmem [shape: bf16[8,216], index: 3, kind: input, shape index: {}]   ;;  %s3922_s4 = inlined_call_operand.vmem [shape: f32[8,1], index: 4, kind: input, shape index: {}]   ;;  %s3923_s5 = inlined_call_operand.vmem [shape: f32[8,1], index: 5, kind: input, shape index: {}]   ;;  %s3924_s6 = inlined_call_operand.vmem [shape: bf16[8,216], index: 6, kind: input, shape index: {}]   ;;  %s3925_s7 = inlined_call_operand.vmem [shape: f32[8,1], index: 7, kind: input, shape index: {}]   ;;  %s3926_s8 = inlined_call_operand.vmem [shape: f32[8,1], index: 8, kind: input, shape index: {}]   ;;  %s3927_s9 = inlined_call_operand.vmem [shape: bf16[8,216], index: 9, kind: input, shape index: {}]   ;;  %s3928_s10 = inlined_call_operand.vmem [shape: f32[8,1], index: 10, kind: input, shape index: {}]   ;;  %s3929_s11 = inlined_call_operand.vmem [shape: f32[8,1], index: 11, kind: input, shape index: {}]   ;;  %s3930_s12 = inlined_call_operand.vmem [shape: bf16[8,216], index: 12, kind: input, shape index: {}]   ;;  %s3931_s13 = inlined_call_operand.vmem [shape: f32[8,1], index: 13, kind: input, shape index: {}]   ;;  %s3932_s14 = inlined_call_operand.vmem [shape: f32[8,1], index: 14, kind: input, shape index: {}]   ;;  %s3933_s15 = inlined_call_operand.vmem [shape: f32[2,8,128], index: 15, kind: output, shape index: {}]  }
   0x1   :  { %3992 = sst [smem:[#allocation5_spill]] %s3918_s0 }
   0x2   :  { %3993 = sst [smem:[#allocation6_spill]] %s3920_s2 }
   0x3   :  { %3994 = sst [smem:[#allocation7_spill]] %s3921_s3 }
   0x4   :  { %3995 = sst [smem:[#allocation8_spill]] %s3922_s4 }
   0x5   :  { %3996 = sst [smem:[#allocation9_spill]] %s3923_s5 }
   0x6   :  { %3997 = sst [smem:[#allocation10_spill]] %s3924_s6 }
   0x7   :  { %3998 = sst [smem:[#allocation11_spill]] %s3925_s7 }
   0x8   :  { %3999 = sst [smem:[#allocation12_spill]] %s3926_s8 }
   0x9   :  { %4000 = sst [smem:[#allocation13_spill]] %s3927_s9 }
   0xa   :  { %4001 = sst [smem:[#allocation14_spill]] %s3928_s10 }
   0xb   :  { %4002 = sst [smem:[#allocation15_spill]] %s3929_s11 }
   0xc   :  { %4003 = sst [smem:[#allocation16_spill]] %s3930_s12 }
   0xd   :  { %4004 = sst [smem:[#allocation17_spill]] %s3931_s13 }
   0xe   :  { %4005 = sst [smem:[#allocation18_spill]] %s3932_s14 }
   0xf   :  { %4006 = sst [smem:[#allocation19_spill]] %s3933_s15 }
  0x10 LB: > { %4007 = sst [smem:[#allocation3_spill]] %s3076_s18  ;;  %s2870_s19 = sadd.s32 4294967295, %s3076_s18   ;;  %s3076_s18 = sphi %s3186_s18, %s25_s18  }
  0x11   : > { %p2874_p0 = scmp.ge.s32.totalorder %s3076_s18, 1  ;;  %p445_p1 = scmp.lt.s32.totalorder %s3076_s18, 3 }
  0x13   : > { %p446_p2 = pnand %p2874_p0, %p445_p1 }
  0x15   : > { %449 = sbr.rel (%p446_p2) target bundleno = 2376 (0x948), region = 80 }
  0x1a   : > { %p495_p3 = scmp.lt.s32.totalorder %s2870_s19, 1  ;;  %v517_v0 = vlaneseq  ;;  %v685_v2 = vld [vmem:[%s3919_s1 + $0x4] sm:$0x4]  ;;  %s4009_s0 = sld [smem:[#allocation5_spill]]  ;;  %v3080_v10 = vmov 0   ;;  %vm986_vm0 = vcmask 719872  }
  0x1b   : > { %v687_v3 = vshrl.u32 %v685_v2, 16  ;;  %s3982_s26 = smov 127   ;;  %s3974_s27 = smov 1   ;;  %994 = vmatprep.subr.bf16.mxu0 %v3080_v10  ;;  %2984 = vset.pattern.permute.xlu0 %v3080_v10  ;;  %v712_v13 = vld [vmem:[%s3919_s1 + $0x4] sm:$0x8]  ;;  %vm990_vm1 = vcmask 1043456  }
  0x1c   : > { %s4061_s19 = smov (!%p495_p3, %s2870_s19), 1  ;;  %v3196_v1 = vshrl.u32 %v517_v0, 7  ;;  %s3984_s28 = smov 125   ;;  %2985 = vset.pattern.permute.xlu1 %v3080_v10  ;;  %1572 = vmatprep.subr.bf16.mxu1 %v3080_v10  ;;  %v699_v14 = vld [vmem:[%s3919_s1 + $0x4] sm:$0x8]  ;;  %v714_v16 = vshrl.u32 %v712_v13, 16 }
  0x1d   : > { %4008 = sst [smem:[#allocation4_spill]] %s4061_s19  ;;  %s2875_s22 = sshll.u32 %s4061_s19, 2  ;;  %v688_v5 = vpack.i.b16 %v687_v3, %v687_v3  ;;  %v675_v15 = vld [vmem:[%s3919_s1 + $0x4] sm:$0x4]  ;;  %v701_v18 = vpack.i.b16 %v699_v14, %v699_v14  ;;  %v648_v20 = vld [vmem:[%s3919_s1 + $0x4] sm:$0x2] }
  0x1e   : > { %v3203_v4 = vsub.s32 2, %v3196_v1  ;;  %s3944_s29 = smov 4   ;;  %s3940_s30 = smov 3   ;;  %v3285_v17 = vsub.s32 3, %v3196_v1  ;;  %v677_v19 = vpack.i.b16 %v675_v15, %v675_v15  ;;  %v661_v21 = vld [vmem:[%s3919_s1 + $0x4] sm:$0x2]  ;;  %v715_v22 = vpack.i.b16 %v714_v16, %v714_v16 }
  0x1f   : > { %s3936_s16 = smov 11   ;;  %s3978_s17 = smov 5   ;;  %v3294_v23 = vsub.s32 1, %v3196_v1  ;;  %v650_v24 = vpack.i.b16 %v648_v20, %v648_v20  ;;  %v663_v25 = vshrl.u32 %v661_v21, 16  ;;  %v634_v28 = vld [vmem:[%s3919_s1 + $0x4] sm:$0x1] }
  0x20   : > { %s498_s25 = scalar_lea.vmem %s4009_s0, %s2875_s22  ;;  %v693_v8 = vrot.slane %v688_v5, %v3203_v4  ;;  %s3934_s20 = smov 13   ;;  %v706_v26 = vrot.slane %v701_v18, %v3285_v17  ;;  %v682_v27 = vrot.slane %v677_v19, %v3203_v4  ;;  %v621_v31 = vld [vmem:[%s3919_s1 + $0x4] sm:$0x1]  ;;  %v720_v34 = vrot.slane %v715_v22, %v3285_v17  ;;  %v607_v42 = vld [vmem:[%s3919_s1] sm:$0x8] }
  0x21   : > { %v508_v6 = vld [vmem:[%s498_s25] sm:$0xf]  ;;  %s3976_s21 = smov 12   ;;  %s3938_s22 = smov 16   ;;  %v655_v35 = vrot.slane %v650_v24, %v3294_v23  ;;  %v664_v36 = vpack.i.b16 %v663_v25, %v663_v25  ;;  %v636_v37 = vshrl.u32 %v634_v28, 16  ;;  %v3307_v40 = vsub.s32 0, %v3196_v1 }
  0x22   : > { %v3208_v7 = vunpack.c.l.bf16 %v508_v6  ;;  %v694_v9 = vmul.bf16 %v693_v8, %v508_v6  ;;  %s3980_s23 = smov 15   ;;  %s3942_s24 = smov 19   ;;  %v623_v41 = vpack.i.b16 %v621_v31, %v621_v31  ;;  %v594_v45 = vld [vmem:[%s3919_s1] sm:$0x8]  ;;  %v609_v50 = vshrl.u32 %v607_v42, 16 }
  0x23   : > { %s3962_s25 = smov 17   ;;  %s4010_s3 = sld [smem:[#allocation7_spill]]  ;;  %v669_v48 = vrot.slane %v664_v36, %v3294_v23  ;;  %v637_v49 = vpack.i.b16 %v636_v37, %v636_v37  ;;  %v596_v54 = vpack.i.b16 %v594_v45, %v594_v45  ;;  %v580_v55 = vld [vmem:[%s3919_s1] sm:$0x4]  ;;  %v553_v5 = vld [vmem:[%s3919_s1] sm:$0x2] }
  0x24   : > { %696 = vrot.lane.b32.xlu0 %v3208_v7, %s3982_s26  ;;  %672 = vrot.lane.b32.xlu1 %v3208_v7, %s3974_s27  ;;  %695 = vst [vmem:[#allocation2 + $0x34] sm:$0xf] %v694_v9  ;;  %v628_v53 = vrot.slane %v623_v41, %v3307_v40  ;;  %v567_v58 = vld [vmem:[%s3919_s1] sm:$0x4]  ;;  %v610_v62 = vpack.i.b16 %v609_v50, %v609_v50  ;;  %v582_v63 = vshrl.u32 %v580_v55, 16  ;;  %v555_v16 = vshrl.u32 %v553_v5, 16 }
  0x25   : > { %v642_v61 = vrot.slane %v637_v49, %v3307_v40  ;;  %v601_v2 = vrot.slane %v596_v54, %v3285_v17  ;;  %v569_v3 = vpack.i.b16 %v567_v58, %v567_v58  ;;  %v540_v9 = vld [vmem:[%s3919_s1] sm:$0x2]  ;;  %v513_v22 = vld [vmem:[%s3919_s1] sm:$0x1]  ;;  %v861_v42 = vld [vmem:[%s3919_s1 + $0xc] sm:$0x2] }
  0x26   : > { %v615_v14 = vrot.slane %v610_v62, %v3285_v17  ;;  %v583_v15 = vpack.i.b16 %v582_v63, %v582_v63  ;;  %v542_v21 = vpack.i.b16 %v540_v9, %v540_v9  ;;  %v526_v24 = vld [vmem:[%s3919_s1] sm:$0x1]  ;;  %v515_v37 = vpack.i.b16 %v513_v22, %v513_v22  ;;  %v766_v22 = vld [vmem:[%s3919_s1 + $0x8] sm:$0x2]  ;;  %s4011_s5 = sld [smem:[#allocation9_spill]]  ;;  %s4013_s27 = smov 1  }
  0x27   : > { %v574_v20 = vrot.slane %v569_v3, %v3203_v4  ;;  %v793_v3 = vld [vmem:[%s3919_s1 + $0x8] sm:$0x4]  ;;  %s4012_s4 = sld [smem:[#allocation8_spill]]  ;;  %s4026_s0 = smov 124  }
  0x28   : > { %709 = vrot.lane.b32.xlu0 %v3208_v7, %s3984_s28  ;;  %645 = vrot.lane.b32.xlu1 %v3208_v7, %s3944_s29  ;;  %s3956_s29 = smov 111   ;;  %v588_v31 = vrot.slane %v583_v15, %v3203_v4  ;;  %v547_v36 = vrot.slane %v542_v21, %v3294_v23  ;;  %s4030_s18 = smov 111  }
  0x29   : > { %v3270_v11 = vld [vmem:[%s4010_s3] sm:$0xff]  ;;  %s4027_s3 = smov 21   ;;  %s4031_s15 = smov 113  }
  0x2a   : > { %v2879_v12 = vcombine.high %v3270_v11, %v3270_v11  ;;  %s4032_s2 = smov 116   ;;  %s4033_s13 = smov 123  }
  0x2b   : > { %s4034_s6 = sld [smem:[#allocation10_spill]]  ;;  %s4037_s12 = smov 125  }
  0x2c   : > { %658 = vrot.lane.b32.xlu0 %v3208_v7, %s3940_s30  ;;  %618 = vrot.lane.b32.xlu1 %v3208_v7, %s3936_s16  ;;  %s3948_s16 = smov 20   ;;  %s3952_s30 = smov 108  }
  0x2d   : > { %2894 = vmatprep.mubr.msk.bf16.mxu0 %vm986_vm0, %v2879_v12  ;;  %s4035_s8 = sld [smem:[#allocation12_spill]]  ;;  %s4040_s14 = smov 12  }
  0x2e   : > { %s4036_s7 = sld [smem:[#allocation11_spill]]  ;;  %s4041_s19 = smov 15  }
  0x2f   : > { %s4042_s10 = smov 123   ;;  %s4046_s9 = sld [smem:[#allocation14_spill]] }
  0x30   : > { %631 = vrot.lane.b32.xlu0 %v3208_v7, %s3978_s17  ;;  %591 = vrot.lane.b32.xlu1 %v3208_v7, %s3934_s20  ;;  %s3946_s20 = smov 21  }
  0x34   : > { %604 = vrot.lane.b32.xlu0 %v3208_v7, %s3976_s21  ;;  %564 = vrot.lane.b32.xlu1 %v3208_v7, %s3938_s22  ;;  %s3950_s22 = smov 107  }
  0x38   : > { %577 = vrot.lane.b32.xlu0 %v3208_v7, %s3980_s23  ;;  %537 = vrot.lane.b32.xlu1 %v3208_v7, %s3942_s24  ;;  %s3954_s24 = smov 109  }
  0x3c   : > { %550 = vrot.lane.b32.xlu0 %v3208_v7, %s3962_s25  ;;  %510 = vrot.lane.b32.xlu1 %v3208_v7, %s3946_s20  ;;  %s3958_s20 = smov 112   ;;  %s4018_s25 = smov 109  }
  0x40   : > { %523 = vrot.lane.b32.xlu0 %v3208_v7, %s3948_s16  ;;  %858 = vrot.lane.b32.xlu1 %v3208_v7, %s3950_s22  ;;  %s3960_s16 = smov 113   ;;  %s3970_s22 = smov 115  }
  0x44   : > { %844 = vrot.lane.b32.xlu1 %v3208_v7, %s3952_s30  ;;  %831 = vrot.lane.b32.xlu0 %v3208_v7, %s3954_s24  ;;  %s3964_s30 = smov 116   ;;  %s3966_s24 = smov 117  }
  0x48   : > { %817 = vrot.lane.b32.xlu1 %v3208_v7, %s3956_s29  ;;  %804 = vrot.lane.b32.xlu0 %v3208_v7, %s3958_s20  ;;  %s3968_s29 = smov 123   ;;  %s3972_s20 = smov 124  }
  0x4c   : > { %790 = vrot.lane.b32.xlu1 %v3208_v7, %s3960_s16  ;;  %777 = vrot.lane.b32.xlu0 %v3208_v7, %s3970_s22  ;;  %s4016_s22 = smov 20   ;;  %s4017_s16 = smov 3  }
  0x50   : > { %763 = vrot.lane.b32.xlu1 %v3208_v7, %s3964_s30  ;;  %750 = vrot.lane.b32.xlu0 %v3208_v7, %s3966_s24  ;;  %s4019_s30 = smov 11   ;;  %s4020_s24 = smov 112  }
  0x54   : > { %736 = vrot.lane.b32.xlu1 %v3208_v7, %s3968_s29  ;;  %723 = vrot.lane.b32.xlu0 %v3208_v7, %s3972_s20  ;;  %s4014_s29 = smov 17   ;;  %s4015_s20 = smov 4  }
  0x96   : > { %v697_v29 = vpop.permute.xlu0 %696  ;;  %v673_v30 = vpop.permute.xlu1 %672 }
  0x97   : > { %v698_v32 = vpack.c.bf16 %v697_v29, %v697_v29  ;;  %v674_v33 = vpack.c.bf16 %v673_v30, %v673_v30 }
  0x99   : > { %v707_v38 = vmul.bf16 %v706_v26, %v698_v32  ;;  %v683_v39 = vmul.bf16 %v682_v27, %v674_v33  ;;  %v556_v32 = vpack.i.b16 %v555_v16, %v555_v16  ;;  %v528_v33 = vshrl.u32 %v526_v24, 16 }
  0x9a   : > { %v710_v43 = vpop.permute.xlu0 %709  ;;  %v646_v44 = vpop.permute.xlu1 %645  ;;  %v795_v16 = vshrl.u32 %v793_v3, 16 }
  0x9b   : > { %708 = vst [vmem:[#allocation2 + $0x38] sm:$0xf] %v707_v38  ;;  %v711_v46 = vpack.c.bf16 %v710_v43, %v710_v43  ;;  %684 = vst [vmem:[#allocation2 + $0x30] sm:$0xf] %v683_v39  ;;  %v647_v47 = vpack.c.bf16 %v646_v44, %v646_v44  ;;  %v847_v38 = vld [vmem:[%s3919_s1 + $0xc] sm:$0x1] }
  0x9d   : > { %v721_v51 = vmul.bf16 %v720_v34, %v711_v46  ;;  %v656_v52 = vmul.bf16 %v655_v35, %v647_v47  ;;  %v561_v46 = vrot.slane %v556_v32, %v3294_v23  ;;  %v529_v47 = vpack.i.b16 %v528_v33, %v528_v33 }
  0x9e   : > { %v659_v56 = vpop.permute.xlu0 %658  ;;  %v619_v57 = vpop.permute.xlu1 %618  ;;  %v768_v32 = vshrl.u32 %v766_v22, 16 }
  0x9f   : > { %722 = vst [vmem:[#allocation2 + $0x3c] sm:$0xf] %v721_v51  ;;  %657 = vst [vmem:[#allocation2 + $0x28] sm:$0xf] %v656_v52  ;;  %v660_v59 = vpack.c.bf16 %v659_v56, %v659_v56  ;;  %v620_v60 = vpack.c.bf16 %v619_v57, %v619_v57  ;;  %v520_v51 = vrot.slane %v515_v37, %v3307_v40  ;;  %v834_v56 = vld [vmem:[%s3919_s1 + $0xc] sm:$0x1] }
  0xa0   : > { %v863_v52 = vpack.i.b16 %v861_v42, %v861_v42  ;;  %v739_v37 = vld [vmem:[%s3919_s1 + $0x8] sm:$0x1] }
  0xa1   : > { %v670_v0 = vmul.bf16 %v669_v48, %v660_v59  ;;  %v629_v1 = vmul.bf16 %v628_v53, %v620_v60  ;;  %v849_v48 = vshrl.u32 %v847_v38, 16  ;;  %v820_v53 = vld [vmem:[%s3919_s1 + $0x8] sm:$0x8]  ;;  %v534_v60 = vrot.slane %v529_v47, %v3307_v40 }
  0xa2   : > { %v632_v6 = vpop.permute.xlu0 %631  ;;  %v592_v8 = vpop.permute.xlu1 %591  ;;  %v2987_v30 = vld [vmem:[#allocation2 + $0x30] sm:$0xff]   ;;  %v822_v62 = vshrl.u32 %v820_v53, 16  ;;  %v741_v47 = vshrl.u32 %v739_v37, 16 }
  0xa3   : > { %671 = vst [vmem:[#allocation2 + $0x2c] sm:$0xf] %v670_v0  ;;  %630 = vst [vmem:[#allocation2 + $0x20] sm:$0xf] %v629_v1  ;;  %v633_v12 = vpack.c.bf16 %v632_v6, %v632_v6  ;;  %v593_v13 = vpack.c.bf16 %v592_v8, %v592_v8  ;;  %v868_v1 = vrot.slane %v863_v52, %v3294_v23  ;;  %v807_v8 = vld [vmem:[%s3919_s1 + $0x8] sm:$0x8] }
  0xa4   : > { %v823_v15 = vpack.i.b16 %v822_v62, %v822_v62  ;;  %v809_v21 = vpack.i.b16 %v807_v8, %v807_v8 }
  0xa5   : > { %v643_v18 = vmul.bf16 %v642_v61, %v633_v12  ;;  %v602_v19 = vmul.bf16 %v601_v2, %v593_v13  ;;  %v850_v61 = vpack.i.b16 %v849_v48, %v849_v48  ;;  %v836_v2 = vpack.i.b16 %v834_v56, %v834_v56 }
  0xa6   : > { %v2986_v25 = vld [vmem:[#allocation2 + $0x38] sm:$0xff]   ;;  %v605_v26 = vpop.permute.xlu0 %604  ;;  %v565_v27 = vpop.permute.xlu1 %564 }
  0xa7   : > { %644 = vst [vmem:[#allocation2 + $0x24] sm:$0xf] %v643_v18  ;;  %603 = vst [vmem:[#allocation2 + $0x18] sm:$0xf] %v602_v19  ;;  %v606_v28 = vpack.c.bf16 %v605_v26, %v605_v26  ;;  %v566_v29 = vpack.c.bf16 %v565_v27, %v565_v27  ;;  %995 = vmatpush1.bf16.msra.mxu0 %v2986_v25  ;;  %v780_v26 = vld [vmem:[%s3919_s1 + $0x8] sm:$0x4] }
  0xa8   : > { %996 = vmatprep.subr.bf16.mxu0 %v3080_v10 }
  0xa9   : > { %v616_v34 = vmul.bf16 %v615_v14, %v606_v28  ;;  %v575_v35 = vmul.bf16 %v574_v20, %v566_v29  ;;  %v855_v14 = vrot.slane %v850_v61, %v3307_v40  ;;  %v841_v20 = vrot.slane %v836_v2, %v3307_v40 }
  0xaa   : > { %v578_v39 = vpop.permute.xlu0 %577  ;;  %v538_v41 = vpop.permute.xlu1 %537  ;;  %v2988_v45 = vld [vmem:[#allocation2 + $0x28] sm:$0xff]  }
  0xab   : > { %617 = vst [vmem:[#allocation2 + $0x1c] sm:$0xf] %v616_v34  ;;  %576 = vst [vmem:[#allocation2 + $0x10] sm:$0xf] %v575_v35  ;;  %v579_v43 = vpack.c.bf16 %v578_v39, %v578_v39  ;;  %v539_v44 = vpack.c.bf16 %v538_v41, %v538_v41  ;;  %997 = vmatpush1.bf16.msra.mxu0 %v2987_v30  ;;  %v828_v30 = vrot.slane %v823_v15, %v3285_v17  ;;  %v753_v41 = vld [vmem:[%s3919_s1 + $0x8] sm:$0x2] }
  0xac   : > { %998 = vmatprep.subr.bf16.mxu0 %v3080_v10  ;;  %v814_v35 = vrot.slane %v809_v21, %v3285_v17 }
  0xad   : > { %v589_v49 = vmul.bf16 %v588_v31, %v579_v43  ;;  %v548_v50 = vmul.bf16 %v547_v36, %v539_v44  ;;  %v796_v31 = vpack.i.b16 %v795_v16, %v795_v16  ;;  %v782_v36 = vpack.i.b16 %v780_v26, %v780_v26 }
  0xae   : > { %v551_v54 = vpop.permute.xlu0 %550  ;;  %v511_v55 = vpop.permute.xlu1 %510  ;;  %v2989_v59 = vld [vmem:[#allocation2 + $0x20] sm:$0xff]  }
  0xaf   : > { %590 = vst [vmem:[#allocation2 + $0x14] sm:$0xf] %v589_v49  ;;  %549 = vst [vmem:[#allocation2 + $0x8] sm:$0xf] %v548_v50  ;;  %v552_v57 = vpack.c.bf16 %v551_v54, %v551_v54  ;;  %v512_v58 = vpack.c.bf16 %v511_v55, %v511_v55  ;;  %999 = vmatpush1.bf16.msra.mxu0 %v2988_v45  ;;  %v801_v45 = vrot.slane %v796_v31, %v3203_v4  ;;  %v726_v54 = vld [vmem:[%s3919_s1 + $0x8] sm:$0x1] }
  0xb0   : > { %1000 = vmatprep.subr.bf16.mxu0 %v3080_v10  ;;  %v787_v50 = vrot.slane %v782_v36, %v3203_v4 }
  0xb1   : > { %v562_v63 = vmul.bf16 %v561_v46, %v552_v57  ;;  %v521_v0 = vmul.bf16 %v520_v51, %v512_v58  ;;  %v769_v46 = vpack.i.b16 %v768_v32, %v768_v32  ;;  %v755_v51 = vpack.i.b16 %v753_v41, %v753_v41 }
  0xb2   : > { %v524_v5 = vpop.permute.xlu0 %523  ;;  %v859_v6 = vpop.permute.xlu1 %858  ;;  %v2990_v13 = vld [vmem:[#allocation2 + $0x18] sm:$0xff]  }
  0xb3   : > { %563 = vst [vmem:[#allocation2 + $0xc] sm:$0xf] %v562_v63  ;;  %522 = vst [vmem:[#allocation2] sm:$0xf] %v521_v0  ;;  %v525_v9 = vpack.c.bf16 %v524_v5, %v524_v5  ;;  %v860_v12 = vpack.c.bf16 %v859_v6, %v859_v6  ;;  %1001 = vmatpush1.bf16.msra.mxu0 %v2989_v59  ;;  %v774_v58 = vrot.slane %v769_v46, %v3294_v23 }
  0xb4   : > { %1002 = vmatprep.subr.bf16.mxu0 %v3080_v10  ;;  %v742_v59 = vpack.i.b16 %v741_v47, %v741_v47  ;;  %v760_v63 = vrot.slane %v755_v51, %v3294_v23  ;;  %v728_v0 = vpack.i.b16 %v726_v54, %v726_v54 }
  0xb5   : > { %v535_v18 = vmul.bf16 %v534_v60, %v525_v9  ;;  %v869_v19 = vmul.bf16 %v868_v1, %v860_v12 }
  0xb6   : > { %v845_v24 = vpop.permute.xlu1 %844  ;;  %v832_v25 = vpop.permute.xlu0 %831  ;;  %v2991_v29 = vld [vmem:[#allocation2 + $0x10] sm:$0xff]   ;;  %v747_v6 = vrot.slane %v742_v59, %v3307_v40 }
  0xb7   : > { %536 = vst [vmem:[#allocation2 + $0x4] sm:$0xf] %v535_v18  ;;  %870 = vst [vmem:[#allocation2 + $0x68] sm:$0xf] %v869_v19  ;;  %v846_v27 = vpack.c.bf16 %v845_v24, %v845_v24  ;;  %v833_v28 = vpack.c.bf16 %v832_v25, %v832_v25  ;;  %1003 = vmatpush1.bf16.msra.mxu0 %v2990_v13  ;;  %v733_v13 = vrot.slane %v728_v0, %v3307_v40 }
  0xb8   : > { %1004 = vmatprep.subr.bf16.mxu0 %v3080_v10 }
  0xb9   : > { %v856_v33 = vmul.bf16 %v855_v14, %v846_v27  ;;  %v842_v34 = vmul.bf16 %v841_v20, %v833_v28  ;;  %v2878_v27 = vcombine.low %v3270_v11, %v3270_v11 }
  0xba   : > { %v818_v38 = vpop.permute.xlu1 %817  ;;  %v805_v39 = vpop.permute.xlu0 %804  ;;  %v2992_v44 = vld [vmem:[#allocation2 + $0x8] sm:$0xff]  }
  0xbb   : > { %857 = vst [vmem:[#allocation2 + $0x64] sm:$0xf] %v856_v33  ;;  %843 = vst [vmem:[#allocation2 + $0x60] sm:$0xf] %v842_v34  ;;  %v819_v42 = vpack.c.bf16 %v818_v38, %v818_v38  ;;  %v806_v43 = vpack.c.bf16 %v805_v39, %v805_v39  ;;  %1005 = vmatpush1.bf16.msra.mxu0 %v2991_v29  ;;  %v1055_v33 = vld [vmem:[%s4011_s5] sm:$0xff]  ;;  %s4029_s5 = smov 108  }
  0xbc   : > { %1006 = vmatprep.subr.bf16.mxu0 %v3080_v10  ;;  %v1048_v34 = vld [vmem:[%s4012_s4] sm:$0xff]  ;;  %s4028_s4 = smov 107  }
  0xbd   : > { %v829_v48 = vmul.bf16 %v828_v30, %v819_v42  ;;  %v815_v49 = vmul.bf16 %v814_v35, %v806_v43 }
  0xbe   : > { %v791_v52 = vpop.permute.xlu1 %790  ;;  %v778_v53 = vpop.permute.xlu0 %777  ;;  %v2993_v57 = vld [vmem:[#allocation2] sm:$0xff]   ;;  %v2994_v62 = vld [vmem:[#allocation2 + $0x68] ss:$0 sps:$4 sm:$0xff]  }
  0xbf   : > { %830 = vst [vmem:[#allocation2 + $0x5c] sm:$0xf] %v829_v48  ;;  %816 = vst [vmem:[#allocation2 + $0x58] sm:$0xf] %v815_v49  ;;  %v792_v55 = vpack.c.bf16 %v791_v52, %v791_v52  ;;  %v779_v56 = vpack.c.bf16 %v778_v53, %v778_v53  ;;  %1007 = vmatpush1.bf16.msra.mxu0 %v2992_v44  ;;  %v992_v8 = vsel %vm990_vm1, %v2994_v62, 0 }
  0xc0   : > { %1008 = vmatprep.subr.bf16.mxu0 %v3080_v10 }
  0xc1   : > { %v802_v60 = vmul.bf16 %v801_v45, %v792_v55  ;;  %v788_v61 = vmul.bf16 %v787_v50, %v779_v56 }
  0xc2   : > { %v764_v1 = vpop.permute.xlu1 %763  ;;  %v751_v2 = vpop.permute.xlu0 %750  ;;  %v2995_v19 = vld [vmem:[#allocation2 + $0x60] sm:$0xff]  }
  0xc3   : > { %803 = vst [vmem:[#allocation2 + $0x54] sm:$0xf] %v802_v60  ;;  %789 = vst [vmem:[#allocation2 + $0x50] sm:$0xf] %v788_v61  ;;  %v765_v3 = vpack.c.bf16 %v764_v1, %v764_v1  ;;  %v752_v5 = vpack.c.bf16 %v751_v2, %v751_v2  ;;  %1009 = vmatpush1.bf16.msra.mxu0 %v2993_v57  ;;  %v1265_v2 = vld [vmem:[%s3919_s1 + $0x4] sm:$0x4] }
  0xc4   : > { %1014 = vmatprep.subr.bf16.mxu0 %v3080_v10 }
  0xc5   : > { %v775_v9 = vmul.bf16 %v774_v58, %v765_v3  ;;  %v761_v12 = vmul.bf16 %v760_v63, %v752_v5 }
  0xc6   : > { %v737_v14 = vpop.permute.xlu1 %736  ;;  %v724_v15 = vpop.permute.xlu0 %723  ;;  %v2996_v22 = vld [vmem:[#allocation2 + $0x58] sm:$0xff]  }
  0xc7   : > { %776 = vst [vmem:[#allocation2 + $0x4c] sm:$0xf] %v775_v9  ;;  %762 = vst [vmem:[#allocation2 + $0x48] sm:$0xf] %v761_v12  ;;  %v738_v16 = vpack.c.bf16 %v737_v14, %v737_v14  ;;  %v725_v18 = vpack.c.bf16 %v724_v15, %v724_v15  ;;  %1015 = vmatpush2.bf16.msra.mxu0 %v992_v8  ;;  %v1267_v8 = vshrl.u32 %v1265_v2, 16  ;;  %v3105_v12 = vmov 1.0  }
  0xc8   : > { %1016 = vmatprep.subr.bf16.mxu0 %v3080_v10 }
  0xc9   : > { %v748_v20 = vmul.bf16 %v747_v6, %v738_v16  ;;  %v734_v21 = vmul.bf16 %v733_v13, %v725_v18  ;;  %v1268_v15 = vpack.i.b16 %v1267_v8, %v1267_v8 }
  0xca   : > { %v2997_v24 = vld [vmem:[#allocation2 + $0x50] sm:$0xff]  }
  0xcb   : > { %749 = vst [vmem:[#allocation2 + $0x44] sm:$0xf] %v748_v20  ;;  %735 = vst [vmem:[#allocation2 + $0x40] sm:$0xf] %v734_v21  ;;  %1017 = vmatpush2.bf16.msra.mxu0 %v2995_v19  ;;  %v1273_v20 = vrot.slane %v1268_v15, %v3203_v4 }
  0xcc   : > { %1018 = vmatprep.subr.bf16.mxu0 %v3080_v10 }
  0xce   : > { %v2998_v25 = vld [vmem:[#allocation2 + $0x48] sm:$0xff]  }
  0xcf   : > { %1019 = vmatpush2.bf16.msra.mxu0 %v2996_v22 }
  0xd0   : > { %1020 = vmatprep.subr.bf16.mxu0 %v3080_v10 }
  0xd2   : > { %v2999_v26 = vld [vmem:[#allocation2 + $0x40] sm:$0xff]  }
  0xd3   : > { %1021 = vmatpush2.bf16.msra.mxu0 %v2997_v24  ;;  %v3445_v24 = vld [vmem:[%s4034_s6] sm:$0xff]  ;;  %s4038_s6 = smov 127  }
  0xd4   : > { %1022 = vmatprep.subr.bf16.mxu0 %v3080_v10 }
  0xd7   : > { %1023 = vmatpush2.bf16.msra.mxu0 %v2998_v25  ;;  %v2896_v25 = vcombine.high %v3445_v24, %v3445_v24 }
  0xd8   : > { %1024 = vmatprep.subr.bf16.mxu0 %v3080_v10 }
  0xd9   : > { %2911 = vmatprep.mubr.msk.bf16.mxu1 %vm986_vm0, %v2896_v25 }
  0xdb   : > { %1025 = vmatpush2.bf16.msra.mxu0 %v2999_v26  ;;  %v1213_v26 = vld [vmem:[%s3919_s1 + $0x4] sm:$0x1] }
  0xdc   : > { %2151 = vmatprep.subr.bf16.mxu0 %v3080_v10 }
  0xde   : > { %1027 = vmatmul.mubr.bf16.vlgmr.msra.gmra.mxu0 %v2878_v27  ;;  %v1215_v27 = vshrl.u32 %v1213_v26, 16  ;;  %v1200_v26 = vld [vmem:[%s3919_s1 + $0x4] sm:$0x1] }
 0x19e   : > { %v1028_v28 = vpop.f32.mrf.mxu0 }
 0x19f   : > { %1034 = vadd.xlane.f32.xlu0 %v1028_v28  ;;  %v1036_v29 = vmul.f32 %v1028_v28, %v1028_v28 }
 0x1a0   : > { %v1030_v30 = vpop.f32.mrf.mxu0 }
 0x1a1   : > { %1037 = vadd.xlane.f32.xlu1 %v1036_v29  ;;  %v1186_v29 = vld [vmem:[%s3919_s1] sm:$0x8]  ;;  %v1292_v30 = vld [vmem:[%s3919_s1 + $0x4] sm:$0x8] }
 0x1a2   : > { %v1031_v31 = vpop.f32.mrf.mxu0 }
 0x1a3   : > { %v1216_v31 = vpack.i.b16 %v1215_v27, %v1215_v27 }
 0x1a4   : > { %v1032_v32 = vpop.f32.mrf.mxu0 }
 0x1b2   : > { %1058 = vperm.xlu1 %2985, %v1055_v33   ;;  %v1188_v33 = vshrl.u32 %v1186_v29, 16 }
 0x1b5   : > { %1051 = vperm.xlu0 %2984, %v1048_v34   ;;  %v1294_v34 = vshrl.u32 %v1292_v30, 16 }
 0x228   : > { %v1035_v11 = vpop.xlane.xlu0 %1034 }
 0x229   : > { %v1039_v35 = vmul.f32 0.015625, %v1035_v11  ;;  %v1159_v11 = vld [vmem:[%s3919_s1] sm:$0x4] }
 0x22a   : > { %v1038_v36 = vpop.xlane.xlu1 %1037 }
 0x22b   : > { %v1041_v37 = vmul.f32 %v1039_v35, %v1039_v35  ;;  %v1040_v38 = vmul.f32 0.015625, %v1038_v36  ;;  %v1044_v43 = vsub.f32 %v1028_v28, %v1039_v35  ;;  %v1279_v28 = vld [vmem:[%s3919_s1 + $0x4] sm:$0x8]  ;;  %v1161_v35 = vshrl.u32 %v1159_v11, 16  ;;  %v1387_v11 = vld [vmem:[%s3919_s1 + $0x8] sm:$0x8] }
 0x22c   : > { %v1281_v32 = vpack.i.b16 %v1279_v28, %v1279_v28  ;;  %v1221_v36 = vrot.slane %v1216_v31, %v3307_v40 }
 0x22d   : > { %v1042_v39 = vsub.f32 %v1040_v38, %v1041_v37  ;;  %v1189_v38 = vpack.i.b16 %v1188_v33, %v1188_v33 }
 0x22e   : > { %v1059_v47 = vpop.permute.xlu1 %1058  ;;  %v1286_v37 = vrot.slane %v1281_v32, %v3285_v17 }
 0x22f   : > { %v1043_v41 = vmax.f32 %v1042_v39, 0.0  ;;  %v1295_v39 = vpack.i.b16 %v1294_v34, %v1294_v34  ;;  %v1202_v34 = vpack.i.b16 %v1200_v26, %v1200_v26 }
 0x230   : > { %v1052_v45 = vpop.permute.xlu0 %1051 }
 0x231   : > { %v1045_v42 = vadd.f32 1e-05, %v1043_v41  ;;  %v1254_v41 = vld [vmem:[%s3919_s1 + $0x4] sm:$0x4] }
 0x233   : > { %3050 = vrsqrt.f32 %v1045_v42  ;;  %v1132_v42 = vld [vmem:[%s3919_s1] sm:$0x2] }
 0x240   : > { %v3051_v44 = vpop.eup %3050 }
 0x241   : > { %v1047_v46 = vmul.f32 %v3051_v44, %v1044_v43 }
 0x243   : > { %v1054_v48 = vmul.f32 %v1052_v45, %v1047_v46 }
 0x245   : > { %v1061_v49 = vadd.f32 %v1059_v47, %v1054_v48  ;;  %v1162_v47 = vpack.i.b16 %v1161_v35, %v1161_v35  ;;  %v1256_v48 = vpack.i.b16 %v1254_v41, %v1254_v41  ;;  %v1173_v35 = vld [vmem:[%s3919_s1] sm:$0x8] }
 0x247   : > { %v1063_v50 = vmul.f32 0.70710677, %v1061_v49  ;;  %v1062_v16 = vmul.f32 0.5, %v1061_v49  ;;  %v1134_v49 = vshrl.u32 %v1132_v42, 16 }
 0x249   : > { %v1066_v51 = vand.u32 2147483647, %v1063_v50  ;;  %vm1064_vm2 = vcmp.lt.f32.partialorder %v1063_v50, 0.0 }
 0x24a   : > { %v1065_v13 = vsel %vm1064_vm2, -1.0, %v3105_v12 }
 0x24b   : > { %v1067_v52 = vmul.f32 0.3275911, %v1066_v51  ;;  %v1080_v54 = vsub.f32 0.0, %v1066_v51 }
 0x24d   : > { %v1068_v53 = vadd.f32 1.0, %v1067_v52  ;;  %v1081_v55 = vmul.f32 %v1080_v54, %v1066_v51  ;;  %v1194_v52 = vrot.slane %v1189_v38, %v3285_v17  ;;  %v1105_v54 = vld [vmem:[%s3919_s1] sm:$0x1] }
 0x24f   : > { %3052 = vrcp.f32 %v1068_v53  ;;  %v1082_v58 = vmul.f32 1.442695, %v1081_v55  ;;  %v1300_v53 = vrot.slane %v1295_v39, %v3285_v17 }
 0x251   : > { %3054 = vpow2.f32 %v1082_v58  ;;  %v1240_v58 = vld [vmem:[%s3919_s1 + $0x4] sm:$0x2] }
 0x25c   : > { %v3053_v56 = vpop.eup %3052 }
 0x25d   : > { %v1071_v57 = vmul.f32 1.0614054, %v3053_v56 }
 0x25e   : > { %v3055_v5 = vpop.eup %3054 }
 0x25f   : > { %v1072_v59 = vadd.f32 -1.4531521, %v1071_v57  ;;  %v1227_v57 = vld [vmem:[%s3919_s1 + $0x4] sm:$0x2] }
 0x261   : > { %v1073_v60 = vmul.f32 %v3053_v56, %v1072_v59 }
 0x263   : > { %v1074_v61 = vadd.f32 1.4214138, %v1073_v60 }
 0x265   : > { %v1075_v62 = vmul.f32 %v3053_v56, %v1074_v61  ;;  %v1167_v61 = vrot.slane %v1162_v47, %v3203_v4  ;;  %v1175_v47 = vpack.i.b16 %v1173_v35, %v1173_v35 }
 0x267   : > { %v1076_v63 = vadd.f32 -0.28449672, %v1075_v62  ;;  %v1261_v62 = vrot.slane %v1256_v48, %v3203_v4  ;;  %v1360_v48 = vld [vmem:[%s3919_s1 + $0x8] sm:$0x4] }
 0x269   : > { %v1077_v0 = vmul.f32 %v3053_v56, %v1076_v63  ;;  %v1135_v63 = vpack.i.b16 %v1134_v49, %v1134_v49  ;;  %v1146_v49 = vld [vmem:[%s3919_s1] sm:$0x4] }
 0x26b   : > { %v1078_v1 = vadd.f32 0.2548296, %v1077_v0  ;;  %v1107_v0 = vshrl.u32 %v1105_v54, 16 }
 0x26d   : > { %v1079_v3 = vmul.f32 %v3053_v56, %v1078_v1  ;;  %v1108_v15 = vpack.i.b16 %v1107_v0, %v1107_v0  ;;  %v1119_v0 = vld [vmem:[%s3919_s1] sm:$0x2] }
 0x26f   : > { %v1084_v6 = vmul.f32 %v3055_v5, %v1079_v3  ;;  %v1229_v3 = vpack.i.b16 %v1227_v57, %v1227_v57  ;;  %v1242_v5 = vshrl.u32 %v1240_v58, 16  ;;  %v1113_v29 = vrot.slane %v1108_v15, %v3307_v40  ;;  %v1092_v15 = vld [vmem:[%s3919_s1] sm:$0x1] }
 0x271   : > { %v1085_v9 = vsub.f32 1.0, %v1084_v6 }
 0x273   : > { %v1086_v14 = vmul.f32 %v1085_v9, %v1065_v13 }
 0x275   : > { %v1087_v18 = vadd.f32 1.0, %v1086_v14  ;;  %v1140_v14 = vrot.slane %v1135_v63, %v3294_v23 }
 0x277   : > { %v1088_v19 = vmul.f32 %v1087_v18, %v1062_v16 }
 0x279   : > { %1210 = vrot.lane.b32.xlu0 %v1088_v19, %s3978_s17  ;;  %1276 = vrot.lane.b32.xlu1 %v1088_v19, %s3982_s26  ;;  %v1264_v21 = vpack.c.bf16 %v1088_v19, %v1088_v19  ;;  %s4022_s17 = smov 115   ;;  %s4024_s26 = smov 117  }
 0x27b   : > { %v1274_v22 = vmul.bf16 %v1273_v20, %v1264_v21  ;;  %v1243_v20 = vpack.i.b16 %v1242_v5, %v1242_v5  ;;  %v1414_v21 = vld [vmem:[%s3919_s1 + $0xc] sm:$0x1] }
 0x27c   : > { %v1416_v30 = vpack.i.b16 %v1414_v21, %v1414_v21 }
 0x27d   : > { %1183 = vrot.lane.b32.xlu0 %v1088_v19, %s3976_s21  ;;  %1289 = vrot.lane.b32.xlu1 %v1088_v19, %s3984_s28  ;;  %1275 = vst [vmem:[#allocation2 + $0x34] sm:$0xf] %v1274_v22  ;;  %s4021_s21 = smov 13   ;;  %s4025_s28 = smov 19   ;;  %v1248_v33 = vrot.slane %v1243_v20, %v3294_v23 }
 0x27e   : > { %v1421_v42 = vrot.slane %v1416_v30, %v3307_v40  ;;  %v1441_v30 = vld [vmem:[%s3919_s1 + $0xc] sm:$0x2] }
 0x281   : > { %1156 = vrot.lane.b32.xlu0 %v1088_v19, %s3980_s23  ;;  %1251 = vrot.lane.b32.xlu1 %v1088_v19, %s4013_s27  ;;  %s4023_s23 = smov 16  }
 0x285   : > { %1129 = vrot.lane.b32.xlu0 %v1088_v19, %s4014_s29  ;;  %1224 = vrot.lane.b32.xlu1 %v1088_v19, %s4015_s20 }
 0x289   : > { %1102 = vrot.lane.b32.xlu0 %v1088_v19, %s4016_s22  ;;  %1237 = vrot.lane.b32.xlu1 %v1088_v19, %s4017_s16 }
 0x28d   : > { %1411 = vrot.lane.b32.xlu0 %v1088_v19, %s4018_s25  ;;  %1197 = vrot.lane.b32.xlu1 %v1088_v19, %s4019_s30 }
 0x291   : > { %1384 = vrot.lane.b32.xlu0 %v1088_v19, %s4020_s24  ;;  %1170 = vrot.lane.b32.xlu1 %v1088_v19, %s4021_s21 }
 0x295   : > { %1357 = vrot.lane.b32.xlu0 %v1088_v19, %s4022_s17  ;;  %1143 = vrot.lane.b32.xlu1 %v1088_v19, %s4023_s23 }
 0x299   : > { %1330 = vrot.lane.b32.xlu0 %v1088_v19, %s4024_s26  ;;  %1116 = vrot.lane.b32.xlu1 %v1088_v19, %s4025_s28 }
 0x29d   : > { %1303 = vrot.lane.b32.xlu0 %v1088_v19, %s4026_s0  ;;  %1089 = vrot.lane.b32.xlu1 %v1088_v19, %s4027_s3  ;;  %s4043_s0 = smov 124  }
 0x2a1   : > { %1438 = vrot.lane.b32.xlu1 %v1088_v19, %s4028_s4 }
 0x2a5   : > { %1424 = vrot.lane.b32.xlu1 %v1088_v19, %s4029_s5 }
 0x2a9   : > { %1397 = vrot.lane.b32.xlu1 %v1088_v19, %s4030_s18 }
 0x2ad   : > { %1370 = vrot.lane.b32.xlu1 %v1088_v19, %s4031_s15 }
 0x2b1   : > { %1343 = vrot.lane.b32.xlu1 %v1088_v19, %s4032_s2 }
 0x2b5   : > { %1316 = vrot.lane.b32.xlu1 %v1088_v19, %s4033_s13  ;;  %v1234_v19 = vrot.slane %v1229_v3, %v3294_v23  ;;  %s4039_s13 = smov 5  }
 0x2eb   : > { %v1211_v43 = vpop.permute.xlu0 %1210  ;;  %v1277_v44 = vpop.permute.xlu1 %1276 }
 0x2ec   : > { %v1212_v45 = vpack.c.bf16 %v1211_v43, %v1211_v43  ;;  %v1278_v46 = vpack.c.bf16 %v1277_v44, %v1277_v44  ;;  %v1389_v43 = vpack.i.b16 %v1387_v11, %v1387_v11 }
 0x2ee   : > { %v1222_v50 = vmul.bf16 %v1221_v36, %v1212_v45  ;;  %v1287_v51 = vmul.bf16 %v1286_v37, %v1278_v46  ;;  %v1207_v46 = vrot.slane %v1202_v34, %v3307_v40 }
 0x2ef   : > { %v1184_v55 = vpop.permute.xlu0 %1183  ;;  %v1290_v56 = vpop.permute.xlu1 %1289 }
 0x2f0   : > { %1223 = vst [vmem:[#allocation2 + $0x24] sm:$0xf] %v1222_v50  ;;  %1288 = vst [vmem:[#allocation2 + $0x38] sm:$0xf] %v1287_v51  ;;  %v1185_v59 = vpack.c.bf16 %v1184_v55, %v1184_v55  ;;  %v1291_v60 = vpack.c.bf16 %v1290_v56, %v1290_v56  ;;  %v1394_v55 = vrot.slane %v1389_v43, %v3285_v17  ;;  %v1400_v43 = vld [vmem:[%s3919_s1 + $0x8] sm:$0x8] }
 0x2f1   : > { %v1362_v56 = vpack.i.b16 %v1360_v48, %v1360_v48 }
 0x2f2   : > { %v1195_v1 = vmul.bf16 %v1194_v52, %v1185_v59  ;;  %v1301_v2 = vmul.bf16 %v1300_v53, %v1291_v60  ;;  %v1180_v59 = vrot.slane %v1175_v47, %v3285_v17  ;;  %v1148_v60 = vpack.i.b16 %v1146_v49, %v1146_v49 }
 0x2f3   : > { %v1157_v6 = vpop.permute.xlu0 %1156  ;;  %v1252_v8 = vpop.permute.xlu1 %1251  ;;  %v1367_v3 = vrot.slane %v1362_v56, %v3203_v4 }
 0x2f4   : > { %1196 = vst [vmem:[#allocation2 + $0x1c] sm:$0xf] %v1195_v1  ;;  %1302 = vst [vmem:[#allocation2 + $0x3c] sm:$0xf] %v1301_v2  ;;  %v1158_v9 = vpack.c.bf16 %v1157_v6, %v1157_v6  ;;  %v1253_v13 = vpack.c.bf16 %v1252_v8, %v1252_v8 }
 0x2f6   : > { %v1168_v16 = vmul.bf16 %v1167_v61, %v1158_v9  ;;  %v1262_v18 = vmul.bf16 %v1261_v62, %v1253_v13  ;;  %v1333_v61 = vld [vmem:[%s3919_s1 + $0x8] sm:$0x2]  ;;  %v1153_v9 = vrot.slane %v1148_v60, %v3203_v4  ;;  %v1121_v13 = vpack.i.b16 %v1119_v0, %v1119_v0 }
 0x2f7   : > { %v1130_v22 = vpop.permute.xlu0 %1129  ;;  %v1225_v25 = vpop.permute.xlu1 %1224  ;;  %v1335_v5 = vpack.i.b16 %v1333_v61, %v1333_v61 }
 0x2f8   : > { %1169 = vst [vmem:[#allocation2 + $0x14] sm:$0xf] %v1168_v16  ;;  %1263 = vst [vmem:[#allocation2 + $0x30] sm:$0xf] %v1262_v18  ;;  %v1131_v27 = vpack.c.bf16 %v1130_v22, %v1130_v22  ;;  %v1226_v28 = vpack.c.bf16 %v1225_v25, %v1225_v25 }
 0x2f9   : > { %v1340_v22 = vrot.slane %v1335_v5, %v3294_v23 }
 0x2fa   : > { %v1141_v31 = vmul.bf16 %v1140_v14, %v1131_v27  ;;  %v1235_v32 = vmul.bf16 %v1234_v19, %v1226_v28  ;;  %v1306_v14 = vld [vmem:[%s3919_s1 + $0x8] sm:$0x1]  ;;  %v1126_v28 = vrot.slane %v1121_v13, %v3294_v23 }
 0x2fb   : > { %v1103_v36 = vpop.permute.xlu0 %1102  ;;  %v1238_v37 = vpop.permute.xlu1 %1237  ;;  %v3002_v38 = vld [vmem:[#allocation2 + $0x38] sm:$0xff]   ;;  %v1308_v25 = vpack.i.b16 %v1306_v14, %v1306_v14 }
 0x2fc   : > { %1142 = vst [vmem:[#allocation2 + $0xc] sm:$0xf] %v1141_v31  ;;  %1236 = vst [vmem:[#allocation2 + $0x28] sm:$0xf] %v1235_v32  ;;  %v1104_v39 = vpack.c.bf16 %v1103_v36, %v1103_v36  ;;  %v1239_v41 = vpack.c.bf16 %v1238_v37, %v1238_v37  ;;  %1573 = vmatpush1.bf16.msra.mxu1 %v3002_v38  ;;  %v1427_v31 = vld [vmem:[%s3919_s1 + $0xc] sm:$0x1]  ;;  %v1443_v37 = vpack.i.b16 %v1441_v30, %v1441_v30 }
 0x2fd   : > { %1574 = vmatprep.subr.bf16.mxu1 %v3080_v10  ;;  %v1313_v36 = vrot.slane %v1308_v25, %v3307_v40 }
 0x2fe   : > { %v1114_v44 = vmul.bf16 %v1113_v29, %v1104_v39  ;;  %v1249_v45 = vmul.bf16 %v1248_v33, %v1239_v41  ;;  %v1094_v29 = vpack.i.b16 %v1092_v15, %v1092_v15  ;;  %v1448_v49 = vrot.slane %v1443_v37, %v3294_v23 }
 0x2ff   : > { %v1412_v50 = vpop.permute.xlu0 %1411  ;;  %v1198_v51 = vpop.permute.xlu1 %1197  ;;  %v3003_v52 = vld [vmem:[#allocation2 + $0x30] sm:$0xff]  }
 0x300   : > { %1115 = vst [vmem:[#allocation2 + $0x4] sm:$0xf] %v1114_v44  ;;  %1250 = vst [vmem:[#allocation2 + $0x2c] sm:$0xf] %v1249_v45  ;;  %v1413_v53 = vpack.c.bf16 %v1412_v50, %v1412_v50  ;;  %v1199_v54 = vpack.c.bf16 %v1198_v51, %v1198_v51  ;;  %1575 = vmatpush1.bf16.msra.mxu1 %v3003_v52  ;;  %v1099_v41 = vrot.slane %v1094_v29, %v3307_v40 }
 0x301   : > { %1576 = vmatprep.subr.bf16.mxu1 %v3080_v10 }
 0x302   : > { %v1422_v57 = vmul.bf16 %v1421_v42, %v1413_v53  ;;  %v1208_v58 = vmul.bf16 %v1207_v46, %v1199_v54  ;;  %v1429_v42 = vshrl.u32 %v1427_v31, 16  ;;  %v1402_v53 = vshrl.u32 %v1400_v43, 16  ;;  %v1373_v54 = vld [vmem:[%s3919_s1 + $0x8] sm:$0x4] }
 0x303   : > { %v1385_v62 = vpop.permute.xlu0 %1384  ;;  %v1171_v63 = vpop.permute.xlu1 %1170  ;;  %v1375_v61 = vshrl.u32 %v1373_v54, 16 }
 0x304   : > { %1423 = vst [vmem:[#allocation2 + $0x60] sm:$0xf] %v1422_v57  ;;  %1209 = vst [vmem:[#allocation2 + $0x20] sm:$0xf] %v1208_v58  ;;  %v1386_v1 = vpack.c.bf16 %v1385_v62, %v1385_v62  ;;  %v1172_v2 = vpack.c.bf16 %v1171_v63, %v1171_v63  ;;  %v1430_v52 = vpack.i.b16 %v1429_v42, %v1429_v42  ;;  %v1346_v62 = vld [vmem:[%s3919_s1 + $0x8] sm:$0x2] }
 0x305   : > { %v1403_v60 = vpack.i.b16 %v1402_v53, %v1402_v53  ;;  %v1376_v5 = vpack.i.b16 %v1375_v61, %v1375_v61 }
 0x306   : > { %v1395_v6 = vmul.bf16 %v1394_v55, %v1386_v1  ;;  %v1181_v8 = vmul.bf16 %v1180_v59, %v1172_v2  ;;  %v1435_v59 = vrot.slane %v1430_v52, %v3307_v40 }
 0x307   : > { %v1358_v16 = vpop.permute.xlu0 %1357  ;;  %v1144_v18 = vpop.permute.xlu1 %1143  ;;  %v3004_v19 = vld [vmem:[#allocation2 + $0x28] sm:$0xff]  }
 0x308   : > { %1396 = vst [vmem:[#allocation2 + $0x58] sm:$0xf] %v1395_v6  ;;  %1182 = vst [vmem:[#allocation2 + $0x18] sm:$0xf] %v1181_v8  ;;  %v1359_v20 = vpack.c.bf16 %v1358_v16, %v1358_v16  ;;  %v1145_v21 = vpack.c.bf16 %v1144_v18, %v1144_v18  ;;  %1577 = vmatpush1.bf16.msra.mxu1 %v3004_v19  ;;  %v1348_v6 = vshrl.u32 %v1346_v62, 16 }
 0x309   : > { %1578 = vmatprep.subr.bf16.mxu1 %v3080_v10  ;;  %v1319_v8 = vld [vmem:[%s3919_s1 + $0x8] sm:$0x1]  ;;  %v1381_v16 = vrot.slane %v1376_v5, %v3203_v4 }
 0x30a   : > { %v1368_v26 = vmul.bf16 %v1367_v3, %v1359_v20  ;;  %v1154_v27 = vmul.bf16 %v1153_v9, %v1145_v21  ;;  %v1408_v3 = vrot.slane %v1403_v60, %v3285_v17  ;;  %v1349_v18 = vpack.i.b16 %v1348_v6, %v1348_v6 }
 0x30b   : > { %v1331_v32 = vpop.permute.xlu0 %1330  ;;  %v1117_v33 = vpop.permute.xlu1 %1116  ;;  %v3005_v34 = vld [vmem:[#allocation2 + $0x20] sm:$0xff]   ;;  %v1321_v19 = vshrl.u32 %v1319_v8, 16 }
 0x30c   : > { %1369 = vst [vmem:[#allocation2 + $0x50] sm:$0xf] %v1368_v26  ;;  %1155 = vst [vmem:[#allocation2 + $0x10] sm:$0xf] %v1154_v27  ;;  %v1332_v11 = vpack.c.bf16 %v1331_v32, %v1331_v32  ;;  %v1118_v35 = vpack.c.bf16 %v1117_v33, %v1117_v33  ;;  %1579 = vmatpush1.bf16.msra.mxu1 %v3005_v34  ;;  %v1354_v27 = vrot.slane %v1349_v18, %v3294_v23 }
 0x30d   : > { %1580 = vmatprep.subr.bf16.mxu1 %v3080_v10 }
 0x30e   : > { %v1341_v38 = vmul.bf16 %v1340_v22, %v1332_v11  ;;  %v1127_v39 = vmul.bf16 %v1126_v28, %v1118_v35  ;;  %v1322_v28 = vpack.i.b16 %v1321_v19, %v1321_v19 }
 0x30f   : > { %v1304_v44 = vpop.permute.xlu0 %1303  ;;  %v1090_v45 = vpop.permute.xlu1 %1089  ;;  %v3006_v46 = vld [vmem:[#allocation2 + $0x18] sm:$0xff]  }
 0x310   : > { %1342 = vst [vmem:[#allocation2 + $0x48] sm:$0xf] %v1341_v38  ;;  %1128 = vst [vmem:[#allocation2 + $0x8] sm:$0xf] %v1127_v39  ;;  %v1305_v47 = vpack.c.bf16 %v1304_v44, %v1304_v44  ;;  %v1091_v48 = vpack.c.bf16 %v1090_v45, %v1090_v45  ;;  %1581 = vmatpush1.bf16.msra.mxu1 %v3006_v46  ;;  %v1327_v33 = vrot.slane %v1322_v28, %v3307_v40 }
 0x311   : > { %1582 = vmatprep.subr.bf16.mxu1 %v3080_v10 }
 0x312   : > { %v1314_v50 = vmul.bf16 %v1313_v36, %v1305_v47  ;;  %v1100_v51 = vmul.bf16 %v1099_v41, %v1091_v48  ;;  %v2895_v41 = vcombine.low %v3445_v24, %v3445_v24  ;;  %v1633_v47 = vld [vmem:[%s4035_s8] sm:$0xff] }
 0x313   : > { %v1439_v55 = vpop.permute.xlu1 %1438  ;;  %v3007_v56 = vld [vmem:[#allocation2 + $0x10] sm:$0xff]   ;;  %v1626_v24 = vld [vmem:[%s4036_s7] sm:$0xff]  ;;  %s4044_s7 = sld [smem:[#allocation13_spill]] }
 0x314   : > { %1315 = vst [vmem:[#allocation2 + $0x40] sm:$0xf] %v1314_v50  ;;  %1101 = vst [vmem:[#allocation2] sm:$0xf] %v1100_v51  ;;  %v1440_v57 = vpack.c.bf16 %v1439_v55, %v1439_v55  ;;  %1583 = vmatpush1.bf16.msra.mxu1 %v3007_v56 }
 0x315   : > { %1584 = vmatprep.subr.bf16.mxu1 %v3080_v10 }
 0x316   : > { %v1449_v58 = vmul.bf16 %v1448_v49, %v1440_v57 }
 0x317   : > { %v1425_v63 = vpop.permute.xlu1 %1424  ;;  %v3008_v0 = vld [vmem:[#allocation2 + $0x8] sm:$0xff]  }
 0x318   : > { %1450 = vst [vmem:[#allocation2 + $0x68] sm:$0xf] %v1449_v58  ;;  %v1426_v1 = vpack.c.bf16 %v1425_v63, %v1425_v63  ;;  %1585 = vmatpush1.bf16.msra.mxu1 %v3008_v0 }
 0x319   : > { %1586 = vmatprep.subr.bf16.mxu1 %v3080_v10 }
 0x31a   : > { %v1436_v2 = vmul.bf16 %v1435_v59, %v1426_v1 }
 0x31b   : > { %v1398_v9 = vpop.permute.xlu1 %1397  ;;  %v3009_v13 = vld [vmem:[#allocation2] sm:$0xff]  }
 0x31c   : > { %1437 = vst [vmem:[#allocation2 + $0x64] sm:$0xf] %v1436_v2  ;;  %v1399_v14 = vpack.c.bf16 %v1398_v9, %v1398_v9  ;;  %1587 = vmatpush1.bf16.msra.mxu1 %v3009_v13 }
 0x31d   : > { %1592 = vmatprep.subr.bf16.mxu1 %v3080_v10 }
 0x31e   : > { %v1409_v15 = vmul.bf16 %v1408_v3, %v1399_v14 }
 0x31f   : > { %v1371_v20 = vpop.permute.xlu1 %1370  ;;  %v3010_v21 = vld [vmem:[#allocation2 + $0x68] ss:$0 sps:$4 sm:$0xff]  }
 0x320   : > { %1410 = vst [vmem:[#allocation2 + $0x5c] sm:$0xf] %v1409_v15  ;;  %v1372_v22 = vpack.c.bf16 %v1371_v20, %v1371_v20  ;;  %v1570_v25 = vsel %vm990_vm1, %v3010_v21, 0 }
 0x321   : > { %1593 = vmatpush2.bf16.msra.mxu1 %v1570_v25 }
 0x322   : > { %v1382_v26 = vmul.bf16 %v1381_v16, %v1372_v22  ;;  %1594 = vmatprep.subr.bf16.mxu1 %v3080_v10 }
 0x323   : > { %v1344_v29 = vpop.permute.xlu1 %1343  ;;  %v3011_v30 = vld [vmem:[#allocation2 + $0x60] sm:$0xff]  }
 0x324   : > { %1383 = vst [vmem:[#allocation2 + $0x54] sm:$0xf] %v1382_v26  ;;  %v1345_v31 = vpack.c.bf16 %v1344_v29, %v1344_v29 }
 0x325   : > { %1595 = vmatpush2.bf16.msra.mxu1 %v3011_v30 }
 0x326   : > { %v1355_v32 = vmul.bf16 %v1354_v27, %v1345_v31  ;;  %1596 = vmatprep.subr.bf16.mxu1 %v3080_v10 }
 0x327   : > { %v1317_v34 = vpop.permute.xlu1 %1316  ;;  %v3012_v11 = vld [vmem:[#allocation2 + $0x58] sm:$0xff]  }
 0x328   : > { %1356 = vst [vmem:[#allocation2 + $0x4c] sm:$0xf] %v1355_v32  ;;  %v1318_v35 = vpack.c.bf16 %v1317_v34, %v1317_v34 }
 0x329   : > { %1597 = vmatpush2.bf16.msra.mxu1 %v3012_v11 }
 0x32a   : > { %v1328_v36 = vmul.bf16 %v1327_v33, %v1318_v35  ;;  %1598 = vmatprep.subr.bf16.mxu1 %v3080_v10 }
 0x32b   : > { %v3013_v37 = vld [vmem:[#allocation2 + $0x50] sm:$0xff]  }
 0x32c   : > { %1329 = vst [vmem:[#allocation2 + $0x44] sm:$0xf] %v1328_v36 }
 0x32d   : > { %1599 = vmatpush2.bf16.msra.mxu1 %v3013_v37  ;;  %v3612_v37 = vld [vmem:[%s4044_s7] sm:$0xff] }
 0x32e   : > { %1600 = vmatprep.subr.bf16.mxu1 %v3080_v10 }
 0x32f   : > { %v3014_v38 = vld [vmem:[#allocation2 + $0x48] sm:$0xff]  }
 0x331   : > { %1601 = vmatpush2.bf16.msra.mxu1 %v3014_v38  ;;  %v2913_v38 = vcombine.high %v3612_v37, %v3612_v37 }
 0x332   : > { %1602 = vmatprep.subr.bf16.mxu1 %v3080_v10 }
 0x333   : > { %v3015_v39 = vld [vmem:[#allocation2 + $0x40] sm:$0xff]   ;;  %2928 = vmatprep.mubr.msk.bf16.mxu0 %vm986_vm0, %v2913_v38 }
 0x335   : > { %1603 = vmatpush2.bf16.msra.mxu1 %v3015_v39  ;;  %v1871_v39 = vld [vmem:[%s3919_s1 + $0x4] sm:$0x8] }
 0x336   : > { %2729 = vmatprep.subr.bf16.mxu1 %v3080_v10 }
 0x338   : > { %1605 = vmatmul.mubr.bf16.vlgmr.msra.gmra.mxu1 %v2895_v41  ;;  %v1873_v41 = vshrl.u32 %v1871_v39, 16 }
 0x3f8   : > { %v1606_v42 = vpop.f32.mrf.mxu1 }
 0x3f9   : > { %1612 = vadd.xlane.f32.xlu0 %v1606_v42  ;;  %v1614_v43 = vmul.f32 %v1606_v42, %v1606_v42 }
 0x3fa   : > { %v1608_v44 = vpop.f32.mrf.mxu1 }
 0x3fb   : > { %1615 = vadd.xlane.f32.xlu1 %v1614_v43  ;;  %v1874_v43 = vpack.i.b16 %v1873_v41, %v1873_v41 }
 0x3fc   : > { %v1609_v45 = vpop.f32.mrf.mxu1 }
 0x3fd   : > { %v1806_v45 = vld [vmem:[%s3919_s1 + $0x4] sm:$0x2] }
 0x3fe   : > { %v1610_v46 = vpop.f32.mrf.mxu1 }
 0x3ff   : > { %v1819_v46 = vld [vmem:[%s3919_s1 + $0x4] sm:$0x2] }
 0x40c   : > { %1636 = vperm.xlu1 %2985, %v1633_v47   ;;  %v1833_v47 = vld [vmem:[%s3919_s1 + $0x4] sm:$0x4] }
 0x40f   : > { %1629 = vperm.xlu0 %2984, %v1626_v24   ;;  %v1808_v24 = vpack.i.b16 %v1806_v45, %v1806_v45 }
 0x482   : > { %v1613_v48 = vpop.xlane.xlu0 %1612 }
 0x483   : > { %v1617_v49 = vmul.f32 0.015625, %v1613_v48  ;;  %v1821_v48 = vshrl.u32 %v1819_v46, 16 }
 0x484   : > { %v1616_v50 = vpop.xlane.xlu1 %1615 }
 0x485   : > { %v1619_v51 = vmul.f32 %v1617_v49, %v1617_v49  ;;  %v1618_v52 = vmul.f32 0.015625, %v1616_v50  ;;  %v1622_v56 = vsub.f32 %v1606_v42, %v1617_v49  ;;  %v1858_v42 = vld [vmem:[%s3919_s1 + $0x4] sm:$0x8]  ;;  %v1879_v49 = vrot.slane %v1874_v43, %v3285_v17 }
 0x486   : > { %v1860_v44 = vpack.i.b16 %v1858_v42, %v1858_v42 }
 0x487   : > { %v1620_v53 = vsub.f32 %v1618_v52, %v1619_v51  ;;  %v1835_v51 = vpack.i.b16 %v1833_v47, %v1833_v47  ;;  %v1779_v52 = vld [vmem:[%s3919_s1 + $0x4] sm:$0x1] }
 0x488   : > { %v1637_v61 = vpop.permute.xlu1 %1636  ;;  %v1865_v50 = vrot.slane %v1860_v44, %v3285_v17 }
 0x489   : > { %v1621_v54 = vmax.f32 %v1620_v53, 0.0 }
 0x48a   : > { %v1630_v59 = vpop.permute.xlu0 %1629 }
 0x48b   : > { %v1623_v55 = vadd.f32 1e-05, %v1621_v54 }
 0x48d   : > { %3056 = vrsqrt.f32 %v1623_v55  ;;  %v1792_v55 = vld [vmem:[%s3919_s1 + $0x4] sm:$0x1] }
 0x49a   : > { %v3057_v57 = vpop.eup %3056 }
 0x49b   : > { %v1625_v58 = vmul.f32 %v3057_v57, %v1622_v56 }
 0x49d   : > { %v1632_v60 = vmul.f32 %v1630_v59, %v1625_v58  ;;  %v1813_v58 = vrot.slane %v1808_v24, %v3294_v23  ;;  %v1781_v59 = vpack.i.b16 %v1779_v52, %v1779_v52  ;;  %v1671_v24 = vld [vmem:[%s3919_s1] sm:$0x1] }
 0x49f   : > { %v1639_v62 = vadd.f32 %v1637_v61, %v1632_v60  ;;  %v1822_v60 = vpack.i.b16 %v1821_v48, %v1821_v48 }
 0x4a1   : > { %v1640_v63 = vadd.f32 %v1639_v62, %v3208_v7  ;;  %v1844_v7 = vld [vmem:[%s3919_s1 + $0x4] sm:$0x4] }
 0x4a2   : > { %v1846_v27 = vshrl.u32 %v1844_v7, 16 }
 0x4a3   : > { %v1642_v0 = vmul.f32 0.70710677, %v1640_v63  ;;  %v1641_v32 = vmul.f32 0.5, %v1640_v63  ;;  %v1840_v63 = vrot.slane %v1835_v51, %v3203_v4 }
 0x4a4   : > { %v1847_v31 = vpack.i.b16 %v1846_v27, %v1846_v27 }
 0x4a5   : > { %v1645_v1 = vand.u32 2147483647, %v1642_v0  ;;  %vm1643_vm3 = vcmp.lt.f32.partialorder %v1642_v0, 0.0  ;;  %v1752_v0 = vld [vmem:[%s3919_s1] sm:$0x8] }
 0x4a6   : > { %v1644_v29 = vsel %vm1643_vm3, -1.0, %v3105_v12  ;;  %v1852_v11 = vrot.slane %v1847_v31, %v3203_v4 }
 0x4a7   : > { %v1646_v2 = vmul.f32 0.3275911, %v1645_v1  ;;  %v1659_v5 = vsub.f32 0.0, %v1645_v1 }
 0x4a9   : > { %v1647_v3 = vadd.f32 1.0, %v1646_v2  ;;  %v1660_v6 = vmul.f32 %v1659_v5, %v1645_v1  ;;  %v1794_v1 = vshrl.u32 %v1792_v55, 16  ;;  %v1765_v5 = vld [vmem:[%s3919_s1] sm:$0x8] }
 0x4ab   : > { %3058 = vrcp.f32 %v1647_v3  ;;  %v1661_v13 = vmul.f32 1.442695, %v1660_v6 }
 0x4ad   : > { %3060 = vpow2.f32 %v1661_v13  ;;  %v1827_v13 = vrot.slane %v1822_v60, %v3294_v23 }
 0x4b8   : > { %v3059_v8 = vpop.eup %3058 }
 0x4b9   : > { %v1650_v9 = vmul.f32 1.0614054, %v3059_v8 }
 0x4ba   : > { %v3061_v25 = vpop.eup %3060 }
 0x4bb   : > { %v1651_v14 = vadd.f32 -1.4531521, %v1650_v9  ;;  %v1786_v9 = vrot.slane %v1781_v59, %v3307_v40 }
 0x4bd   : > { %v1652_v15 = vmul.f32 %v3059_v8, %v1651_v14  ;;  %v1754_v14 = vpack.i.b16 %v1752_v0, %v1752_v0 }
 0x4bf   : > { %v1653_v16 = vadd.f32 1.4214138, %v1652_v15  ;;  %v1759_v27 = vrot.slane %v1754_v14, %v3285_v17 }
 0x4c1   : > { %v1654_v18 = vmul.f32 %v3059_v8, %v1653_v16 }
 0x4c3   : > { %v1655_v19 = vadd.f32 -0.28449672, %v1654_v18  ;;  %v1795_v18 = vpack.i.b16 %v1794_v1, %v1794_v1 }
 0x4c5   : > { %v1656_v20 = vmul.f32 %v3059_v8, %v1655_v19  ;;  %v1725_v19 = vld [vmem:[%s3919_s1] sm:$0x4] }
 0x4c7   : > { %v1657_v21 = vadd.f32 0.2548296, %v1656_v20  ;;  %v1767_v20 = vshrl.u32 %v1765_v5, 16 }
 0x4c9   : > { %v1658_v22 = vmul.f32 %v3059_v8, %v1657_v21  ;;  %v1738_v21 = vld [vmem:[%s3919_s1] sm:$0x4] }
 0x4cb   : > { %v1663_v26 = vmul.f32 %v3061_v25, %v1658_v22 }
 0x4cd   : > { %v1664_v28 = vsub.f32 1.0, %v1663_v26 }
 0x4cf   : > { %v1665_v30 = vmul.f32 %v1664_v28, %v1644_v29  ;;  %v1727_v28 = vpack.i.b16 %v1725_v19, %v1725_v19  ;;  %v1740_v29 = vshrl.u32 %v1738_v21, 16  ;;  %v1979_v19 = vld [vmem:[%s3919_s1 + $0x8] sm:$0x8] }
 0x4d1   : > { %v1666_v33 = vadd.f32 1.0, %v1665_v30  ;;  %v1732_v42 = vrot.slane %v1727_v28, %v3203_v4  ;;  %v1741_v44 = vpack.i.b16 %v1740_v29, %v1740_v29  ;;  %v1981_v28 = vshrl.u32 %v1979_v19, 16 }
 0x4d3   : > { %v1667_v34 = vmul.f32 %v1666_v33, %v1641_v32  ;;  %v1800_v32 = vrot.slane %v1795_v18, %v3307_v40  ;;  %v1768_v33 = vpack.i.b16 %v1767_v20, %v1767_v20  ;;  %v1993_v18 = vld [vmem:[%s3919_s1 + $0xc] sm:$0x1] }
 0x4d5   : > { %1868 = vrot.lane.b32.xlu1 %v1667_v34, %s4037_s12  ;;  %1855 = vrot.lane.b32.xlu0 %v1667_v34, %s4038_s6  ;;  %v1843_v35 = vpack.c.bf16 %v1667_v34, %v1667_v34  ;;  %v1773_v47 = vrot.slane %v1768_v33, %v3285_v17  ;;  %v1966_v33 = vld [vmem:[%s3919_s1 + $0x8] sm:$0x8] }
 0x4d7   : > { %v1853_v36 = vmul.bf16 %v1852_v11, %v1843_v35  ;;  %v1711_v11 = vld [vmem:[%s3919_s1] sm:$0x2] }
 0x4d8   : > { %v1713_v48 = vshrl.u32 %v1711_v11, 16 }
 0x4d9   : > { %1803 = vrot.lane.b32.xlu1 %v1667_v34, %s4015_s20  ;;  %1830 = vrot.lane.b32.xlu0 %v1667_v34, %s4013_s27  ;;  %1854 = vst [vmem:[#allocation2 + $0x34] sm:$0xf] %v1853_v36 }
 0x4da   : > { %v1714_v60 = vpack.i.b16 %v1713_v48, %v1713_v48  ;;  %v1925_v48 = vld [vmem:[%s3919_s1 + $0x8] sm:$0x2] }
 0x4dd   : > { %1776 = vrot.lane.b32.xlu1 %v1667_v34, %s4019_s30  ;;  %1816 = vrot.lane.b32.xlu0 %v1667_v34, %s4017_s16 }
 0x4e1   : > { %1749 = vrot.lane.b32.xlu1 %v1667_v34, %s4021_s21  ;;  %1789 = vrot.lane.b32.xlu0 %v1667_v34, %s4039_s13 }
 0x4e5   : > { %1722 = vrot.lane.b32.xlu1 %v1667_v34, %s4023_s23  ;;  %1762 = vrot.lane.b32.xlu0 %v1667_v34, %s4040_s14 }
 0x4e9   : > { %1695 = vrot.lane.b32.xlu1 %v1667_v34, %s4025_s28  ;;  %1735 = vrot.lane.b32.xlu0 %v1667_v34, %s4041_s19 }
 0x4ed   : > { %1668 = vrot.lane.b32.xlu1 %v1667_v34, %s4027_s3  ;;  %1708 = vrot.lane.b32.xlu0 %v1667_v34, %s4014_s29 }
 0x4f1   : > { %2017 = vrot.lane.b32.xlu1 %v1667_v34, %s4028_s4  ;;  %1681 = vrot.lane.b32.xlu0 %v1667_v34, %s4016_s22 }
 0x4f5   : > { %2003 = vrot.lane.b32.xlu1 %v1667_v34, %s4029_s5  ;;  %1990 = vrot.lane.b32.xlu0 %v1667_v34, %s4018_s25 }
 0x4f9   : > { %1976 = vrot.lane.b32.xlu1 %v1667_v34, %s4030_s18  ;;  %1963 = vrot.lane.b32.xlu0 %v1667_v34, %s4020_s24 }
 0x4fd   : > { %1949 = vrot.lane.b32.xlu1 %v1667_v34, %s4031_s15  ;;  %1936 = vrot.lane.b32.xlu0 %v1667_v34, %s4022_s17  ;;  %s4045_s15 = sld [smem:[#allocation15_spill]] }
 0x501   : > { %1922 = vrot.lane.b32.xlu1 %v1667_v34, %s4032_s2  ;;  %1909 = vrot.lane.b32.xlu0 %v1667_v34, %s4024_s26 }
 0x505   : > { %1895 = vrot.lane.b32.xlu1 %v1667_v34, %s4042_s10  ;;  %1882 = vrot.lane.b32.xlu0 %v1667_v34, %s4043_s0  ;;  %v1698_v34 = vld [vmem:[%s3919_s1] sm:$0x2] }
 0x506   : > { %v1700_v43 = vpack.i.b16 %v1698_v34, %v1698_v34  ;;  %v1952_v34 = vld [vmem:[%s3919_s1 + $0x8] sm:$0x4] }
 0x508   : > { %v1705_v55 = vrot.slane %v1700_v43, %v3294_v23  ;;  %v1954_v43 = vshrl.u32 %v1952_v34, 16 }
 0x547   : > { %v1869_v53 = vpop.permute.xlu1 %1868  ;;  %v1856_v54 = vpop.permute.xlu0 %1855 }
 0x548   : > { %v1870_v56 = vpack.c.bf16 %v1869_v53, %v1869_v53  ;;  %v1857_v57 = vpack.c.bf16 %v1856_v54, %v1856_v54 }
 0x54a   : > { %v1880_v61 = vmul.bf16 %v1879_v49, %v1870_v56  ;;  %v1866_v62 = vmul.bf16 %v1865_v50, %v1857_v57  ;;  %v1684_v49 = vld [vmem:[%s3919_s1] sm:$0x1]  ;;  %v1746_v56 = vrot.slane %v1741_v44, %v3203_v4  ;;  %v1673_v57 = vpack.i.b16 %v1671_v24, %v1671_v24  ;;  %v1939_v24 = vld [vmem:[%s3919_s1 + $0x8] sm:$0x4] }
 0x54b   : > { %v1804_v2 = vpop.permute.xlu1 %1803  ;;  %v1831_v3 = vpop.permute.xlu0 %1830 }
 0x54c   : > { %1881 = vst [vmem:[#allocation2 + $0x3c] sm:$0xf] %v1880_v61  ;;  %1867 = vst [vmem:[#allocation2 + $0x38] sm:$0xf] %v1866_v62  ;;  %v1805_v6 = vpack.c.bf16 %v1804_v2, %v1804_v2  ;;  %v1832_v8 = vpack.c.bf16 %v1831_v3, %v1831_v3  ;;  %v2020_v61 = vld [vmem:[%s3919_s1 + $0xc] sm:$0x2] }
 0x54d   : > { %v1686_v62 = vshrl.u32 %v1684_v49, 16 }
 0x54e   : > { %v1814_v15 = vmul.bf16 %v1813_v58, %v1805_v6  ;;  %v1841_v16 = vmul.bf16 %v1840_v63, %v1832_v8  ;;  %v2006_v63 = vld [vmem:[%s3919_s1 + $0xc] sm:$0x1]  ;;  %v1678_v6 = vrot.slane %v1673_v57, %v3307_v40  ;;  %v2022_v8 = vpack.i.b16 %v2020_v61, %v2020_v61  ;;  %v1912_v61 = vld [vmem:[%s3919_s1 + $0x8] sm:$0x2] }
 0x54f   : > { %v1777_v7 = vpop.permute.xlu1 %1776  ;;  %v1817_v22 = vpop.permute.xlu0 %1816 }
 0x550   : > { %1815 = vst [vmem:[#allocation2 + $0x28] sm:$0xf] %v1814_v15  ;;  %1842 = vst [vmem:[#allocation2 + $0x30] sm:$0xf] %v1841_v16  ;;  %v1778_v25 = vpack.c.bf16 %v1777_v7, %v1777_v7  ;;  %v1818_v26 = vpack.c.bf16 %v1817_v22, %v1817_v22  ;;  %v1719_v15 = vrot.slane %v1714_v60, %v3294_v23 }
 0x551   : > { %v1687_v16 = vpack.i.b16 %v1686_v62, %v1686_v62  ;;  %v1941_v60 = vpack.i.b16 %v1939_v24, %v1939_v24  ;;  %v1898_v62 = vld [vmem:[%s3919_s1 + $0x8] sm:$0x1] }
 0x552   : > { %v1787_v30 = vmul.bf16 %v1786_v9, %v1778_v25  ;;  %v1828_v31 = vmul.bf16 %v1827_v13, %v1818_v26  ;;  %v2008_v9 = vshrl.u32 %v2006_v63, 16  ;;  %v2027_v26 = vrot.slane %v2022_v8, %v3294_v23 }
 0x553   : > { %v1750_v35 = vpop.permute.xlu1 %1749  ;;  %v1790_v36 = vpop.permute.xlu0 %1789  ;;  %v3018_v38 = vld [vmem:[#allocation2 + $0x38] sm:$0xff]   ;;  %v1914_v8 = vpack.i.b16 %v1912_v61, %v1912_v61 }
 0x554   : > { %1788 = vst [vmem:[#allocation2 + $0x20] sm:$0xf] %v1787_v30  ;;  %1829 = vst [vmem:[#allocation2 + $0x2c] sm:$0xf] %v1828_v31  ;;  %v1751_v39 = vpack.c.bf16 %v1750_v35, %v1750_v35  ;;  %v1791_v41 = vpack.c.bf16 %v1790_v36, %v1790_v36  ;;  %2152 = vmatpush1.bf16.msra.mxu0 %v3018_v38  ;;  %v1692_v31 = vrot.slane %v1687_v16, %v3307_v40  ;;  %v1885_v16 = vld [vmem:[%s3919_s1 + $0x8] sm:$0x1] }
 0x555   : > { %2153 = vmatprep.subr.bf16.mxu0 %v3080_v10 }
 0x556   : > { %v1760_v45 = vmul.bf16 %v1759_v27, %v1751_v39  ;;  %v1801_v46 = vmul.bf16 %v1800_v32, %v1791_v41  ;;  %v2009_v27 = vpack.i.b16 %v2008_v9, %v2008_v9  ;;  %v1995_v32 = vpack.i.b16 %v1993_v18, %v1993_v18 }
 0x557   : > { %v1723_v50 = vpop.permute.xlu1 %1722  ;;  %v1763_v51 = vpop.permute.xlu0 %1762  ;;  %v3019_v52 = vld [vmem:[#allocation2 + $0x30] sm:$0xff]  }
 0x558   : > { %1761 = vst [vmem:[#allocation2 + $0x18] sm:$0xf] %v1760_v45  ;;  %1802 = vst [vmem:[#allocation2 + $0x24] sm:$0xf] %v1801_v46  ;;  %v1724_v53 = vpack.c.bf16 %v1723_v50, %v1723_v50  ;;  %v1764_v54 = vpack.c.bf16 %v1763_v51, %v1763_v51  ;;  %2154 = vmatpush1.bf16.msra.mxu0 %v3019_v52  ;;  %v2014_v41 = vrot.slane %v2009_v27, %v3307_v40 }
 0x559   : > { %2155 = vmatprep.subr.bf16.mxu0 %v3080_v10  ;;  %v2000_v46 = vrot.slane %v1995_v32, %v3307_v40 }
 0x55a   : > { %v1733_v58 = vmul.bf16 %v1732_v42, %v1724_v53  ;;  %v1774_v59 = vmul.bf16 %v1773_v47, %v1764_v54  ;;  %v1982_v42 = vpack.i.b16 %v1981_v28, %v1981_v28  ;;  %v1968_v47 = vpack.i.b16 %v1966_v33, %v1966_v33 }
 0x55b   : > { %v1696_v0 = vpop.permute.xlu1 %1695  ;;  %v1736_v1 = vpop.permute.xlu0 %1735  ;;  %v3020_v2 = vld [vmem:[#allocation2 + $0x28] sm:$0xff]  }
 0x55c   : > { %1734 = vst [vmem:[#allocation2 + $0x10] sm:$0xf] %v1733_v58  ;;  %1775 = vst [vmem:[#allocation2 + $0x1c] sm:$0xf] %v1774_v59  ;;  %v1697_v3 = vpack.c.bf16 %v1696_v0, %v1696_v0  ;;  %v1737_v5 = vpack.c.bf16 %v1736_v1, %v1736_v1  ;;  %2156 = vmatpush1.bf16.msra.mxu0 %v3020_v2  ;;  %v1987_v54 = vrot.slane %v1982_v42, %v3285_v17 }
 0x55d   : > { %2157 = vmatprep.subr.bf16.mxu0 %v3080_v10  ;;  %v1973_v59 = vrot.slane %v1968_v47, %v3285_v17 }
 0x55e   : > { %v1706_v13 = vmul.bf16 %v1705_v55, %v1697_v3  ;;  %v1747_v14 = vmul.bf16 %v1746_v56, %v1737_v5  ;;  %v1955_v55 = vpack.i.b16 %v1954_v43, %v1954_v43  ;;  %v1927_v56 = vshrl.u32 %v1925_v48, 16 }
 0x55f   : > { %v1669_v20 = vpop.permute.xlu1 %1668  ;;  %v1709_v21 = vpop.permute.xlu0 %1708  ;;  %v3021_v7 = vld [vmem:[#allocation2 + $0x20] sm:$0xff]  }
 0x560   : > { %1707 = vst [vmem:[#allocation2 + $0x8] sm:$0xf] %v1706_v13  ;;  %1748 = vst [vmem:[#allocation2 + $0x14] sm:$0xf] %v1747_v14  ;;  %v1670_v22 = vpack.c.bf16 %v1669_v20, %v1669_v20  ;;  %v1710_v25 = vpack.c.bf16 %v1709_v21, %v1709_v21  ;;  %2158 = vmatpush1.bf16.msra.mxu0 %v3021_v7  ;;  %v1960_v5 = vrot.slane %v1955_v55, %v3203_v4 }
 0x561   : > { %2159 = vmatprep.subr.bf16.mxu0 %v3080_v10  ;;  %v1946_v14 = vrot.slane %v1941_v60, %v3203_v4 }
 0x562   : > { %v1679_v29 = vmul.bf16 %v1678_v6, %v1670_v22  ;;  %v1720_v30 = vmul.bf16 %v1719_v15, %v1710_v25  ;;  %v1928_v6 = vpack.i.b16 %v1927_v56, %v1927_v56  ;;  %v1900_v15 = vshrl.u32 %v1898_v62, 16 }
 0x563   : > { %v2018_v11 = vpop.permute.xlu1 %2017  ;;  %v1682_v35 = vpop.permute.xlu0 %1681  ;;  %v3022_v36 = vld [vmem:[#allocation2 + $0x18] sm:$0xff]  }
 0x564   : > { %1680 = vst [vmem:[#allocation2] sm:$0xf] %v1679_v29  ;;  %1721 = vst [vmem:[#allocation2 + $0xc] sm:$0xf] %v1720_v30  ;;  %v2019_v38 = vpack.c.bf16 %v2018_v11, %v2018_v11  ;;  %v1683_v39 = vpack.c.bf16 %v1682_v35, %v1682_v35  ;;  %2160 = vmatpush1.bf16.msra.mxu0 %v3022_v36  ;;  %v1933_v25 = vrot.slane %v1928_v6, %v3294_v23 }
 0x565   : > { %2161 = vmatprep.subr.bf16.mxu0 %v3080_v10  ;;  %v1901_v29 = vpack.i.b16 %v1900_v15, %v1900_v15  ;;  %v1887_v30 = vpack.i.b16 %v1885_v16, %v1885_v16 }
 0x566   : > { %v2028_v44 = vmul.bf16 %v2027_v26, %v2019_v38  ;;  %v1693_v45 = vmul.bf16 %v1692_v31, %v1683_v39  ;;  %v1919_v26 = vrot.slane %v1914_v8, %v3294_v23 }
 0x567   : > { %v2004_v49 = vpop.permute.xlu1 %2003  ;;  %v1991_v50 = vpop.permute.xlu0 %1990  ;;  %v3023_v51 = vld [vmem:[#allocation2 + $0x10] sm:$0xff]   ;;  %v1906_v38 = vrot.slane %v1901_v29, %v3307_v40  ;;  %v1892_v39 = vrot.slane %v1887_v30, %v3307_v40 }
 0x568   : > { %2029 = vst [vmem:[#allocation2 + $0x68] sm:$0xf] %v2028_v44  ;;  %1694 = vst [vmem:[#allocation2 + $0x4] sm:$0xf] %v1693_v45  ;;  %v2005_v52 = vpack.c.bf16 %v2004_v49, %v2004_v49  ;;  %v1992_v53 = vpack.c.bf16 %v1991_v50, %v1991_v50  ;;  %2162 = vmatpush1.bf16.msra.mxu0 %v3023_v51  ;;  %v2912_v51 = vcombine.low %v3612_v37, %v3612_v37 }
 0x569   : > { %2163 = vmatprep.subr.bf16.mxu0 %v3080_v10 }
 0x56a   : > { %v2015_v57 = vmul.bf16 %v2014_v41, %v2005_v52  ;;  %v2001_v58 = vmul.bf16 %v2000_v46, %v1992_v53 }
 0x56b   : > { %v1977_v63 = vpop.permute.xlu1 %1976  ;;  %v1964_v0 = vpop.permute.xlu0 %1963  ;;  %v3024_v1 = vld [vmem:[#allocation2 + $0x8] sm:$0xff]  }
 0x56c   : > { %2016 = vst [vmem:[#allocation2 + $0x64] sm:$0xf] %v2015_v57  ;;  %2002 = vst [vmem:[#allocation2 + $0x60] sm:$0xf] %v2001_v58  ;;  %v1978_v2 = vpack.c.bf16 %v1977_v63, %v1977_v63  ;;  %v1965_v3 = vpack.c.bf16 %v1964_v0, %v1964_v0  ;;  %2164 = vmatpush1.bf16.msra.mxu0 %v3024_v1  ;;  %v2212_v57 = vld [vmem:[%s4045_s15] sm:$0xff] }
 0x56d   : > { %2165 = vmatprep.subr.bf16.mxu0 %v3080_v10  ;;  %v2205_v58 = vld [vmem:[%s4046_s9] sm:$0xff] }
 0x56e   : > { %v1988_v9 = vmul.bf16 %v1987_v54, %v1978_v2  ;;  %v1974_v13 = vmul.bf16 %v1973_v59, %v1965_v3 }
 0x56f   : > { %v1950_v18 = vpop.permute.xlu1 %1949  ;;  %v1937_v19 = vpop.permute.xlu0 %1936  ;;  %v3025_v20 = vld [vmem:[#allocation2] sm:$0xff]   ;;  %v3026_v22 = vld [vmem:[#allocation2 + $0x68] ss:$0 sps:$4 sm:$0xff]  }
 0x570   : > { %1989 = vst [vmem:[#allocation2 + $0x5c] sm:$0xf] %v1988_v9  ;;  %1975 = vst [vmem:[#allocation2 + $0x58] sm:$0xf] %v1974_v13  ;;  %v1951_v21 = vpack.c.bf16 %v1950_v18, %v1950_v18  ;;  %v1938_v7 = vpack.c.bf16 %v1937_v19, %v1937_v19  ;;  %2166 = vmatpush1.bf16.msra.mxu0 %v3025_v20  ;;  %v2149_v11 = vsel %vm990_vm1, %v3026_v22, 0 }
 0x571   : > { %2171 = vmatprep.subr.bf16.mxu0 %v3080_v10 }
 0x572   : > { %v1961_v27 = vmul.bf16 %v1960_v5, %v1951_v21  ;;  %v1947_v28 = vmul.bf16 %v1946_v14, %v1938_v7 }
 0x573   : > { %v1923_v31 = vpop.permute.xlu1 %1922  ;;  %v1910_v32 = vpop.permute.xlu0 %1909  ;;  %v3027_v43 = vld [vmem:[#allocation2 + $0x60] sm:$0xff]  }
 0x574   : > { %1962 = vst [vmem:[#allocation2 + $0x54] sm:$0xf] %v1961_v27  ;;  %1948 = vst [vmem:[#allocation2 + $0x50] sm:$0xf] %v1947_v28  ;;  %v1924_v33 = vpack.c.bf16 %v1923_v31, %v1923_v31  ;;  %v1911_v34 = vpack.c.bf16 %v1910_v32, %v1910_v32  ;;  %2172 = vmatpush2.bf16.msra.mxu0 %v2149_v11  ;;  %v2422_v32 = vld [vmem:[%s3919_s1 + $0x4] sm:$0x4] }
 0x575   : > { %2173 = vmatprep.subr.bf16.mxu0 %v3080_v10 }
 0x576   : > { %v1934_v35 = vmul.bf16 %v1933_v25, %v1924_v33  ;;  %v1920_v36 = vmul.bf16 %v1919_v26, %v1911_v34 }
 0x577   : > { %v1896_v41 = vpop.permute.xlu1 %1895  ;;  %v1883_v42 = vpop.permute.xlu0 %1882  ;;  %v3028_v24 = vld [vmem:[#allocation2 + $0x58] sm:$0xff]  }
 0x578   : > { %1935 = vst [vmem:[#allocation2 + $0x4c] sm:$0xf] %v1934_v35  ;;  %1921 = vst [vmem:[#allocation2 + $0x48] sm:$0xf] %v1920_v36  ;;  %v1897_v44 = vpack.c.bf16 %v1896_v41, %v1896_v41  ;;  %v1884_v45 = vpack.c.bf16 %v1883_v42, %v1883_v42  ;;  %2174 = vmatpush2.bf16.msra.mxu0 %v3027_v43  ;;  %v2424_v35 = vshrl.u32 %v2422_v32, 16 }
 0x579   : > { %2175 = vmatprep.subr.bf16.mxu0 %v3080_v10 }
 0x57a   : > { %v1907_v46 = vmul.bf16 %v1906_v38, %v1897_v44  ;;  %v1893_v47 = vmul.bf16 %v1892_v39, %v1884_v45  ;;  %v2425_v41 = vpack.i.b16 %v2424_v35, %v2424_v35 }
 0x57b   : > { %v3029_v48 = vld [vmem:[#allocation2 + $0x50] sm:$0xff]  }
 0x57c   : > { %1908 = vst [vmem:[#allocation2 + $0x44] sm:$0xf] %v1907_v46  ;;  %1894 = vst [vmem:[#allocation2 + $0x40] sm:$0xf] %v1893_v47  ;;  %2176 = vmatpush2.bf16.msra.mxu0 %v3028_v24  ;;  %v2430_v45 = vrot.slane %v2425_v41, %v3203_v4 }
 0x57d   : > { %2177 = vmatprep.subr.bf16.mxu0 %v3080_v10 }
 0x57f   : > { %v3030_v49 = vld [vmem:[#allocation2 + $0x48] sm:$0xff]  }
 0x580   : > { %2178 = vmatpush2.bf16.msra.mxu0 %v3029_v48  ;;  %v2449_v48 = vld [vmem:[%s3919_s1 + $0x4] sm:$0x8] }
 0x581   : > { %2179 = vmatprep.subr.bf16.mxu0 %v3080_v10 }
 0x583   : > { %v3031_v50 = vld [vmem:[#allocation2 + $0x40] sm:$0xff]  }
 0x584   : > { %2180 = vmatpush2.bf16.msra.mxu0 %v3030_v49  ;;  %v2451_v49 = vshrl.u32 %v2449_v48, 16 }
 0x585   : > { %2181 = vmatprep.subr.bf16.mxu0 %v3080_v10 }
 0x588   : > { %2182 = vmatpush2.bf16.msra.mxu0 %v3031_v50  ;;  %v2436_v50 = vld [vmem:[%s3919_s1 + $0x4] sm:$0x8] }
 0x58b   : > { %2184 = vmatmul.mubr.bf16.vlgmr.msra.gmra.mxu0 %v2912_v51  ;;  %v2452_v51 = vpack.i.b16 %v2451_v49, %v2451_v49 }
 0x64b   : > { %v2185_v52 = vpop.f32.mrf.mxu0 }
 0x64c   : > { %2191 = vadd.xlane.f32.xlu0 %v2185_v52  ;;  %v2193_v53 = vmul.f32 %v2185_v52, %v2185_v52 }
 0x64d   : > { %v2187_v54 = vpop.f32.mrf.mxu0 }
 0x64e   : > { %2194 = vadd.xlane.f32.xlu1 %v2193_v53  ;;  %v2384_v53 = vld [vmem:[%s3919_s1 + $0x4] sm:$0x2] }
 0x64f   : > { %v2188_v55 = vpop.f32.mrf.mxu0  ;;  %v2397_v54 = vld [vmem:[%s3919_s1 + $0x4] sm:$0x2] }
 0x650   : > { %v2411_v55 = vld [vmem:[%s3919_s1 + $0x4] sm:$0x4] }
 0x651   : > { %v2189_v56 = vpop.f32.mrf.mxu0 }
 0x652   : > { %v2386_v56 = vpack.i.b16 %v2384_v53, %v2384_v53 }
 0x65f   : > { %2215 = vperm.xlu1 %2985, %v2212_v57   ;;  %v2399_v57 = vshrl.u32 %v2397_v54, 16 }
 0x662   : > { %2208 = vperm.xlu0 %2984, %v2205_v58   ;;  %v2457_v58 = vrot.slane %v2452_v51, %v3285_v17 }
 0x6d5   : > { %v2192_v37 = vpop.xlane.xlu0 %2191 }
 0x6d6   : > { %v2196_v59 = vmul.f32 0.015625, %v2192_v37 }
 0x6d7   : > { %v2195_v60 = vpop.xlane.xlu1 %2194 }
 0x6d8   : > { %v2198_v61 = vmul.f32 %v2196_v59, %v2196_v59  ;;  %v2197_v62 = vmul.f32 0.015625, %v2195_v60  ;;  %v2201_v2 = vsub.f32 %v2185_v52, %v2196_v59  ;;  %v2438_v52 = vpack.i.b16 %v2436_v50, %v2436_v50  ;;  %v2357_v60 = vld [vmem:[%s3919_s1 + $0x4] sm:$0x1] }
 0x6d9   : > { %v2413_v59 = vpack.i.b16 %v2411_v55, %v2411_v55  ;;  %v2249_v55 = vld [vmem:[%s3919_s1] sm:$0x1] }
 0x6da   : > { %v2199_v63 = vsub.f32 %v2197_v62, %v2198_v61  ;;  %v2443_v37 = vrot.slane %v2438_v52, %v3285_v17 }
 0x6db   : > { %v2216_v9 = vpop.permute.xlu1 %2215 }
 0x6dc   : > { %v2200_v0 = vmax.f32 %v2199_v63, 0.0  ;;  %v2370_v63 = vld [vmem:[%s3919_s1 + $0x4] sm:$0x1] }
 0x6dd   : > { %v2209_v6 = vpop.permute.xlu0 %2208 }
 0x6de   : > { %v2202_v1 = vadd.f32 1e-05, %v2200_v0 }
 0x6e0   : > { %3062 = vrsqrt.f32 %v2202_v1 }
 0x6ed   : > { %v3063_v3 = vpop.eup %3062 }
 0x6ee   : > { %v2204_v5 = vmul.f32 %v3063_v3, %v2201_v2  ;;  %v2391_v2 = vrot.slane %v2386_v56, %v3294_v23  ;;  %v2359_v3 = vpack.i.b16 %v2357_v60, %v2357_v60 }
 0x6f0   : > { %v2211_v8 = vmul.f32 %v2209_v6, %v2204_v5  ;;  %v2400_v5 = vpack.i.b16 %v2399_v57, %v2399_v57  ;;  %v2262_v57 = vld [vmem:[%s3919_s1] sm:$0x1] }
 0x6f2   : > { %v2218_v13 = vadd.f32 %v2216_v9, %v2211_v8  ;;  %v2418_v9 = vrot.slane %v2413_v59, %v3203_v4 }
 0x6f4   : > { %v2220_v14 = vmul.f32 0.70710677, %v2218_v13  ;;  %v2219_v42 = vmul.f32 0.5, %v2218_v13  ;;  %v2330_v13 = vld [vmem:[%s3919_s1] sm:$0x8] }
 0x6f6   : > { %v2223_v15 = vand.u32 2147483647, %v2220_v14  ;;  %vm2221_vm4 = vcmp.lt.f32.partialorder %v2220_v14, 0.0  ;;  %v2372_v14 = vshrl.u32 %v2370_v63, 16 }
 0x6f7   : > { %v2222_v38 = vsel %vm2221_vm4, -1.0, %v3105_v12 }
 0x6f8   : > { %v2224_v16 = vmul.f32 0.3275911, %v2223_v15  ;;  %v2237_v19 = vsub.f32 0.0, %v2223_v15 }
 0x6fa   : > { %v2225_v18 = vadd.f32 1.0, %v2224_v16  ;;  %v2238_v20 = vmul.f32 %v2237_v19, %v2223_v15 }
 0x6fc   : > { %3064 = vrcp.f32 %v2225_v18  ;;  %v2239_v22 = vmul.f32 1.442695, %v2238_v20  ;;  %v2343_v18 = vld [vmem:[%s3919_s1] sm:$0x8] }
 0x6fe   : > { %3066 = vpow2.f32 %v2239_v22  ;;  %v2332_v22 = vpack.i.b16 %v2330_v13, %v2330_v13 }
 0x709   : > { %v3065_v21 = vpop.eup %3064 }
 0x70a   : > { %v2228_v7 = vmul.f32 1.0614054, %v3065_v21 }
 0x70b   : > { %v3067_v34 = vpop.eup %3066 }
 0x70c   : > { %v2229_v25 = vadd.f32 -1.4531521, %v2228_v7  ;;  %v2405_v7 = vrot.slane %v2400_v5, %v3294_v23  ;;  %v2598_v5 = vld [vmem:[%s3919_s1 + $0xc] sm:$0x2] }
 0x70e   : > { %v2230_v26 = vmul.f32 %v3065_v21, %v2229_v25 }
 0x710   : > { %v2231_v27 = vadd.f32 1.4214138, %v2230_v26 }
 0x712   : > { %v2232_v28 = vmul.f32 %v3065_v21, %v2231_v27  ;;  %v2373_v27 = vpack.i.b16 %v2372_v14, %v2372_v14 }
 0x714   : > { %v2233_v29 = vadd.f32 -0.28449672, %v2232_v28  ;;  %v2303_v28 = vld [vmem:[%s3919_s1] sm:$0x4]  ;;  %v2378_v41 = vrot.slane %v2373_v27, %v3307_v40  ;;  %v2557_v27 = vld [vmem:[%s3919_s1 + $0x8] sm:$0x8] }
 0x715   : > { %v2305_v35 = vpack.i.b16 %v2303_v28, %v2303_v28 }
 0x716   : > { %v2234_v30 = vmul.f32 %v3065_v21, %v2233_v29  ;;  %v2345_v29 = vshrl.u32 %v2343_v18, 16 }
 0x717   : > { %v2310_v49 = vrot.slane %v2305_v35, %v3203_v4 }
 0x718   : > { %v2235_v31 = vadd.f32 0.2548296, %v2234_v30  ;;  %v2316_v30 = vld [vmem:[%s3919_s1] sm:$0x4] }
 0x71a   : > { %v2236_v33 = vmul.f32 %v3065_v21, %v2235_v31  ;;  %v2364_v21 = vrot.slane %v2359_v3, %v3307_v40 }
 0x71c   : > { %v2241_v11 = vmul.f32 %v3067_v34, %v2236_v33 }
 0x71e   : > { %v2242_v36 = vsub.f32 1.0, %v2241_v11  ;;  %v2337_v11 = vrot.slane %v2332_v22, %v3285_v17 }
 0x720   : > { %v2243_v39 = vmul.f32 %v2242_v36, %v2222_v38  ;;  %v2318_v36 = vshrl.u32 %v2316_v30, 16 }
 0x722   : > { %v2244_v43 = vadd.f32 1.0, %v2243_v39  ;;  %v2319_v51 = vpack.i.b16 %v2318_v36, %v2318_v36 }
 0x724   : > { %v2245_v44 = vmul.f32 %v2244_v43, %v2219_v42  ;;  %v2346_v42 = vpack.i.b16 %v2345_v29, %v2345_v29  ;;  %v2276_v43 = vld [vmem:[%s3919_s1] sm:$0x2]  ;;  %v2324_v63 = vrot.slane %v2319_v51, %v3203_v4 }
 0x725   : > { %v2278_v50 = vpack.i.b16 %v2276_v43, %v2276_v43 }
 0x726   : > { %2446 = vrot.lane.b32.xlu1 %v2245_v44, %s4037_s12  ;;  %2433 = vrot.lane.b32.xlu0 %v2245_v44, %s4038_s6  ;;  %v2421_v46 = vpack.c.bf16 %v2245_v44, %v2245_v44  ;;  %v2351_v54 = vrot.slane %v2346_v42, %v3285_v17  ;;  %v2530_v42 = vld [vmem:[%s3919_s1 + $0x8] sm:$0x4]  ;;  %s4058_s12 = sld [smem:[#allocation19_spill]] }
 0x728   : > { %v2431_v47 = vmul.bf16 %v2430_v45, %v2421_v46 }
 0x72a   : > { %2381 = vrot.lane.b32.xlu1 %v2245_v44, %s4015_s20  ;;  %2408 = vrot.lane.b32.xlu0 %v2245_v44, %s4013_s27  ;;  %2432 = vst [vmem:[#allocation2 + $0x34] sm:$0xf] %v2431_v47  ;;  %s4051_s27 = smov 123   ;;  %s4053_s20 = sld [smem:[#allocation16_spill]] }
 0x72e   : > { %2354 = vrot.lane.b32.xlu1 %v2245_v44, %s4019_s30  ;;  %2394 = vrot.lane.b32.xlu0 %v2245_v44, %s4017_s16  ;;  %s4057_s16 = sld [smem:[#allocation6_spill]] }
 0x730   : > { %v3777_v12 = vld [vmem:[%s4053_s20] sm:$0xff]  ;;  %s4056_s20 = sld [smem:[#allocation17_spill]] }
 0x731   : > { %v2930_v24 = vcombine.high %v3777_v12, %v3777_v12 }
 0x732   : > { %2327 = vrot.lane.b32.xlu1 %v2245_v44, %s4021_s21  ;;  %2367 = vrot.lane.b32.xlu0 %v2245_v44, %s4039_s13  ;;  %s4047_s21 = smov 113  }
 0x733   : > { %2945 = vmatprep.mubr.msk.bf16.mxu1 %vm986_vm0, %v2930_v24 }
 0x736   : > { %2300 = vrot.lane.b32.xlu1 %v2245_v44, %s4023_s23  ;;  %2340 = vrot.lane.b32.xlu0 %v2245_v44, %s4040_s14  ;;  %s4049_s23 = smov 116  }
 0x73a   : > { %2273 = vrot.lane.b32.xlu1 %v2245_v44, %s4025_s28  ;;  %2313 = vrot.lane.b32.xlu0 %v2245_v44, %s4041_s19  ;;  %s4048_s28 = smov 115  }
 0x73e   : > { %2246 = vrot.lane.b32.xlu1 %v2245_v44, %s4027_s3  ;;  %2286 = vrot.lane.b32.xlu0 %v2245_v44, %s4014_s29  ;;  %s4050_s3 = smov 117  }
 0x742   : > { %2595 = vrot.lane.b32.xlu1 %v2245_v44, %s4028_s4  ;;  %2259 = vrot.lane.b32.xlu0 %v2245_v44, %s4016_s22  ;;  %s4052_s4 = smov 124  }
 0x746   : > { %2581 = vrot.lane.b32.xlu1 %v2245_v44, %s4029_s5  ;;  %2568 = vrot.lane.b32.xlu0 %v2245_v44, %s4018_s25 }
 0x74a   : > { %2554 = vrot.lane.b32.xlu1 %v2245_v44, %s4030_s18  ;;  %2541 = vrot.lane.b32.xlu0 %v2245_v44, %s4020_s24 }
 0x74e   : > { %2527 = vrot.lane.b32.xlu1 %v2245_v44, %s4047_s21  ;;  %2514 = vrot.lane.b32.xlu0 %v2245_v44, %s4048_s28  ;;  %s4054_s28 = sld [smem:[#allocation4_spill]] }
 0x752   : > { %2500 = vrot.lane.b32.xlu1 %v2245_v44, %s4049_s23  ;;  %2487 = vrot.lane.b32.xlu0 %v2245_v44, %s4050_s3 }
 0x756   : > { %2473 = vrot.lane.b32.xlu1 %v2245_v44, %s4051_s27  ;;  %2460 = vrot.lane.b32.xlu0 %v2245_v44, %s4052_s4  ;;  %v2289_v44 = vld [vmem:[%s3919_s1] sm:$0x2]  ;;  %s4055_s27 = sld [smem:[#allocation18_spill]]  ;;  %s2876_s4 = sshll.u32 %s4054_s28, 3 }
 0x757   : > { %v2291_v56 = vshrl.u32 %v2289_v44, 16  ;;  %s502_s25 = scalar_lea.vmem %s4057_s16, %s2876_s4  ;;  %s506_s6 = scalar_lea.vmem %s4058_s12, %s2876_s4 }
 0x759   : > { %v2292_v3 = vpack.i.b16 %v2291_v56, %v2291_v56 }
 0x75b   : > { %v2297_v22 = vrot.slane %v2292_v3, %v3294_v23  ;;  %v2490_v3 = vld [vmem:[%s3919_s1 + $0x8] sm:$0x2] }
 0x798   : > { %v2447_v61 = vpop.permute.xlu1 %2446  ;;  %v2434_v62 = vpop.permute.xlu0 %2433 }
 0x799   : > { %v2448_v0 = vpack.c.bf16 %v2447_v61, %v2447_v61  ;;  %v2435_v1 = vpack.c.bf16 %v2434_v62, %v2434_v62  ;;  %v2283_v62 = vrot.slane %v2278_v50, %v3294_v23 }
 0x79b   : > { %v2458_v6 = vmul.bf16 %v2457_v58, %v2448_v0  ;;  %v2444_v8 = vmul.bf16 %v2443_v37, %v2435_v1  ;;  %v2251_v0 = vpack.i.b16 %v2249_v55, %v2249_v55  ;;  %v2503_v55 = vld [vmem:[%s3919_s1 + $0x8] sm:$0x2] }
 0x79c   : > { %v2382_v15 = vpop.permute.xlu1 %2381  ;;  %v2409_v16 = vpop.permute.xlu0 %2408 }
 0x79d   : > { %2459 = vst [vmem:[#allocation2 + $0x3c] sm:$0xf] %v2458_v6  ;;  %2445 = vst [vmem:[#allocation2 + $0x38] sm:$0xf] %v2444_v8  ;;  %v2383_v19 = vpack.c.bf16 %v2382_v15, %v2382_v15  ;;  %v2410_v20 = vpack.c.bf16 %v2409_v16, %v2409_v16  ;;  %v2264_v6 = vshrl.u32 %v2262_v57, 16  ;;  %v2256_v18 = vrot.slane %v2251_v0, %v3307_v40 }
 0x79e   : > { %v2584_v8 = vld [vmem:[%s3919_s1 + $0xc] sm:$0x1] }
 0x79f   : > { %v2392_v25 = vmul.bf16 %v2391_v2, %v2383_v19  ;;  %v2419_v26 = vmul.bf16 %v2418_v9, %v2410_v20  ;;  %v2600_v19 = vpack.i.b16 %v2598_v5, %v2598_v5  ;;  %v2586_v20 = vshrl.u32 %v2584_v8, 16  ;;  %v2476_v5 = vld [vmem:[%s3919_s1 + $0x8] sm:$0x1] }
 0x7a0   : > { %v2355_v31 = vpop.permute.xlu1 %2354  ;;  %v2395_v32 = vpop.permute.xlu0 %2394 }
 0x7a1   : > { %2393 = vst [vmem:[#allocation2 + $0x28] sm:$0xf] %v2392_v25  ;;  %2420 = vst [vmem:[#allocation2 + $0x30] sm:$0xf] %v2419_v26  ;;  %v2356_v33 = vpack.c.bf16 %v2355_v31, %v2355_v31  ;;  %v2396_v34 = vpack.c.bf16 %v2395_v32, %v2395_v32  ;;  %v2265_v25 = vpack.i.b16 %v2264_v6, %v2264_v6  ;;  %v2571_v26 = vld [vmem:[%s3919_s1 + $0xc] sm:$0x1] }
 0x7a3   : > { %v2365_v38 = vmul.bf16 %v2364_v21, %v2356_v33  ;;  %v2406_v39 = vmul.bf16 %v2405_v7, %v2396_v34  ;;  %v2605_v33 = vrot.slane %v2600_v19, %v3294_v23  ;;  %v2587_v34 = vpack.i.b16 %v2586_v20, %v2586_v20 }
 0x7a4   : > { %v2328_v45 = vpop.permute.xlu1 %2327  ;;  %v2368_v46 = vpop.permute.xlu0 %2367  ;;  %v3034_v47 = vld [vmem:[#allocation2 + $0x38] sm:$0xff]  }
 0x7a5   : > { %2366 = vst [vmem:[#allocation2 + $0x20] sm:$0xf] %v2365_v38  ;;  %2407 = vst [vmem:[#allocation2 + $0x2c] sm:$0xf] %v2406_v39  ;;  %v2329_v24 = vpack.c.bf16 %v2328_v45, %v2328_v45  ;;  %v2369_v48 = vpack.c.bf16 %v2368_v46, %v2368_v46  ;;  %2730 = vmatpush1.bf16.msra.mxu1 %v3034_v47  ;;  %v2270_v38 = vrot.slane %v2265_v25, %v3307_v40 }
 0x7a6   : > { %2731 = vmatprep.subr.bf16.mxu1 %v3080_v10  ;;  %v2573_v39 = vpack.i.b16 %v2571_v26, %v2571_v26 }
 0x7a7   : > { %v2338_v52 = vmul.bf16 %v2337_v11, %v2329_v24  ;;  %v2379_v53 = vmul.bf16 %v2378_v41, %v2369_v48  ;;  %v2559_v11 = vshrl.u32 %v2557_v27, 16  ;;  %v2544_v41 = vld [vmem:[%s3919_s1 + $0x8] sm:$0x8]  ;;  %v2592_v24 = vrot.slane %v2587_v34, %v3307_v40 }
 0x7a8   : > { %v2301_v58 = vpop.permute.xlu1 %2300  ;;  %v2341_v37 = vpop.permute.xlu0 %2340  ;;  %v3035_v59 = vld [vmem:[#allocation2 + $0x30] sm:$0xff]  }
 0x7a9   : > { %2339 = vst [vmem:[#allocation2 + $0x18] sm:$0xf] %v2338_v52  ;;  %2380 = vst [vmem:[#allocation2 + $0x24] sm:$0xf] %v2379_v53  ;;  %v2302_v60 = vpack.c.bf16 %v2301_v58, %v2301_v58  ;;  %v2342_v61 = vpack.c.bf16 %v2341_v37, %v2341_v37  ;;  %2732 = vmatpush1.bf16.msra.mxu1 %v3035_v59  ;;  %v2560_v48 = vpack.i.b16 %v2559_v11, %v2559_v11 }
 0x7aa   : > { %2733 = vmatprep.subr.bf16.mxu1 %v3080_v10  ;;  %v2578_v52 = vrot.slane %v2573_v39, %v3307_v40  ;;  %v2546_v53 = vpack.i.b16 %v2544_v41, %v2544_v41 }
 0x7ab   : > { %v2311_v1 = vmul.bf16 %v2310_v49, %v2302_v60  ;;  %v2352_v2 = vmul.bf16 %v2351_v54, %v2342_v61  ;;  %v2532_v49 = vshrl.u32 %v2530_v42, 16  ;;  %v2517_v54 = vld [vmem:[%s3919_s1 + $0x8] sm:$0x4]  ;;  %v2565_v60 = vrot.slane %v2560_v48, %v3285_v17 }
 0x7ac   : > { %v2274_v9 = vpop.permute.xlu1 %2273  ;;  %v2314_v13 = vpop.permute.xlu0 %2313  ;;  %v3036_v14 = vld [vmem:[#allocation2 + $0x28] sm:$0xff]  }
 0x7ad   : > { %2312 = vst [vmem:[#allocation2 + $0x10] sm:$0xf] %v2311_v1  ;;  %2353 = vst [vmem:[#allocation2 + $0x1c] sm:$0xf] %v2352_v2  ;;  %v2275_v15 = vpack.c.bf16 %v2274_v9, %v2274_v9  ;;  %v2315_v16 = vpack.c.bf16 %v2314_v13, %v2314_v13  ;;  %2734 = vmatpush1.bf16.msra.mxu1 %v3036_v14  ;;  %v2533_v61 = vpack.i.b16 %v2532_v49, %v2532_v49 }
 0x7ae   : > { %2735 = vmatprep.subr.bf16.mxu1 %v3080_v10  ;;  %v2551_v1 = vrot.slane %v2546_v53, %v3285_v17  ;;  %v2519_v2 = vpack.i.b16 %v2517_v54, %v2517_v54  ;;  %v2929_v53 = vcombine.low %v3777_v12, %v3777_v12  ;;  %v2797_v12 = vld [vmem:[%s502_s25] sm:$0xff] }
 0x7af   : > { %v2284_v21 = vmul.bf16 %v2283_v62, %v2275_v15  ;;  %v2325_v7 = vmul.bf16 %v2324_v63, %v2315_v16  ;;  %v2505_v62 = vshrl.u32 %v2503_v55, 16  ;;  %v2538_v17 = vrot.slane %v2533_v61, %v3203_v4 }
 0x7b0   : > { %v2247_v28 = vpop.permute.xlu1 %2246  ;;  %v2287_v29 = vpop.permute.xlu0 %2286  ;;  %v3037_v30 = vld [vmem:[#allocation2 + $0x20] sm:$0xff]   ;;  %v2492_v16 = vpack.i.b16 %v2490_v3, %v2490_v3  ;;  %v2524_v20 = vrot.slane %v2519_v2, %v3203_v4 }
 0x7b1   : > { %2285 = vst [vmem:[#allocation2 + $0x8] sm:$0xf] %v2284_v21  ;;  %2326 = vst [vmem:[#allocation2 + $0x14] sm:$0xf] %v2325_v7  ;;  %v2248_v31 = vpack.c.bf16 %v2247_v28, %v2247_v28  ;;  %v2288_v32 = vpack.c.bf16 %v2287_v29, %v2287_v29  ;;  %2736 = vmatpush1.bf16.msra.mxu1 %v3037_v30  ;;  %v2506_v15 = vpack.i.b16 %v2505_v62, %v2505_v62  ;;  %v2463_v7 = vld [vmem:[%s3919_s1 + $0x8] sm:$0x1] }
 0x7b2   : > { %2737 = vmatprep.subr.bf16.mxu1 %v3080_v10  ;;  %v2478_v21 = vshrl.u32 %v2476_v5, 16  ;;  %v2497_v4 = vrot.slane %v2492_v16, %v3294_v23  ;;  %v2465_v34 = vpack.i.b16 %v2463_v7, %v2463_v7 }
 0x7b3   : > { %v2257_v35 = vmul.bf16 %v2256_v18, %v2248_v31  ;;  %v2298_v36 = vmul.bf16 %v2297_v22, %v2288_v32  ;;  %v2511_v30 = vrot.slane %v2506_v15, %v3294_v23 }
 0x7b4   : > { %v2596_v43 = vpop.permute.xlu1 %2595  ;;  %v2260_v44 = vpop.permute.xlu0 %2259  ;;  %v3038_v45 = vld [vmem:[#allocation2 + $0x18] sm:$0xff]   ;;  %v2470_v23 = vrot.slane %v2465_v34, %v3307_v40 }
 0x7b5   : > { %2258 = vst [vmem:[#allocation2] sm:$0xf] %v2257_v35  ;;  %2299 = vst [vmem:[#allocation2 + $0xc] sm:$0xf] %v2298_v36  ;;  %v2597_v46 = vpack.c.bf16 %v2596_v43, %v2596_v43  ;;  %v2261_v47 = vpack.c.bf16 %v2260_v44, %v2260_v44  ;;  %2738 = vmatpush1.bf16.msra.mxu1 %v3038_v45 }
 0x7b6   : > { %2739 = vmatprep.subr.bf16.mxu1 %v3080_v10 }
 0x7b7   : > { %v2606_v50 = vmul.bf16 %v2605_v33, %v2597_v46  ;;  %v2271_v51 = vmul.bf16 %v2270_v38, %v2261_v47  ;;  %v2479_v33 = vpack.i.b16 %v2478_v21, %v2478_v21 }
 0x7b8   : > { %v2582_v56 = vpop.permute.xlu1 %2581  ;;  %v2569_v57 = vpop.permute.xlu0 %2568  ;;  %v3039_v58 = vld [vmem:[#allocation2 + $0x10] sm:$0xff]  }
 0x7b9   : > { %2607 = vst [vmem:[#allocation2 + $0x68] sm:$0xf] %v2606_v50  ;;  %2272 = vst [vmem:[#allocation2 + $0x4] sm:$0xf] %v2271_v51  ;;  %v2583_v37 = vpack.c.bf16 %v2582_v56, %v2582_v56  ;;  %v2570_v59 = vpack.c.bf16 %v2569_v57, %v2569_v57  ;;  %2740 = vmatpush1.bf16.msra.mxu1 %v3039_v58  ;;  %v2484_v43 = vrot.slane %v2479_v33, %v3307_v40 }
 0x7ba   : > { %2741 = vmatprep.subr.bf16.mxu1 %v3080_v10 }
 0x7bb   : > { %v2593_v63 = vmul.bf16 %v2592_v24, %v2583_v37  ;;  %v2579_v0 = vmul.bf16 %v2578_v52, %v2570_v59  ;;  %v2790_v37 = vld [vmem:[%s4055_s27] sm:$0xff] }
 0x7bc   : > { %v2555_v6 = vpop.permute.xlu1 %2554  ;;  %v2542_v8 = vpop.permute.xlu0 %2541  ;;  %v3040_v9 = vld [vmem:[#allocation2 + $0x8] sm:$0xff]  }
 0x7bd   : > { %2594 = vst [vmem:[#allocation2 + $0x64] sm:$0xf] %v2593_v63  ;;  %2580 = vst [vmem:[#allocation2 + $0x60] sm:$0xf] %v2579_v0  ;;  %v2556_v13 = vpack.c.bf16 %v2555_v6, %v2555_v6  ;;  %v2543_v14 = vpack.c.bf16 %v2542_v8, %v2542_v8  ;;  %2742 = vmatpush1.bf16.msra.mxu1 %v3040_v9 }
 0x7be   : > { %2743 = vmatprep.subr.bf16.mxu1 %v3080_v10 }
 0x7bf   : > { %v2566_v18 = vmul.bf16 %v2565_v60, %v2556_v13  ;;  %v2552_v19 = vmul.bf16 %v2551_v1, %v2543_v14 }
 0x7c0   : > { %v2528_v22 = vpop.permute.xlu1 %2527  ;;  %v2515_v25 = vpop.permute.xlu0 %2514  ;;  %v3041_v26 = vld [vmem:[#allocation2] sm:$0xff]   ;;  %v3042_v29 = vld [vmem:[#allocation2 + $0x68] ss:$0 sps:$4 sm:$0xff]  }
 0x7c1   : > { %2567 = vst [vmem:[#allocation2 + $0x5c] sm:$0xf] %v2566_v18  ;;  %2553 = vst [vmem:[#allocation2 + $0x58] sm:$0xf] %v2552_v19  ;;  %v2529_v27 = vpack.c.bf16 %v2528_v22, %v2528_v22  ;;  %v2516_v28 = vpack.c.bf16 %v2515_v25, %v2515_v25  ;;  %2744 = vmatpush1.bf16.msra.mxu1 %v3041_v26  ;;  %v2727_v39 = vsel %vm990_vm1, %v3042_v29, 0 }
 0x7c2   : > { %2749 = vmatprep.subr.bf16.mxu1 %v3080_v10 }
 0x7c3   : > { %v2539_v31 = vmul.bf16 %v2538_v17, %v2529_v27  ;;  %v2525_v32 = vmul.bf16 %v2524_v20, %v2516_v28 }
 0x7c4   : > { %v2501_v11 = vpop.permute.xlu1 %2500  ;;  %v2488_v35 = vpop.permute.xlu0 %2487  ;;  %v3043_v46 = vld [vmem:[#allocation2 + $0x60] sm:$0xff]  }
 0x7c5   : > { %2540 = vst [vmem:[#allocation2 + $0x54] sm:$0xf] %v2539_v31  ;;  %2526 = vst [vmem:[#allocation2 + $0x50] sm:$0xf] %v2525_v32  ;;  %v2502_v36 = vpack.c.bf16 %v2501_v11, %v2501_v11  ;;  %v2489_v38 = vpack.c.bf16 %v2488_v35, %v2488_v35  ;;  %2750 = vmatpush2.bf16.msra.mxu1 %v2727_v39 }
 0x7c6   : > { %2751 = vmatprep.subr.bf16.mxu1 %v3080_v10 }
 0x7c7   : > { %v2512_v41 = vmul.bf16 %v2511_v30, %v2502_v36  ;;  %v2498_v42 = vmul.bf16 %v2497_v4, %v2489_v38 }
 0x7c8   : > { %v2474_v44 = vpop.permute.xlu1 %2473  ;;  %v2461_v45 = vpop.permute.xlu0 %2460  ;;  %v3044_v50 = vld [vmem:[#allocation2 + $0x58] sm:$0xff]  }
 0x7c9   : > { %2513 = vst [vmem:[#allocation2 + $0x4c] sm:$0xf] %v2512_v41  ;;  %2499 = vst [vmem:[#allocation2 + $0x48] sm:$0xf] %v2498_v42  ;;  %v2475_v47 = vpack.c.bf16 %v2474_v44, %v2474_v44  ;;  %v2462_v24 = vpack.c.bf16 %v2461_v45, %v2461_v45  ;;  %2752 = vmatpush2.bf16.msra.mxu1 %v3043_v46 }
 0x7ca   : > { %2753 = vmatprep.subr.bf16.mxu1 %v3080_v10 }
 0x7cb   : > { %v2485_v48 = vmul.bf16 %v2484_v43, %v2475_v47  ;;  %v2471_v49 = vmul.bf16 %v2470_v23, %v2462_v24 }
 0x7cc   : > { %v3045_v40 = vld [vmem:[#allocation2 + $0x50] sm:$0xff]  }
 0x7cd   : > { %2486 = vst [vmem:[#allocation2 + $0x44] sm:$0xf] %v2485_v48  ;;  %2472 = vst [vmem:[#allocation2 + $0x40] sm:$0xf] %v2471_v49  ;;  %2754 = vmatpush2.bf16.msra.mxu1 %v3044_v50 }
 0x7ce   : > { %2755 = vmatprep.subr.bf16.mxu1 %v3080_v10 }
 0x7d0   : > { %v3046_v51 = vld [vmem:[#allocation2 + $0x48] sm:$0xff]  }
 0x7d1   : > { %2756 = vmatpush2.bf16.msra.mxu1 %v3045_v40 }
 0x7d2   : > { %2757 = vmatprep.subr.bf16.mxu1 %v3080_v10 }
 0x7d4   : > { %v3047_v52 = vld [vmem:[#allocation2 + $0x40] sm:$0xff]  }
 0x7d5   : > { %2758 = vmatpush2.bf16.msra.mxu1 %v3046_v51 }
 0x7d6   : > { %2759 = vmatprep.subr.bf16.mxu1 %v3080_v10  ;;  %v2783_v10 = vld [vmem:[%s4056_s20] sm:$0xff] }
 0x7d9   : > { %2760 = vmatpush2.bf16.msra.mxu1 %v3047_v52 }
 0x7dc   : > { %2762 = vmatmul.mubr.bf16.vlgmr.msra.gmra.mxu1 %v2929_v53 }
 0x89c   : > { %v2763_v54 = vpop.f32.mrf.mxu1 }
 0x89d   : > { %v2771_v55 = vmul.f32 %v2763_v54, %v2763_v54  ;;  %2769 = vadd.xlane.f32.xlu0 %v2763_v54 }
 0x89e   : > { %v2765_v56 = vpop.f32.mrf.mxu1 }
 0x89f   : > { %2772 = vadd.xlane.f32.xlu1 %v2771_v55 }
 0x8a0   : > { %v2766_v57 = vpop.f32.mrf.mxu1 }
 0x8a2   : > { %v2767_v58 = vpop.f32.mrf.mxu1 }
 0x8b0   : > { %2793 = vperm.xlu1 %2985, %v2790_v37  }
 0x8b3   : > { %2786 = vperm.xlu0 %2984, %v2783_v10  }
 0x8b7   : > { %2800 = vperm.xlu0 %2984, %v2797_v12  }
 0x926   : > { %v2770_v59 = vpop.xlane.xlu0 %2769 }
 0x927   : > { %v2774_v60 = vmul.f32 0.015625, %v2770_v59 }
 0x928   : > { %v2773_v61 = vpop.xlane.xlu1 %2772 }
 0x929   : > { %v2776_v62 = vmul.f32 %v2774_v60, %v2774_v60  ;;  %v2775_v63 = vmul.f32 0.015625, %v2773_v61  ;;  %v2779_v3 = vsub.f32 %v2763_v54, %v2774_v60 }
 0x92b   : > { %v2777_v0 = vsub.f32 %v2775_v63, %v2776_v62 }
 0x92c   : > { %v2794_v13 = vpop.permute.xlu1 %2793 }
 0x92d   : > { %v2778_v1 = vmax.f32 %v2777_v0, 0.0 }
 0x92e   : > { %v2787_v6 = vpop.permute.xlu0 %2786 }
 0x92f   : > { %v2780_v2 = vadd.f32 1e-05, %v2778_v1 }
 0x931   : > { %3068 = vrsqrt.f32 %v2780_v2 }
 0x932   : > { %v2801_v17 = vpop.permute.xlu0 %2800 }
 0x93e   : > { %v3069_v5 = vpop.eup %3068 }
 0x93f   : > { %v2782_v8 = vmul.f32 %v3069_v5, %v2779_v3 }
 0x941   : > { %v2789_v9 = vmul.f32 %v2787_v6, %v2782_v8 }
 0x943   : > { %v2796_v14 = vadd.f32 %v2794_v13, %v2789_v9 }
 0x945   : > { %v2803_v15 = vadd.f32 %v2801_v17, %v2796_v14 }
 0x947   : > { %2804 = vst [vmem:[%s506_s6] sm:$0xff] %v2803_v15 }
 0x948 PF: > { %s4059_s13 = sld [smem:[#allocation3_spill]] }
 0x94e   : > { %s25_s18 = sadd.s32 1, %s4059_s13  }
 0x94f   : > { %p22_p4 = scmp.ge.s32.totalorder %s25_s18, 4  }
 0x951   :  { %24 = sbr.rel (!%p22_p4) target bundleno = 16 (0x10), region = 113 }

</bundles_post_ra>
